<compile_context>
chip_gen: v5e
topology: v5e:2x2
jax: 0.10.0
libtpu: 0.0.40
codegen_flags: <defaults>
</compile_context>

<pallas_src>
import jax
import jax.numpy as jnp
import numpy as np
from jax.experimental import pallas as pl
from jax.experimental.pallas import tpu as pltpu

EPS = 1e-5  # PyTorch InstanceNorm2d default


def expanding_block_kernel(x_ref, w_ref, o_ref):
    # x_ref: (1, H+1, W+1, C_in)  bf16 input, one zero row/col appended at bottom/right
    # w_ref: (3, 3, C_in, Ct)     bf16 flipped ConvTranspose weight (stride-1 conv form)
    # o_ref: (1, H*W, 4*Ct)       phase-concatenated output, phase p = 2*ph + pw
    H = x_ref.shape[1] - 1
    W = x_ref.shape[2] - 1
    C_in = x_ref.shape[3]

    def win(di, dj):
        # Shifted HxW window of the padded input, flattened to (H*W, C_in) for the MXU.
        # bf16 => the (unavoidable, non-tile-aligned) window copy is half-width.
        return x_ref[0, di:di + H, dj:dj + W, :].reshape(H * W, C_in)

    def mm(a, kh, kw):
        return jnp.dot(a, w_ref[kh, kw], preferred_element_type=jnp.float32)

    # Polyphase decomposition of the stride-2 transposed conv: 9 taps total for the
    # 4 output parity phases (4x fewer MACs than convolving a zero-dilated input).
    # Shifted windows are built lazily, immediately before their uses.
    x00 = win(0, 0)                      # used by all four phases, keep resident
    y00 = mm(x00, 1, 1)                  # -> out[2i  , 2j  ]
    y01 = mm(x00, 1, 0)                  # -> out[2i  , 2j+1]
    y10 = mm(x00, 0, 1)                  # -> out[2i+1, 2j  ]
    y11 = mm(x00, 0, 0)                  # -> out[2i+1, 2j+1]
    x01 = win(0, 1)
    y01 = y01 + mm(x01, 1, 2)
    y11 = y11 + mm(x01, 0, 2)
    x10 = win(1, 0)
    y10 = y10 + mm(x10, 2, 1)
    y11 = y11 + mm(x10, 2, 0)
    x11 = win(1, 1)
    y11 = y11 + mm(x11, 2, 2)

    # InstanceNorm(affine=False) statistics over all H_out*W_out = 4*H*W pixels, per
    # output channel.  Two-pass variance over the resident f32 planes (robust).
    # Conv bias is omitted: it cancels exactly under the mean subtraction.
    inv_count = 1.0 / (4.0 * H * W)
    mean = (y00.sum(axis=0, keepdims=True) + y01.sum(axis=0, keepdims=True)
            + y10.sum(axis=0, keepdims=True) + y11.sum(axis=0, keepdims=True)) * inv_count
    d00 = y00 - mean
    d01 = y01 - mean
    d10 = y10 - mean
    d11 = y11 - mean
    var = ((d00 * d00).sum(axis=0, keepdims=True)
           + (d01 * d01).sum(axis=0, keepdims=True)
           + (d10 * d10).sum(axis=0, keepdims=True)
           + (d11 * d11).sum(axis=0, keepdims=True)) * inv_count
    inv_std = jax.lax.rsqrt(var + EPS)

    # Normalize + ReLU, then concatenate the 4 phase planes along lanes so the output
    # store is a single lane-dense write of width 4*Ct (unmasked whenever 4*Ct >= 128).
    y = jnp.concatenate(
        [jnp.maximum(d00 * inv_std, 0.0),
         jnp.maximum(d01 * inv_std, 0.0),
         jnp.maximum(d10 * inv_std, 0.0),
         jnp.maximum(d11 * inv_std, 0.0)],
        axis=-1)
    o_ref[0] = y.astype(o_ref.dtype)


def expanding_block(x_nchw, w_t, bias=None, *, stride=2, padding=1, output_padding=1,
                    tc=None, out_dtype=None):
    """ConvTranspose2d(k=3, s=2, p=1, out_p=1) + InstanceNorm2d(affine=False) + ReLU.

    x_nchw: (N, C_in, H, W); w_t: (C_in, C_out, 3, 3) [PyTorch ConvTranspose2d layout];
    bias: (C_out,) accepted for API parity but unused — InstanceNorm2d(affine=False)
    subtracts the per-channel mean, which cancels a constant per-channel bias exactly.
    Returns (N, C_out, 2H, 2W) in out_dtype (defaults to x dtype)."""
    N, C_in, H, W = x_nchw.shape
    Ci2, C_out, K, K2 = w_t.shape
    assert Ci2 == C_in and K == K2 == 3
    if not (stride == 2 and padding == 1 and output_padding == 1):
        raise NotImplementedError(
            "Polyphase kernel is specialized to kernel_size=3, stride=2, padding=1, "
            "output_padding=1 (the standard CycleGAN expanding-block config).")
    out_dtype = x_nchw.dtype if out_dtype is None else out_dtype
    H_out, W_out = 2 * H, 2 * W

    # Wrapper glue (plain JAX): NHWC layout, +1 zero row/col at bottom/right (covers the
    # i+1 / j+1 taps at the image boundary), bf16 MXU operands (f32 accumulation happens
    # inside the kernel).  No dilation scatter is ever materialized.
    x = jnp.transpose(x_nchw, (0, 2, 3, 1))                               # (N, H, W, C_in)
    x_pad = jnp.pad(x, ((0, 0), (0, 1), (0, 1), (0, 0))).astype(jnp.bfloat16)

    # ConvTranspose weight -> equivalent stride-1 conv weight (K, K, C_in, C_out), bf16.
    w_k = jnp.transpose(jnp.flip(w_t, axis=(2, 3)), (2, 3, 0, 1)).astype(jnp.bfloat16)

    # Output-channel block: InstanceNorm stats are per-channel, so channel blocks are
    # fully independent.  Non-multiples of 128 (64, 192, ...) use a single block instead
    # of asserting; on v6e/v7x pass tc=256 when C_out % 256 == 0 to fill the MXU.
    if tc is None:
        tc = C_out if (C_out <= 128 or C_out % 128 != 0) else 128
    assert C_out % tc == 0, f"tc={tc} must divide C_out={C_out}"
    n_cblk = C_out // tc

    # Explicit scoped-VMEM budget from the actual block sizes (+ intermediates/headroom);
    # defaults (16/32 MiB) throttle or fail at real CycleGAN sizes.  Capped at 48 MiB so
    # it stays inside v7x's 64 MiB physical VMEM.
    out_isz = jnp.dtype(out_dtype).itemsize
    bytes_in = (H + 1) * (W + 1) * C_in * 2
    bytes_w = 9 * C_in * tc * 2
    bytes_out = H * W * 4 * tc * out_isz
    bytes_interm = 12 * H * W * tc * 4 + 4 * H * W * C_in * 2
    vmem_limit = int(min(max(2 * (bytes_in + bytes_w + bytes_out) + bytes_interm
                             + (4 << 20), 16 << 20), 48 << 20))

    cost = pl.CostEstimate(
        flops=int(2 * 9 * H * W * C_in * C_out * N),
        transcendentals=int(N * C_out),
        bytes_accessed=int(N * (H + 1) * (W + 1) * C_in * 2
                           + N * n_cblk * 9 * C_in * tc * 2
                           + N * H * W * 4 * C_out * out_isz))

    out_k = pl.pallas_call(
        expanding_block_kernel,
        out_shape=jax.ShapeDtypeStruct((N, H * W, 4 * C_out), out_dtype),
        grid_spec=pltpu.PrefetchScalarGridSpec(
            num_scalar_prefetch=0,
            grid=(N, n_cblk),
            in_specs=[
                pl.BlockSpec((1, H + 1, W + 1, C_in), lambda n, c: (n, 0, 0, 0)),
                pl.BlockSpec((K, K, C_in, tc), lambda n, c: (0, 0, 0, c)),
            ],
            out_specs=pl.BlockSpec((1, H * W, 4 * tc), lambda n, c: (n, 0, c)),
        ),
        compiler_params=pltpu.CompilerParams(
            dimension_semantics=("parallel", "parallel"),
            vmem_limit_bytes=vmem_limit),
        cost_estimate=cost,
    )(x_pad, w_k)

    # De-interleave the phases in HBM and return NCHW: out[n, c, 2i+ph, 2j+pw].
    # Kernel channel layout per pixel is [c_block][phase p = 2*ph + pw][ct].
    out = out_k.reshape(N, H, W, n_cblk, 2, 2, tc)            # (n, i, j, cb, ph, pw, ct)
    out = jnp.transpose(out, (0, 3, 6, 1, 4, 2, 5))           # (n, cb, ct, i, ph, j, pw)
    return out.reshape(N, C_out, H_out, W_out)


def ref_expanding_block(x_nchw, w_t, bias, *, stride=2, padding=1, output_padding=1):
    """Independent pure-JAX f32 reference (lhs-dilated conv == conv transpose), WITH bias."""
    K = w_t.shape[-1]
    w_conv = jnp.transpose(jnp.flip(w_t, axis=(2, 3)), (1, 0, 2, 3))   # (C_out, C_in, K, K)
    pad_lo = K - 1 - padding
    pad_hi = K - 1 - padding + output_padding
    y = jax.lax.conv_general_dilated(
        x_nchw, w_conv, window_strides=(1, 1),
        padding=[(pad_lo, pad_hi), (pad_lo, pad_hi)],
        lhs_dilation=(stride, stride),
        dimension_numbers=('NCHW', 'OIHW', 'NCHW'),
        precision=jax.lax.Precision.HIGHEST)
    y = y + bias[None, :, None, None]
    mean = jnp.mean(y, axis=(2, 3), keepdims=True)
    var = jnp.mean((y - mean) ** 2, axis=(2, 3), keepdims=True)
    y = (y - mean) / jnp.sqrt(var + EPS)
    return jnp.maximum(y, 0.0)


if __name__ == "__main__":
    key = jax.random.PRNGKey(0)
    kx, kw, kb = jax.random.split(key, 3)
    N, C_in, C_out, H, W, K = 2, 8, 32, 16, 16, 3

    x = jax.random.normal(kx, (N, C_in, H, W), jnp.float32)
    w_t = jax.random.normal(kw, (C_in, C_out, K, K), jnp.float32) / np.sqrt(C_in * K * K)
    bias = jax.random.normal(kb, (C_out,), jnp.float32) * 0.1

    out = expanding_block(x, w_t, bias)
    jax.block_until_ready(out)

    ref = ref_expanding_block(x, w_t, bias)
    assert out.shape == (N, C_out, 2 * H, 2 * W), out.shape
    # bf16 MXU operands (f32 accumulation) => ~1e-2 level agreement with the f32 reference.
    np.testing.assert_allclose(np.asarray(out), np.asarray(ref), rtol=2e-2, atol=2e-2)
    print("KERNEL_OK")
</pallas_src>

<mosaic_0001>
module attributes {stable_mosaic.version = 11 : i64} {
  func.func @expanding_block_kernel(%arg0: i32, %arg1: i32, %arg2: memref<1x17x17x8xbf16, #tpu.memory_space<vmem>>, %arg3: memref<3x3x8x32xbf16, #tpu.memory_space<vmem>>, %arg4: memref<1x256x128xf32, #tpu.memory_space<vmem>>) attributes {dimension_semantics = [#tpu.dimension_semantics<parallel>, #tpu.dimension_semantics<parallel>], iteration_bounds = array<i64: 2, 1>, scalar_prefetch = 0 : i64, scratch_operands = 0 : i64, tpu.core_type = #tpu.core_type<tc>, window_params = [{transform_indices = @transform_0, window_bounds = array<i64: 1, 17, 17, 8>}, {transform_indices = @transform_1, window_bounds = array<i64: 3, 3, 8, 32>}, {transform_indices = @transform_2, window_bounds = array<i64: 1, 256, 128>}]} {
    %c0 = arith.constant 0 : index
    %c0_0 = arith.constant 0 : index
    %c0_1 = arith.constant 0 : index
    %c0_2 = arith.constant 0 : index
    %0 = vector.load %arg2[%c0, %c0_0, %c0_1, %c0_2] : memref<1x17x17x8xbf16, #tpu.memory_space<vmem>>, vector<1x16x16x8xbf16>
    %1 = vector.shape_cast %0 : vector<1x16x16x8xbf16> to vector<16x16x8xbf16>
    %2 = vector.shape_cast %1 : vector<16x16x8xbf16> to vector<256x8xbf16>
    %c1 = arith.constant 1 : index
    %c1_3 = arith.constant 1 : index
    %c0_4 = arith.constant 0 : index
    %c0_5 = arith.constant 0 : index
    %3 = vector.load %arg3[%c1, %c1_3, %c0_4, %c0_5] : memref<3x3x8x32xbf16, #tpu.memory_space<vmem>>, vector<1x1x8x32xbf16>
    %4 = vector.shape_cast %3 : vector<1x1x8x32xbf16> to vector<8x32xbf16>
    %cst = arith.constant dense<0.000000e+00> : vector<256x32xf32>
    %5 = tpu.matmul %2, %4, %cst {dimension_numbers = #tpu.dot_dimension_numbers<[1], [0], [0], [1], [0, 0, 1, 1], [], []>} : vector<256x8xbf16>, vector<8x32xbf16>, vector<256x32xf32> -> vector<256x32xf32>
    %c1_6 = arith.constant 1 : index
    %c0_7 = arith.constant 0 : index
    %c0_8 = arith.constant 0 : index
    %c0_9 = arith.constant 0 : index
    %6 = vector.load %arg3[%c1_6, %c0_7, %c0_8, %c0_9] : memref<3x3x8x32xbf16, #tpu.memory_space<vmem>>, vector<1x1x8x32xbf16>
    %7 = vector.shape_cast %6 : vector<1x1x8x32xbf16> to vector<8x32xbf16>
    %cst_10 = arith.constant dense<0.000000e+00> : vector<256x32xf32>
    %8 = tpu.matmul %2, %7, %cst_10 {dimension_numbers = #tpu.dot_dimension_numbers<[1], [0], [0], [1], [0, 0, 1, 1], [], []>} : vector<256x8xbf16>, vector<8x32xbf16>, vector<256x32xf32> -> vector<256x32xf32>
    %c0_11 = arith.constant 0 : index
    %c1_12 = arith.constant 1 : index
    %c0_13 = arith.constant 0 : index
    %c0_14 = arith.constant 0 : index
    %9 = vector.load %arg3[%c0_11, %c1_12, %c0_13, %c0_14] : memref<3x3x8x32xbf16, #tpu.memory_space<vmem>>, vector<1x1x8x32xbf16>
    %10 = vector.shape_cast %9 : vector<1x1x8x32xbf16> to vector<8x32xbf16>
    %cst_15 = arith.constant dense<0.000000e+00> : vector<256x32xf32>
    %11 = tpu.matmul %2, %10, %cst_15 {dimension_numbers = #tpu.dot_dimension_numbers<[1], [0], [0], [1], [0, 0, 1, 1], [], []>} : vector<256x8xbf16>, vector<8x32xbf16>, vector<256x32xf32> -> vector<256x32xf32>
    %c0_16 = arith.constant 0 : index
    %c0_17 = arith.constant 0 : index
    %c0_18 = arith.constant 0 : index
    %c0_19 = arith.constant 0 : index
    %12 = vector.load %arg3[%c0_16, %c0_17, %c0_18, %c0_19] : memref<3x3x8x32xbf16, #tpu.memory_space<vmem>>, vector<1x1x8x32xbf16>
    %13 = vector.shape_cast %12 : vector<1x1x8x32xbf16> to vector<8x32xbf16>
    %cst_20 = arith.constant dense<0.000000e+00> : vector<256x32xf32>
    %14 = tpu.matmul %2, %13, %cst_20 {dimension_numbers = #tpu.dot_dimension_numbers<[1], [0], [0], [1], [0, 0, 1, 1], [], []>} : vector<256x8xbf16>, vector<8x32xbf16>, vector<256x32xf32> -> vector<256x32xf32>
    %c0_21 = arith.constant 0 : index
    %c0_22 = arith.constant 0 : index
    %c1_23 = arith.constant 1 : index
    %c0_24 = arith.constant 0 : index
    %15 = vector.load %arg2[%c0_21, %c0_22, %c1_23, %c0_24] : memref<1x17x17x8xbf16, #tpu.memory_space<vmem>>, vector<1x16x16x8xbf16>
    %16 = vector.shape_cast %15 : vector<1x16x16x8xbf16> to vector<16x16x8xbf16>
    %17 = vector.shape_cast %16 : vector<16x16x8xbf16> to vector<256x8xbf16>
    %c1_25 = arith.constant 1 : index
    %c2 = arith.constant 2 : index
    %c0_26 = arith.constant 0 : index
    %c0_27 = arith.constant 0 : index
    %18 = vector.load %arg3[%c1_25, %c2, %c0_26, %c0_27] : memref<3x3x8x32xbf16, #tpu.memory_space<vmem>>, vector<1x1x8x32xbf16>
    %19 = vector.shape_cast %18 : vector<1x1x8x32xbf16> to vector<8x32xbf16>
    %cst_28 = arith.constant dense<0.000000e+00> : vector<256x32xf32>
    %20 = tpu.matmul %17, %19, %cst_28 {dimension_numbers = #tpu.dot_dimension_numbers<[1], [0], [0], [1], [0, 0, 1, 1], [], []>} : vector<256x8xbf16>, vector<8x32xbf16>, vector<256x32xf32> -> vector<256x32xf32>
    %21 = arith.addf %8, %20 : vector<256x32xf32>
    %c0_29 = arith.constant 0 : index
    %c2_30 = arith.constant 2 : index
    %c0_31 = arith.constant 0 : index
    %c0_32 = arith.constant 0 : index
    %22 = vector.load %arg3[%c0_29, %c2_30, %c0_31, %c0_32] : memref<3x3x8x32xbf16, #tpu.memory_space<vmem>>, vector<1x1x8x32xbf16>
    %23 = vector.shape_cast %22 : vector<1x1x8x32xbf16> to vector<8x32xbf16>
    %cst_33 = arith.constant dense<0.000000e+00> : vector<256x32xf32>
    %24 = tpu.matmul %17, %23, %cst_33 {dimension_numbers = #tpu.dot_dimension_numbers<[1], [0], [0], [1], [0, 0, 1, 1], [], []>} : vector<256x8xbf16>, vector<8x32xbf16>, vector<256x32xf32> -> vector<256x32xf32>
    %25 = arith.addf %14, %24 : vector<256x32xf32>
    %c0_34 = arith.constant 0 : index
    %c1_35 = arith.constant 1 : index
    %c0_36 = arith.constant 0 : index
    %c0_37 = arith.constant 0 : index
    %26 = vector.load %arg2[%c0_34, %c1_35, %c0_36, %c0_37] : memref<1x17x17x8xbf16, #tpu.memory_space<vmem>>, vector<1x16x16x8xbf16>
    %27 = vector.shape_cast %26 : vector<1x16x16x8xbf16> to vector<16x16x8xbf16>
    %28 = vector.shape_cast %27 : vector<16x16x8xbf16> to vector<256x8xbf16>
    %c2_38 = arith.constant 2 : index
    %c1_39 = arith.constant 1 : index
    %c0_40 = arith.constant 0 : index
    %c0_41 = arith.constant 0 : index
    %29 = vector.load %arg3[%c2_38, %c1_39, %c0_40, %c0_41] : memref<3x3x8x32xbf16, #tpu.memory_space<vmem>>, vector<1x1x8x32xbf16>
    %30 = vector.shape_cast %29 : vector<1x1x8x32xbf16> to vector<8x32xbf16>
    %cst_42 = arith.constant dense<0.000000e+00> : vector<256x32xf32>
    %31 = tpu.matmul %28, %30, %cst_42 {dimension_numbers = #tpu.dot_dimension_numbers<[1], [0], [0], [1], [0, 0, 1, 1], [], []>} : vector<256x8xbf16>, vector<8x32xbf16>, vector<256x32xf32> -> vector<256x32xf32>
    %32 = arith.addf %11, %31 : vector<256x32xf32>
    %c2_43 = arith.constant 2 : index
    %c0_44 = arith.constant 0 : index
    %c0_45 = arith.constant 0 : index
    %c0_46 = arith.constant 0 : index
    %33 = vector.load %arg3[%c2_43, %c0_44, %c0_45, %c0_46] : memref<3x3x8x32xbf16, #tpu.memory_space<vmem>>, vector<1x1x8x32xbf16>
    %34 = vector.shape_cast %33 : vector<1x1x8x32xbf16> to vector<8x32xbf16>
    %cst_47 = arith.constant dense<0.000000e+00> : vector<256x32xf32>
    %35 = tpu.matmul %28, %34, %cst_47 {dimension_numbers = #tpu.dot_dimension_numbers<[1], [0], [0], [1], [0, 0, 1, 1], [], []>} : vector<256x8xbf16>, vector<8x32xbf16>, vector<256x32xf32> -> vector<256x32xf32>
    %36 = arith.addf %25, %35 : vector<256x32xf32>
    %c0_48 = arith.constant 0 : index
    %c1_49 = arith.constant 1 : index
    %c1_50 = arith.constant 1 : index
    %c0_51 = arith.constant 0 : index
    %37 = vector.load %arg2[%c0_48, %c1_49, %c1_50, %c0_51] : memref<1x17x17x8xbf16, #tpu.memory_space<vmem>>, vector<1x16x16x8xbf16>
    %38 = vector.shape_cast %37 : vector<1x16x16x8xbf16> to vector<16x16x8xbf16>
    %39 = vector.shape_cast %38 : vector<16x16x8xbf16> to vector<256x8xbf16>
    %c2_52 = arith.constant 2 : index
    %c2_53 = arith.constant 2 : index
    %c0_54 = arith.constant 0 : index
    %c0_55 = arith.constant 0 : index
    %40 = vector.load %arg3[%c2_52, %c2_53, %c0_54, %c0_55] : memref<3x3x8x32xbf16, #tpu.memory_space<vmem>>, vector<1x1x8x32xbf16>
    %41 = vector.shape_cast %40 : vector<1x1x8x32xbf16> to vector<8x32xbf16>
    %cst_56 = arith.constant dense<0.000000e+00> : vector<256x32xf32>
    %42 = tpu.matmul %39, %41, %cst_56 {dimension_numbers = #tpu.dot_dimension_numbers<[1], [0], [0], [1], [0, 0, 1, 1], [], []>} : vector<256x8xbf16>, vector<8x32xbf16>, vector<256x32xf32> -> vector<256x32xf32>
    %43 = arith.addf %36, %42 : vector<256x32xf32>
    %cst_57 = arith.constant dense<0.000000e+00> : vector<32xf32>
    %44 = vector.multi_reduction <add>, %5, %cst_57 [0] : vector<256x32xf32> to vector<32xf32>
    %45 = vector.shape_cast %44 : vector<32xf32> to vector<1x32xf32>
    %cst_58 = arith.constant dense<0.000000e+00> : vector<32xf32>
    %46 = vector.multi_reduction <add>, %21, %cst_58 [0] : vector<256x32xf32> to vector<32xf32>
    %47 = vector.shape_cast %46 : vector<32xf32> to vector<1x32xf32>
    %48 = arith.addf %45, %47 : vector<1x32xf32>
    %cst_59 = arith.constant dense<0.000000e+00> : vector<32xf32>
    %49 = vector.multi_reduction <add>, %32, %cst_59 [0] : vector<256x32xf32> to vector<32xf32>
    %50 = vector.shape_cast %49 : vector<32xf32> to vector<1x32xf32>
    %51 = arith.addf %48, %50 : vector<1x32xf32>
    %cst_60 = arith.constant dense<0.000000e+00> : vector<32xf32>
    %52 = vector.multi_reduction <add>, %43, %cst_60 [0] : vector<256x32xf32> to vector<32xf32>
    %53 = vector.shape_cast %52 : vector<32xf32> to vector<1x32xf32>
    %54 = arith.addf %51, %53 : vector<1x32xf32>
    %cst_61 = arith.constant 9.765625E-4 : f32
    %55 = vector.broadcast %cst_61 : f32 to vector<1x32xf32>
    %56 = arith.mulf %54, %55 : vector<1x32xf32>
    %57 = vector.broadcast %56 : vector<1x32xf32> to vector<256x32xf32>
    %58 = arith.subf %5, %57 : vector<256x32xf32>
    %59 = vector.broadcast %56 : vector<1x32xf32> to vector<256x32xf32>
    %60 = arith.subf %21, %59 : vector<256x32xf32>
    %61 = vector.broadcast %56 : vector<1x32xf32> to vector<256x32xf32>
    %62 = arith.subf %32, %61 : vector<256x32xf32>
    %63 = vector.broadcast %56 : vector<1x32xf32> to vector<256x32xf32>
    %64 = arith.subf %43, %63 : vector<256x32xf32>
    %65 = arith.mulf %58, %58 : vector<256x32xf32>
    %cst_62 = arith.constant dense<0.000000e+00> : vector<32xf32>
    %66 = vector.multi_reduction <add>, %65, %cst_62 [0] : vector<256x32xf32> to vector<32xf32>
    %67 = vector.shape_cast %66 : vector<32xf32> to vector<1x32xf32>
    %68 = arith.mulf %60, %60 : vector<256x32xf32>
    %cst_63 = arith.constant dense<0.000000e+00> : vector<32xf32>
    %69 = vector.multi_reduction <add>, %68, %cst_63 [0] : vector<256x32xf32> to vector<32xf32>
    %70 = vector.shape_cast %69 : vector<32xf32> to vector<1x32xf32>
    %71 = arith.addf %67, %70 : vector<1x32xf32>
    %72 = arith.mulf %62, %62 : vector<256x32xf32>
    %cst_64 = arith.constant dense<0.000000e+00> : vector<32xf32>
    %73 = vector.multi_reduction <add>, %72, %cst_64 [0] : vector<256x32xf32> to vector<32xf32>
    %74 = vector.shape_cast %73 : vector<32xf32> to vector<1x32xf32>
    %75 = arith.addf %71, %74 : vector<1x32xf32>
    %76 = arith.mulf %64, %64 : vector<256x32xf32>
    %cst_65 = arith.constant dense<0.000000e+00> : vector<32xf32>
    %77 = vector.multi_reduction <add>, %76, %cst_65 [0] : vector<256x32xf32> to vector<32xf32>
    %78 = vector.shape_cast %77 : vector<32xf32> to vector<1x32xf32>
    %79 = arith.addf %75, %78 : vector<1x32xf32>
    %cst_66 = arith.constant 9.765625E-4 : f32
    %80 = vector.broadcast %cst_66 : f32 to vector<1x32xf32>
    %81 = arith.mulf %79, %80 : vector<1x32xf32>
    %cst_67 = arith.constant 9.99999974E-6 : f32
    %82 = vector.broadcast %cst_67 : f32 to vector<1x32xf32>
    %83 = arith.addf %81, %82 : vector<1x32xf32>
    %84 = math.rsqrt %83 : vector<1x32xf32>
    %85 = vector.broadcast %84 : vector<1x32xf32> to vector<256x32xf32>
    %86 = arith.mulf %58, %85 : vector<256x32xf32>
    %cst_68 = arith.constant 0.000000e+00 : f32
    %87 = vector.broadcast %cst_68 : f32 to vector<256x32xf32>
    %88 = arith.maximumf %86, %87 : vector<256x32xf32>
    %89 = vector.broadcast %84 : vector<1x32xf32> to vector<256x32xf32>
    %90 = arith.mulf %60, %89 : vector<256x32xf32>
    %cst_69 = arith.constant 0.000000e+00 : f32
    %91 = vector.broadcast %cst_69 : f32 to vector<256x32xf32>
    %92 = arith.maximumf %90, %91 : vector<256x32xf32>
    %93 = vector.broadcast %84 : vector<1x32xf32> to vector<256x32xf32>
    %94 = arith.mulf %62, %93 : vector<256x32xf32>
    %cst_70 = arith.constant 0.000000e+00 : f32
    %95 = vector.broadcast %cst_70 : f32 to vector<256x32xf32>
    %96 = arith.maximumf %94, %95 : vector<256x32xf32>
    %97 = vector.broadcast %84 : vector<1x32xf32> to vector<256x32xf32>
    %98 = arith.mulf %64, %97 : vector<256x32xf32>
    %cst_71 = arith.constant 0.000000e+00 : f32
    %99 = vector.broadcast %cst_71 : f32 to vector<256x32xf32>
    %100 = arith.maximumf %98, %99 : vector<256x32xf32>
    %101 = tpu.concatenate %88, %92, %96, %100 in 1 : vector<256x32xf32>, vector<256x32xf32>, vector<256x32xf32>, vector<256x32xf32> -> vector<256x128xf32>
    %c0_72 = arith.constant 0 : index
    %c0_73 = arith.constant 0 : index
    %c0_74 = arith.constant 0 : index
    %102 = vector.load %arg4[%c0_72, %c0_73, %c0_74] : memref<1x256x128xf32, #tpu.memory_space<vmem>>, vector<1x256x128xf32>
    %103 = vector.shape_cast %102 : vector<1x256x128xf32> to vector<256x128xf32>
    %104 = vector.shape_cast %101 : vector<256x128xf32> to vector<1x256x128xf32>
    tpu.vector_store %arg4[%c0_72, %c0_73, %c0_74], %104 {strides = array<i32>} : memref<1x256x128xf32, #tpu.memory_space<vmem>>, vector<1x256x128xf32>,
    return
  }
  func.func @transform_0(%arg0: i32, %arg1: i32) -> (i32, i32, i32, i32) {
    %c0_i32 = arith.constant 0 : i32
    %c0_i32_0 = arith.constant 0 : i32
    %c0_i32_1 = arith.constant 0 : i32
    %c0_i32_2 = arith.constant 0 : i32
    return %arg0, %c0_i32, %c0_i32_0, %c0_i32_1 : i32, i32, i32, i32
  }
  func.func @transform_1(%arg0: i32, %arg1: i32) -> (i32, i32, i32, i32) {
    %c0_i32 = arith.constant 0 : i32
    %c0_i32_0 = arith.constant 0 : i32
    %c0_i32_1 = arith.constant 0 : i32
    %c0_i32_2 = arith.constant 0 : i32
    return %c0_i32, %c0_i32_0, %c0_i32_1, %arg1 : i32, i32, i32, i32
  }
  func.func @transform_2(%arg0: i32, %arg1: i32) -> (i32, i32, i32) {
    %c0_i32 = arith.constant 0 : i32
    %c0_i32_0 = arith.constant 0 : i32
    return %arg0, %c0_i32, %arg1 : i32, i32, i32
  }
}

</mosaic_0001>

<bundles_post_ra>
// kernel: tpu_custom_call.1
= control target key start
LH: loop header
LB: loop body
LE: loop exit
PB: predicated region body
PF: predicated region fallthrough
CT: control target
= control target key end

     0   :  { %7 = vsyncpa [#allocation3], 0  ;;  %s7655_s0 = inlined_call_operand.vmem [shape: bf16[2,17,17,8], index: 0, kind: input, shape index: {}]   ;;  %s7656_s1 = inlined_call_operand.vmem [shape: bf16[3,3,8,32], index: 1, kind: input, shape index: {}]   ;;  %s7657_s2 = inlined_call_operand.hbm [shape: f32[2,256,128], index: 2, kind: output, shape index: {}]  }
   0x1   :  { %9 = vsyncpa [#allocation3 + $0x1], 0  ;;  %s4757_s9 = smov 0   ;;  %s4759_s10 = smov 0  }
   0x2   :  { %s4761_s11 = smov 0   ;;  %s4763_s12 = smov 0  }
   0x3   :  { %s4765_s13 = smov 0   ;;  %s4767_s14 = smov 0  }
   0x4 LB: > { %s4167_s15 = sadd.s32 4294967295, %s4735_s14   ;;  %s4168_s16 = sadd.s32 4294967294, %s4735_s14   ;;  %s4735_s14 = sphi %s4767_s14, %s15_s14   ;;  %s4731_s13 = sphi %s4765_s13, %s8439_s13   ;;  %s4727_s12 = sphi %s4763_s12, %s8438_s12   ;;  %s4723_s11 = sphi %s4761_s11, %s8437_s11   ;;  %s4719_s10 = sphi %s4759_s10, %s8436_s10   ;;  %s4715_s9 = sphi %s4757_s9, %s8435_s9  }
   0x5   : > { %s27_s17 = sadd.s32 1, %s4731_s13  ;;  %s88_s18 = sadd.s32 1, %s4723_s11 }
   0x6   : > { %p29_p0 = scmp.ge.s32.totalorder %s27_s17, 2  ;;  %p98_p1 = scmp.ne.s32.totalorder %s4723_s11, %s4719_s10 }
   0x7   : > { %p99_p2 = scmp.eq.s32.totalorder %s4167_s15, 1  ;;  %p104_p3 = scmp.ne.s32.totalorder %s4719_s10, %s4715_s9 }
   0x8   : > { %s8441_s17 = smov (%p29_p0, %s27_s17), 0  ;;  %p105_p5 = scmp.eq.s32.totalorder %s4168_s16, 1 }
   0x9   : > { %p4797_p4 = por %p99_p2, %p98_p1  ;;  %s83_s20 = ssub.s32 %s4731_s13, %s8441_s17 }
   0xa   : > { %p4172_p6 = scmp.ge.s32.totalorder %s4735_s14, 1  ;;  %p86_p7 = scmp.eq.s32.totalorder %s83_s20, 0 }
   0xb   : > { %p4804_p8 = por %p105_p5, %p104_p3  ;;  %p138_p9 = scmp.lt.s32.totalorder %s4735_s14, 3 }
   0xc   : > { %s4810_s22 = scalar_select %p86_p7, %s4723_s11, %s88_s18  }
   0xd   : > { %p139_p10 = pnand %p4172_p6, %p138_p9 }
   0xf   : > { %142 = sbr.rel (%p139_p10) target bundleno = 1353 (0x549), region = 28 }
  0x14   : > { %v4175_v0 = vld [vmem:[%s7656_s1 + $0x10] sm:$0xf]  ;;  %vm337_vm0 = vcmask 1043456   ;;  %p164_p11 = scmp.lt.s32.totalorder %s4727_s12, 1  ;;  %v4256_v2 = vld [vmem:[%s7656_s1 + $0xc] sm:$0xf] }
  0x15   : > { %v339_v1 = vsel %vm337_vm0, %v4175_v0, 0  ;;  %v4291_v3 = vld [vmem:[%s7656_s1 + $0x8] sm:$0xf]  ;;  %v1061_v4 = vsel %vm337_vm0, %v4256_v2, 0  ;;  %v4258_v6 = vld [vmem:[%s7656_s1 + $0x14] sm:$0xf] }
  0x16   : > { %348 = vmatpush.bf16.msra.mxu0 %v339_v1  ;;  %4573 = vmatpush.bf16.msra.mxu1 %v339_v1  ;;  %s165_s29 = scalar_select %p164_p11, %s4727_s12, 1  ;;  %v1155_v5 = vsel %vm337_vm0, %v4291_v3, 0  ;;  %v969_v7 = vsel %vm337_vm0, %v4258_v6, 0  ;;  %v434_v8 = vld [vmem:[%s7656_s1] sm:$0xf]  ;;  %vm288_vm1 = vcmask 64512  }
  0x17   : > { %4574 = vmatpush.bf16.msra.mxu2 %v339_v1  ;;  %4575 = vmatpush.bf16.msra.mxu3 %v339_v1  ;;  %v1247_v9 = vsel %vm337_vm0, %v434_v8, 0  ;;  %v4257_v24 = vld [vmem:[%s7656_s1 + $0x4] sm:$0xf]  ;;  %v4453_v25 = vld [vmem:[%s7656_s1 + $0x18] sm:$0xf]  ;;  %vm2465_vm5 = vcmask 261120  }
  0x18   : > { %s4576_s6 = smul.u32 204, %s165_s29  ;;  %v4356_v26 = vld [vmem:[%s7656_s1 + $0x1c] sm:$0xf]  ;;  %v1594_v27 = vsel %vm337_vm0, %v4257_v24, 0  ;;  %v1688_v28 = vsel %vm337_vm0, %v4453_v25, 0  ;;  %s4737_s28 = smov 32  }
  0x19   : > { %v1502_v29 = vsel %vm337_vm0, %v4356_v26, 0  ;;  %v4518_v30 = vld [vmem:[%s7656_s1 + $0x20] sm:$0xf]  ;;  %vm483_vm2 = vsmask.f32 3328  ;;  %s4738_s29 = smov 64  }
  0x1a   : > { %978 = vmatpush.bf16.msrb.mxu1 %v969_v7  ;;  %1256 = vmatpush.bf16.msrb.mxu0 %v1247_v9  ;;  %s4837_s15 = scalar_lea.vmem %s7655_s0, %s4576_s6  ;;  %v2342_v31 = vsel %vm337_vm0, %v4518_v30, 0  ;;  %vm484_vm3 = vsmask.f32 7440  ;;  %s4739_s30 = smov 96   ;;  %vm3965_vm9 = vcmask 523264   ;;  %vm3998_vm10 = vcmask 785408  }
  0x1b   : > { %1070 = vmatpush.bf16.msrb.mxu2 %v1061_v4  ;;  %1164 = vmatpush.bf16.msrb.mxu3 %v1155_v5  ;;  %v4840_v10 = vld [vmem:[%s4837_s15] sm:$0xff]  ;;  %v4843_v11 = vld [vmem:[%s4837_s15 + $0x30] sm:$0xff]  ;;  %v4880_v18 = vld [vmem:[%s4837_s15 + $0x18] sm:$0xff]  ;;  %s161_s3 = sand.u32 1, %s4719_s10   ;;  %s4572_s6 = sshll.u32 %s4727_s12, 8 }
  0x1c   : > { %v4846_v12 = vld [vmem:[%s4837_s15 + $0x60] sm:$0xff]  ;;  %v4849_v13 = vld [vmem:[%s4837_s15 + $0x90] sm:$0xff]  ;;  %4240 = vmatmul.msk.bf16.vlgmr.msra.gmra.mxu0 %vm288_vm1, %v4840_v10  ;;  %4244 = vmatmul.msk.bf16.vlgmr.msra.gmra.mxu1 %vm288_vm1, %v4843_v11  ;;  %v4883_v19 = vld [vmem:[%s4837_s15 + $0x48] sm:$0xff]  ;;  %s4173_s4 = sshll.u32 %s161_s3, 8  ;;  %s4064_s18 = scalar_lea.sflag [#allocation3], %s161_s3 }
  0x1d   : > { %4248 = vmatmul.msk.bf16.vlgmr.msra.gmra.mxu2 %vm288_vm1, %v4846_v12  ;;  %4252 = vmatmul.msk.bf16.vlgmr.msra.gmra.mxu3 %vm288_vm1, %v4849_v13  ;;  %v4860_v14 = vld [vmem:[%s4837_s15 + $0xc] sm:$0xff]  ;;  %v4863_v15 = vld [vmem:[%s4837_s15 + $0x3c] sm:$0xff]  ;;  %v436_v23 = vld [vmem:[%s4837_s15 + $0x4] sm:$0xf]  ;;  %s7495_s5 = scalar_lea.vmem [#allocation2], %s4173_s4  ;;  %s4677_s26 = scalar_lea.hbm %s7657_s2, 512 }
  0x1e   : > { %v4866_v16 = vld [vmem:[%s4837_s15 + $0x6c] sm:$0xff]  ;;  %v4869_v17 = vld [vmem:[%s4837_s15 + $0x9c] sm:$0xff]  ;;  %v496_v34 = vshll.u32 %v436_v23, 16  ;;  %v500_v35 = vshrl.u32 %v436_v23, 16  ;;  %1511 = vmatpush.bf16.msra.mxu1 %v1502_v29  ;;  %2351 = vmatpush.bf16.msra.mxu0 %v2342_v31  ;;  %v437_v40 = vld [vmem:[%s4837_s15 + $0x8] sm:$0x1] }
  0x1f   : > { %v4886_v20 = vld [vmem:[%s4837_s15 + $0x78] sm:$0xff]  ;;  %v4554_v21 = vld [vmem:[%s4837_s15 + $0xa8] sm:$0xff]  ;;  %v435_v22 = vld [vmem:[%s4837_s15] sm:$0xf]  ;;  %1603 = vmatpush.bf16.msra.mxu2 %v1594_v27  ;;  %1697 = vmatpush.bf16.msra.mxu3 %v1688_v28  ;;  %v506_v45 = vshll.u32 %v437_v40, 16  ;;  %s4077_s16 = sshll.u32 %s7495_s5, 4  ;;  %s4078_s16 = int_to_ptr.vmem [resolvable:$true] %s4077_s16 }
  0x20   : > { %v487_v32 = vshrl.u32 %v435_v22, 16  ;;  %v490_v33 = vshll.u32 %v435_v22, 16  ;;  %v498_v38 = vrot.slane %v496_v34, 5  ;;  %v502_v39 = vrot.slane %v500_v35, 4  ;;  %v4916_v41 = vld [vmem:[%s4837_s15 + $0x24] sm:$0xff]  ;;  %v4919_v42 = vld [vmem:[%s4837_s15 + $0x54] sm:$0xff]  ;;  %vm4932_vm4 = vmor %vm483_vm2, %vm484_vm3 }
  0x21   : > { %v4922_v46 = vld [vmem:[%s4837_s15 + $0x84] sm:$0xff]  ;;  %v4555_v47 = vld [vmem:[%s4837_s15 + $0xb4] sm:$0xff]  ;;  %v508_v50 = vrot.slane %v506_v45, 5  ;;  %v438_v52 = vld [vmem:[%s4837_s15 + $0xc] sm:$0xf] }
  0x22   : > { %v489_v36 = vrot.slane %v487_v32, 4  ;;  %v492_v37 = vrot.slane %v490_v33, 5  ;;  %v503_v44 = vor.u32 %v502_v39, %v498_v38  ;;  %v439_v53 = vld [vmem:[%s4837_s15 + $0x10] sm:$0xf]  ;;  %v511_v56 = vshrl.u32 %v438_v52, 16  ;;  %v4656_v51 = vld [vmem:[%s4837_s15 + $0xb4] sm:$0xff] }
  0x23   : > { %v514_v57 = vshll.u32 %v438_v52, 16  ;;  %v520_v58 = vshll.u32 %v439_v53, 16  ;;  %v524_v59 = vshrl.u32 %v439_v53, 16  ;;  %v440_v2 = vld [vmem:[%s4837_s15 + $0x14] sm:$0x1] }
  0x24   : > { %v493_v43 = vor.u32 %v492_v37, %v489_v36  ;;  %v504_v49 = vrot.slane %v503_v44, 4  ;;  %v513_v62 = vrot.slane %v511_v56, 4  ;;  %v530_v6 = vshll.u32 %v440_v2, 16  ;;  %v441_v7 = vld [vmem:[%s4837_s15 + $0x18] sm:$0xf] }
  0x25   : > { %v516_v63 = vrot.slane %v514_v57, 5  ;;  %v522_v0 = vrot.slane %v520_v58, 5  ;;  %v526_v1 = vrot.slane %v524_v59, 4  ;;  %v442_v8 = vld [vmem:[%s4837_s15 + $0x1c] sm:$0xf]  ;;  %v535_v23 = vshrl.u32 %v441_v7, 16 }
  0x26   : > { %v494_v48 = vrot.slane %v493_v43, 4  ;;  %v509_v55 = vsel %vm4932_vm4, %v504_v49, %v508_v50  ;;  %v532_v22 = vrot.slane %v530_v6, 5  ;;  %v538_v24 = vshll.u32 %v441_v7, 16  ;;  %v443_v34 = vld [vmem:[%s4837_s15 + $0x20] sm:$0x1] }
  0x27   : > { %v873_v61 = vunpack.c.l.b16 %v509_v55  ;;  %v517_v4 = vor.u32 %v516_v63, %v513_v62  ;;  %v527_v5 = vor.u32 %v526_v1, %v522_v0  ;;  %v544_v25 = vshll.u32 %v442_v8, 16  ;;  %v444_v44 = vld [vmem:[%s4837_s15 + $0x24] sm:$0xf]  ;;  %v445_v45 = vld [vmem:[%s4837_s15 + $0x28] sm:$0xf] }
  0x28   : > { %v499_v54 = vsel %vm4932_vm4, %v494_v48, %v498_v38  ;;  %v548_v26 = vshrl.u32 %v442_v8, 16  ;;  %v537_v29 = vrot.slane %v535_v23, 4  ;;  %v540_v30 = vrot.slane %v538_v24, 5  ;;  %v446_v59 = vld [vmem:[%s4837_s15 + $0x2c] sm:$0x1] }
  0x29   : > { %v872_v60 = vunpack.c.l.b16 %v499_v54  ;;  %v518_v9 = vrot.slane %v517_v4, 4  ;;  %v546_v31 = vrot.slane %v544_v25, 5  ;;  %v554_v37 = vshll.u32 %v443_v34, 16  ;;  %v448_v4 = vld [vmem:[%s4837_s15 + $0x34] sm:$0xf] }
  0x2a   : > { %v541_v35 = vor.u32 %v540_v30, %v537_v29  ;;  %v559_v49 = vshrl.u32 %v444_v44, 16  ;;  %v562_v50 = vshll.u32 %v444_v44, 16  ;;  %v568_v52 = vshll.u32 %v445_v45, 16 }
  0x2b   : > { %v904_v3 = vpack.c.b16 %v873_v61, %v872_v60  ;;  %v523_v27 = vsel %vm4932_vm4, %v518_v9, %v522_v0  ;;  %v556_v43 = vrot.slane %v554_v37, 5  ;;  %v572_v53 = vshrl.u32 %v445_v45, 16 }
  0x2c   : > { %4241 = vmatmul.msk.bf16.gmra.mxu0 %vm288_vm1, %v4860_v14  ;;  %4245 = vmatmul.msk.bf16.gmra.mxu1 %vm288_vm1, %v4863_v15  ;;  %v874_v32 = vunpack.c.l.b16 %v523_v27  ;;  %v542_v39 = vrot.slane %v541_v35, 4  ;;  %v561_v56 = vrot.slane %v559_v49, 4  ;;  %v570_v57 = vrot.slane %v568_v52, 5  ;;  %v449_v27 = vld [vmem:[%s4837_s15 + $0x38] sm:$0x1] }
  0x2d   : > { %4249 = vmatmul.msk.bf16.gmra.mxu2 %vm288_vm1, %v4866_v16  ;;  %4253 = vmatmul.msk.bf16.gmra.mxu3 %vm288_vm1, %v4869_v17  ;;  %v574_v58 = vrot.slane %v572_v53, 4  ;;  %v578_v63 = vshll.u32 %v446_v59, 16  ;;  %v592_v9 = vshll.u32 %v448_v4, 16 }
  0x2f   : > { %v575_v62 = vor.u32 %v574_v58, %v570_v57  ;;  %v580_v2 = vrot.slane %v578_v63, 5  ;;  %v594_v25 = vrot.slane %v592_v9, 5 }
  0x31   : > { %v576_v1 = vrot.slane %v575_v62, 4 }
  0x33   : > { %v581_v6 = vsel %vm4932_vm4, %v576_v1, %v580_v2 }
  0x34   : > { %v879_v23 = vunpack.c.l.b16 %v581_v6 }
  0x3c   : > { %4242 = vmatmul.msk.bf16.gmra.mxu0 %vm288_vm1, %v4880_v18  ;;  %4246 = vmatmul.msk.bf16.gmra.mxu1 %vm288_vm1, %v4883_v19 }
  0x3d   : > { %4250 = vmatmul.msk.bf16.gmra.mxu2 %vm288_vm1, %v4886_v20  ;;  %4254 = vmatmul.msk.bf16.gmra.mxu3 %vm288_vm1, %v4554_v21  ;;  %v528_v21 = vrot.slane %v527_v5, 4 }
  0x3f   : > { %v533_v28 = vsel %vm4932_vm4, %v528_v21, %v532_v22  ;;  %v596_v21 = vshrl.u32 %v448_v4, 16 }
  0x40   : > { %v875_v33 = vunpack.c.l.b16 %v533_v28 }
  0x42   : > { %v905_v38 = vpack.c.b16 %v875_v33, %v874_v32  ;;  %v451_v32 = vld [vmem:[%s4837_s15 + $0x40] sm:$0xf] }
  0x4c   : > { %4243 = vmatmul.msk.bf16.gmra.mxu0 %vm288_vm1, %v4916_v41  ;;  %4247 = vmatmul.msk.bf16.gmra.mxu1 %vm288_vm1, %v4919_v42 }
  0x4d   : > { %4251 = vmatmul.msk.bf16.gmra.mxu2 %vm288_vm1, %v4922_v46  ;;  %4255 = vmatmul.msk.bf16.gmra.mxu3 %vm288_vm1, %v4555_v47  ;;  %v547_v47 = vsel %vm4932_vm4, %v542_v39, %v546_v31  ;;  %v620_v39 = vshrl.u32 %v451_v32, 16 }
  0x4e   : > { %v876_v54 = vunpack.c.l.b16 %v547_v47 }
  0x5c   : > { %4259 = vmatmul.msk.bf16.vlgmr.msrb.gmra.mxu1 %vm288_vm1, %v904_v3  ;;  %4308 = vmatmul.msk.bf16.vlgmr.msrb.gmra.mxu0 %vm288_vm1, %v4840_v10 }
  0x5d   : > { %4275 = vmatmul.msk.bf16.vlgmr.msrb.gmra.mxu2 %vm288_vm1, %v4840_v10  ;;  %4292 = vmatmul.msk.bf16.vlgmr.msrb.gmra.mxu3 %vm288_vm1, %v904_v3  ;;  %v550_v10 = vrot.slane %v548_v26, 4  ;;  %v447_v3 = vld [vmem:[%s4837_s15 + $0x30] sm:$0xf]  ;;  %v598_v26 = vrot.slane %v596_v21, 4 }
  0x5e   : > { %v583_v7 = vshrl.u32 %v447_v3, 16  ;;  %v586_v8 = vshll.u32 %v447_v3, 16 }
  0x5f   : > { %v551_v36 = vor.u32 %v550_v10, %v546_v31  ;;  %v599_v30 = vor.u32 %v598_v26, %v594_v25  ;;  %v602_v31 = vshll.u32 %v449_v27, 16  ;;  %v450_v10 = vld [vmem:[%s4837_s15 + $0x3c] sm:$0xf] }
  0x60   : > { %v588_v24 = vrot.slane %v586_v8, 5  ;;  %v610_v37 = vshll.u32 %v450_v10, 16 }
  0x61   : > { %v552_v40 = vrot.slane %v551_v36, 4  ;;  %v600_v34 = vrot.slane %v599_v30, 4  ;;  %v604_v35 = vrot.slane %v602_v31, 5  ;;  %v607_v36 = vshrl.u32 %v450_v10, 16 }
  0x62   : > { %v612_v45 = vrot.slane %v610_v37, 5 }
  0x63   : > { %v557_v48 = vsel %vm4932_vm4, %v552_v40, %v556_v43  ;;  %v605_v43 = vsel %vm4932_vm4, %v600_v34, %v604_v35  ;;  %v609_v44 = vrot.slane %v607_v36, 4  ;;  %v456_v34 = vld [vmem:[%s4837_s15 + $0x54] sm:$0xf]  ;;  %v457_v35 = vld [vmem:[%s4837_s15 + $0x58] sm:$0xf] }
  0x64   : > { %v877_v55 = vunpack.c.l.b16 %v557_v48  ;;  %v881_v49 = vunpack.c.l.b16 %v605_v43 }
  0x65   : > { %v613_v52 = vor.u32 %v612_v45, %v609_v44  ;;  %v658_v44 = vshll.u32 %v456_v34, 16  ;;  %v664_v45 = vshll.u32 %v457_v35, 16 }
  0x66   : > { %v906_v60 = vpack.c.b16 %v877_v55, %v876_v54 }
  0x6c   : > { %4260 = vmatmul.msk.bf16.gmra.mxu1 %vm288_vm1, %v905_v38  ;;  %4309 = vmatmul.msk.bf16.gmra.mxu0 %vm288_vm1, %v4860_v14 }
  0x6d   : > { %4276 = vmatmul.msk.bf16.gmra.mxu2 %vm288_vm1, %v4860_v14  ;;  %4293 = vmatmul.msk.bf16.gmra.mxu3 %vm288_vm1, %v905_v38  ;;  %v564_v14 = vrot.slane %v562_v50, 5  ;;  %v616_v38 = vshll.u32 %v451_v32, 16  ;;  %v452_v50 = vld [vmem:[%s4837_s15 + $0x44] sm:$0x1] }
  0x6e   : > { %v626_v54 = vshll.u32 %v452_v50, 16  ;;  %v660_v50 = vrot.slane %v658_v44, 5 }
  0x6f   : > { %v565_v61 = vor.u32 %v564_v14, %v561_v56  ;;  %v618_v47 = vrot.slane %v616_v38, 5 }
  0x70   : > { %v628_v59 = vrot.slane %v626_v54, 5  ;;  %v458_v54 = vld [vmem:[%s4837_s15 + $0x5c] sm:$0x1] }
  0x71   : > { %v566_v0 = vrot.slane %v565_v61, 4  ;;  %v454_v61 = vld [vmem:[%s4837_s15 + $0x4c] sm:$0xf] }
  0x72   : > { %v640_v4 = vshll.u32 %v454_v61, 16 }
  0x73   : > { %v571_v5 = vsel %vm4932_vm4, %v566_v0, %v570_v57  ;;  %v614_v57 = vrot.slane %v613_v52, 4  ;;  %v666_v52 = vrot.slane %v664_v45, 5 }
  0x74   : > { %v878_v22 = vunpack.c.l.b16 %v571_v5  ;;  %v644_v5 = vshrl.u32 %v454_v61, 16 }
  0x75   : > { %v619_v62 = vsel %vm4932_vm4, %v614_v57, %v618_v47 }
  0x76   : > { %v907_v28 = vpack.c.b16 %v879_v23, %v878_v22  ;;  %v642_v22 = vrot.slane %v640_v4, 5  ;;  %v646_v23 = vrot.slane %v644_v5, 4 }
  0x7c   : > { %4261 = vmatmul.msk.bf16.gmra.mxu1 %vm288_vm1, %v906_v60  ;;  %4310 = vmatmul.msk.bf16.gmra.mxu0 %vm288_vm1, %v4880_v18 }
  0x7d   : > { %4277 = vmatmul.msk.bf16.gmra.mxu2 %vm288_vm1, %v4880_v18  ;;  %4294 = vmatmul.msk.bf16.gmra.mxu3 %vm288_vm1, %v906_v60  ;;  %v585_v18 = vrot.slane %v583_v7, 4  ;;  %v453_v60 = vld [vmem:[%s4837_s15 + $0x48] sm:$0xf]  ;;  %v882_v7 = vunpack.c.l.b16 %v619_v62 }
  0x7e   : > { %v631_v2 = vshrl.u32 %v453_v60, 16  ;;  %v634_v3 = vshll.u32 %v453_v60, 16 }
  0x7f   : > { %v589_v29 = vor.u32 %v588_v24, %v585_v18  ;;  %v455_v18 = vld [vmem:[%s4837_s15 + $0x50] sm:$0x1] }
  0x80   : > { %v633_v9 = vrot.slane %v631_v2, 4  ;;  %v636_v21 = vrot.slane %v634_v3, 5  ;;  %v459_v2 = vld [vmem:[%s4837_s15 + $0x60] sm:$0xf]  ;;  %v460_v3 = vld [vmem:[%s4837_s15 + $0x64] sm:$0xf] }
  0x81   : > { %v590_v33 = vrot.slane %v589_v29, 4  ;;  %v650_v29 = vshll.u32 %v455_v18, 16 }
  0x82   : > { %v637_v27 = vor.u32 %v636_v21, %v633_v9  ;;  %v682_v9 = vshll.u32 %v459_v2, 16  ;;  %v688_v21 = vshll.u32 %v460_v3, 16 }
  0x83   : > { %v595_v40 = vsel %vm4932_vm4, %v590_v33, %v594_v25  ;;  %v652_v33 = vrot.slane %v650_v29, 5 }
  0x84   : > { %v880_v48 = vunpack.c.l.b16 %v595_v40  ;;  %v638_v10 = vrot.slane %v637_v27, 4 }
  0x86   : > { %v908_v55 = vpack.c.b16 %v881_v49, %v880_v48  ;;  %v643_v38 = vsel %vm4932_vm4, %v638_v10, %v642_v22  ;;  %v684_v10 = vrot.slane %v682_v9, 5 }
  0x8c   : > { %4262 = vmatmul.msk.bf16.gmra.mxu1 %vm288_vm1, %v907_v28  ;;  %4311 = vmatmul.msk.bf16.gmra.mxu0 %vm288_vm1, %v4916_v41 }
  0x8d   : > { %4278 = vmatmul.msk.bf16.gmra.mxu2 %vm288_vm1, %v4916_v41  ;;  %4295 = vmatmul.msk.bf16.gmra.mxu3 %vm288_vm1, %v907_v28  ;;  %v622_v41 = vrot.slane %v620_v39, 4  ;;  %v647_v28 = vor.u32 %v646_v23, %v642_v22  ;;  %v692_v22 = vshrl.u32 %v460_v3, 16 }
  0x8f   : > { %v623_v53 = vor.u32 %v622_v41, %v618_v47  ;;  %v648_v32 = vrot.slane %v647_v28, 4  ;;  %v668_v47 = vshrl.u32 %v457_v35, 16  ;;  %v884_v41 = vunpack.c.l.b16 %v643_v38  ;;  %v461_v38 = vld [vmem:[%s4837_s15 + $0x68] sm:$0x1] }
  0x90   : > { %v698_v44 = vshll.u32 %v461_v38, 16 }
  0x91   : > { %v624_v58 = vrot.slane %v623_v53, 4  ;;  %v653_v39 = vsel %vm4932_vm4, %v648_v32, %v652_v33  ;;  %v670_v53 = vrot.slane %v668_v47, 4  ;;  %v690_v32 = vrot.slane %v688_v21, 5 }
  0x92   : > { %v885_v48 = vunpack.c.l.b16 %v653_v39  ;;  %v694_v33 = vrot.slane %v692_v22, 4 }
  0x93   : > { %v629_v63 = vsel %vm4932_vm4, %v624_v58, %v628_v59  ;;  %v671_v62 = vor.u32 %v670_v53, %v666_v52  ;;  %v700_v53 = vrot.slane %v698_v44, 5 }
  0x94   : > { %v883_v8 = vunpack.c.l.b16 %v629_v63  ;;  %v910_v58 = vpack.c.b16 %v885_v48, %v884_v41  ;;  %v674_v63 = vshll.u32 %v458_v54, 16  ;;  %v462_v54 = vld [vmem:[%s4837_s15 + $0x6c] sm:$0xf] }
  0x95   : > { %v672_v5 = vrot.slane %v671_v62, 4  ;;  %v703_v3 = vshrl.u32 %v462_v54, 16 }
  0x96   : > { %v909_v26 = vpack.c.b16 %v883_v8, %v882_v7  ;;  %v676_v7 = vrot.slane %v674_v63, 5  ;;  %v679_v8 = vshrl.u32 %v459_v2, 16 }
  0x97   : > { %v705_v22 = vrot.slane %v703_v3, 4 }
  0x98   : > { %v677_v28 = vsel %vm4932_vm4, %v672_v5, %v676_v7  ;;  %v681_v29 = vrot.slane %v679_v8, 4 }
  0x99   : > { %v4995_v56 = vpop.f32.mrf.mxu0  ;;  %v4997_v14 = vpop.f32.mrf.mxu1  ;;  %v887_v35 = vunpack.c.l.b16 %v677_v28 }
  0x9a   : > { %7887 = vst [vmem:[#allocation5_spill] sm:$0xff] %v4995_v56  ;;  %v685_v39 = vor.u32 %v684_v10, %v681_v29  ;;  %v464_v10 = vld [vmem:[%s4837_s15 + $0x74] sm:$0x1] }
  0x9b   : > { %7888 = vst [vmem:[#allocation6_spill] sm:$0xff] %v4997_v14 }
  0x9c   : > { %4263 = vmatmul.msk.bf16.gmra.mxu1 %vm288_vm1, %v908_v55  ;;  %4312 = vmatmul.msk.bf16.gmra.mxu0 %vm288_vm1, %v4843_v11 }
  0x9d   : > { %4279 = vmatmul.msk.bf16.gmra.mxu2 %vm288_vm1, %v4843_v11  ;;  %4296 = vmatmul.msk.bf16.gmra.mxu3 %vm288_vm1, %v908_v55 }
  0xa0   : > { %v5011_v0 = vpop.f32.mrf.mxu2  ;;  %v5013_v1 = vpop.f32.mrf.mxu3 }
  0xa1   : > { %7889 = vst [vmem:[#allocation7_spill] sm:$0xff] %v5011_v0  ;;  %v5015_v11 = vpop.f32.mrf.mxu0  ;;  %v5017_v6 = vpop.f32.mrf.mxu1 }
  0xa2   : > { %7890 = vst [vmem:[#allocation8_spill] sm:$0xff] %v5013_v1  ;;  %v476_v1 = vld [vmem:[%s4837_s15 + $0xa4] sm:$0x1] }
  0xa3   : > { %7891 = vst [vmem:[#allocation9_spill] sm:$0xff] %v5015_v11 }
  0xa4   : > { %7892 = vst [vmem:[#allocation10_spill] sm:$0xff] %v5017_v6 }
  0xa8   : > { %v5020_v24 = vpop.f32.mrf.mxu2  ;;  %v5022_v25 = vpop.f32.mrf.mxu3 }
  0xa9   : > { %7893 = vst [vmem:[#allocation11_spill] sm:$0xff] %v5020_v24  ;;  %v5024_v30 = vpop.f32.mrf.mxu0  ;;  %v5026_v31 = vpop.f32.mrf.mxu1  ;;  %v4559_v24 = vld [vmem:[%s4837_s15 + $0x30] sm:$0xff] }
  0xaa   : > { %7894 = vst [vmem:[#allocation12_spill] sm:$0xff] %v5022_v25 }
  0xab   : > { %7895 = vst [vmem:[#allocation13_spill] sm:$0xff] %v5024_v30 }
  0xac   : > { %7896 = vst [vmem:[#allocation14_spill] sm:$0xff] %v5026_v31  ;;  %4264 = vmatmul.msk.bf16.gmra.mxu1 %vm288_vm1, %v909_v26  ;;  %4313 = vmatmul.msk.bf16.gmra.mxu0 %vm288_vm1, %v4863_v15 }
  0xad   : > { %4280 = vmatmul.msk.bf16.gmra.mxu2 %vm288_vm1, %v4863_v15  ;;  %4297 = vmatmul.msk.bf16.gmra.mxu3 %vm288_vm1, %v909_v26  ;;  %v655_v15 = vshrl.u32 %v456_v34, 16 }
  0xaf   : > { %v657_v49 = vrot.slane %v655_v15, 4  ;;  %v695_v15 = vor.u32 %v694_v33, %v690_v32 }
  0xb0   : > { %v5036_v36 = vpop.f32.mrf.mxu2  ;;  %v5038_v37 = vpop.f32.mrf.mxu3 }
  0xb1   : > { %7897 = vst [vmem:[#allocation15_spill] sm:$0xff] %v5036_v36  ;;  %v5044_v40 = vpop.f32.mrf.mxu0  ;;  %v5046_v43 = vpop.f32.mrf.mxu1  ;;  %v661_v61 = vor.u32 %v660_v50, %v657_v49  ;;  %v686_v50 = vrot.slane %v685_v39, 4  ;;  %v722_v39 = vshll.u32 %v464_v10, 16 }
  0xb2   : > { %7898 = vst [vmem:[#allocation16_spill] sm:$0xff] %v5038_v37 }
  0xb3   : > { %7899 = vst [vmem:[#allocation17_spill] sm:$0xff] %v5044_v40  ;;  %v662_v4 = vrot.slane %v661_v61, 4  ;;  %v691_v61 = vsel %vm4932_vm4, %v686_v50, %v690_v32 }
  0xb4   : > { %7900 = vst [vmem:[#allocation18_spill] sm:$0xff] %v5046_v43  ;;  %v888_v9 = vunpack.c.l.b16 %v691_v61 }
  0xb8   : > { %v5049_v55 = vpop.f32.mrf.mxu2  ;;  %v5051_v57 = vpop.f32.mrf.mxu3 }
  0xb9   : > { %7901 = vst [vmem:[#allocation19_spill] sm:$0xff] %v5049_v55  ;;  %v5053_v59 = vpop.f32.mrf.mxu0  ;;  %v5055_v60 = vpop.f32.mrf.mxu1  ;;  %v4475_v55 = vld [vmem:[%s4837_s15 + $0x20] sm:$0x1] }
  0xba   : > { %7902 = vst [vmem:[#allocation20_spill] sm:$0xff] %v5051_v57 }
  0xbb   : > { %7903 = vst [vmem:[#allocation21_spill] sm:$0xff] %v5053_v59 }
  0xbc   : > { %7904 = vst [vmem:[#allocation22_spill] sm:$0xff] %v5055_v60  ;;  %4265 = vmatmul.msk.bf16.gmra.mxu1 %vm288_vm1, %v910_v58  ;;  %4314 = vmatmul.msk.bf16.gmra.mxu0 %vm288_vm1, %v4883_v19 }
  0xbd   : > { %4281 = vmatmul.msk.bf16.gmra.mxu2 %vm288_vm1, %v4883_v19  ;;  %4298 = vmatmul.msk.bf16.gmra.mxu3 %vm288_vm1, %v910_v58  ;;  %v667_v19 = vsel %vm4932_vm4, %v662_v4, %v666_v52  ;;  %v696_v52 = vrot.slane %v695_v15, 4  ;;  %v463_v58 = vld [vmem:[%s4837_s15 + $0x70] sm:$0xf]  ;;  %v706_v4 = vshll.u32 %v462_v54, 16  ;;  %v466_v54 = vld [vmem:[%s4837_s15 + $0x7c] sm:$0xf] }
  0xbe   : > { %v886_v34 = vunpack.c.l.b16 %v667_v19  ;;  %v712_v5 = vshll.u32 %v463_v58, 16  ;;  %v716_v7 = vshrl.u32 %v463_v58, 16 }
  0xbf   : > { %v701_v62 = vsel %vm4932_vm4, %v696_v52, %v700_v53  ;;  %v708_v19 = vrot.slane %v706_v4, 5  ;;  %v724_v52 = vrot.slane %v722_v39, 5  ;;  %v465_v53 = vld [vmem:[%s4837_s15 + $0x78] sm:$0xf]  ;;  %v467_v39 = vld [vmem:[%s4837_s15 + $0x80] sm:$0x1] }
  0xc0   : > { %v5065_v23 = vpop.f32.mrf.mxu2  ;;  %v5067_v18 = vpop.f32.mrf.mxu3  ;;  %v911_v41 = vpack.c.b16 %v887_v35, %v886_v34  ;;  %v889_v21 = vunpack.c.l.b16 %v701_v62  ;;  %v714_v28 = vrot.slane %v712_v5, 5  ;;  %v718_v29 = vrot.slane %v716_v7, 4 }
  0xc1   : > { %7905 = vst [vmem:[#allocation23_spill] sm:$0xff] %v5065_v23  ;;  %v5069_v26 = vpop.f32.mrf.mxu0  ;;  %v5071_v27 = vpop.f32.mrf.mxu1  ;;  %v709_v35 = vor.u32 %v708_v19, %v705_v22  ;;  %v727_v4 = vshrl.u32 %v465_v53, 16  ;;  %v730_v5 = vshll.u32 %v465_v53, 16  ;;  %v736_v22 = vshll.u32 %v466_v54, 16 }
  0xc2   : > { %7906 = vst [vmem:[#allocation24_spill] sm:$0xff] %v5067_v18  ;;  %v912_v34 = vpack.c.b16 %v889_v21, %v888_v9  ;;  %v719_v38 = vor.u32 %v718_v29, %v714_v28  ;;  %v740_v19 = vshrl.u32 %v466_v54, 16 }
  0xc3   : > { %7907 = vst [vmem:[#allocation25_spill] sm:$0xff] %v5069_v26 }
  0xc4   : > { %7908 = vst [vmem:[#allocation26_spill] sm:$0xff] %v5071_v27  ;;  %v720_v50 = vrot.slane %v719_v38, 4  ;;  %v742_v38 = vrot.slane %v740_v19, 4 }
  0xc6   : > { %v725_v3 = vsel %vm4932_vm4, %v720_v50, %v724_v52 }
  0xc7   : > { %v891_v10 = vunpack.c.l.b16 %v725_v3  ;;  %v468_v3 = vld [vmem:[%s4837_s15 + $0x84] sm:$0xf] }
  0xc8   : > { %v5078_v45 = vpop.f32.mrf.mxu2  ;;  %v5080_v47 = vpop.f32.mrf.mxu3  ;;  %v754_v19 = vshll.u32 %v468_v3, 16 }
  0xc9   : > { %7909 = vst [vmem:[#allocation27_spill] sm:$0xff] %v5078_v45  ;;  %v5082_v48 = vpop.f32.mrf.mxu0  ;;  %v5084_v49 = vpop.f32.mrf.mxu1  ;;  %v479_v45 = vld [vmem:[%s4837_s15 + $0xb0] sm:$0x1] }
  0xca   : > { %7910 = vst [vmem:[#allocation28_spill] sm:$0xff] %v5080_v47 }
  0xcb   : > { %7911 = vst [vmem:[#allocation29_spill] sm:$0xff] %v5082_v48 }
  0xcc   : > { %7912 = vst [vmem:[#allocation30_spill] sm:$0xff] %v5084_v49  ;;  %4266 = vmatmul.msk.bf16.gmra.mxu1 %vm288_vm1, %v911_v41  ;;  %4315 = vmatmul.msk.bf16.gmra.mxu0 %vm288_vm1, %v4919_v42 }
  0xcd   : > { %4282 = vmatmul.msk.bf16.gmra.mxu2 %vm288_vm1, %v4919_v42  ;;  %4299 = vmatmul.msk.bf16.gmra.mxu3 %vm288_vm1, %v911_v41  ;;  %v710_v41 = vrot.slane %v709_v35, 4  ;;  %v732_v35 = vrot.slane %v730_v5, 5 }
  0xcf   : > { %v715_v62 = vsel %vm4932_vm4, %v710_v41, %v714_v28  ;;  %v738_v28 = vrot.slane %v736_v22, 5  ;;  %v751_v22 = vshrl.u32 %v468_v3, 16 }
  0xd0   : > { %v5098_v63 = vpop.f32.mrf.mxu2  ;;  %v5100_v2 = vpop.f32.mrf.mxu3  ;;  %v890_v29 = vunpack.c.l.b16 %v715_v62  ;;  %v746_v62 = vshll.u32 %v467_v39, 16 }
  0xd1   : > { %7913 = vst [vmem:[#allocation31_spill] sm:$0xff] %v5098_v63  ;;  %v5102_v42 = vpop.f32.mrf.mxu0  ;;  %v5104_v8 = vpop.f32.mrf.mxu1  ;;  %v743_v54 = vor.u32 %v742_v38, %v738_v28 }
  0xd2   : > { %7914 = vst [vmem:[#allocation32_spill] sm:$0xff] %v5100_v2  ;;  %v913_v52 = vpack.c.b16 %v891_v10, %v890_v29  ;;  %v470_v2 = vld [vmem:[%s4837_s15 + $0x8c] sm:$0x1] }
  0xd3   : > { %7915 = vst [vmem:[#allocation33_spill] sm:$0xff] %v5102_v42 }
  0xd4   : > { %7916 = vst [vmem:[#allocation34_spill] sm:$0xff] %v5104_v8 }
  0xd8   : > { %v5107_v32 = vpop.f32.mrf.mxu2  ;;  %v5109_v33 = vpop.f32.mrf.mxu3 }
  0xd9   : > { %7917 = vst [vmem:[#allocation35_spill] sm:$0xff] %v5107_v32  ;;  %v980_v15 = vpop.f32.mrf.mxu1  ;;  %v1258_v44 = vpop.f32.mrf.mxu0 }
  0xda   : > { %7918 = vst [vmem:[#allocation36_spill] sm:$0xff] %v5109_v33 }
  0xdc   : > { %4267 = vmatmul.msk.bf16.gmra.mxu1 %vm288_vm1, %v912_v34  ;;  %4316 = vmatmul.msk.bf16.gmra.mxu0 %vm288_vm1, %v4846_v12 }
  0xdd   : > { %4283 = vmatmul.msk.bf16.gmra.mxu2 %vm288_vm1, %v4846_v12  ;;  %4300 = vmatmul.msk.bf16.gmra.mxu3 %vm288_vm1, %v912_v34  ;;  %v729_v34 = vrot.slane %v727_v4, 4  ;;  %v469_v4 = vld [vmem:[%s4837_s15 + $0x88] sm:$0xf] }
  0xde   : > { %v760_v29 = vshll.u32 %v469_v4, 16  ;;  %v764_v10 = vshrl.u32 %v469_v4, 16 }
  0xe0   : > { %v1072_v58 = vpop.f32.mrf.mxu2  ;;  %v1166_v61 = vpop.f32.mrf.mxu3  ;;  %v766_v3 = vrot.slane %v764_v10, 4 }
  0xe1   : > { %v5123_v7 = vadd.f32 %v1072_v58, %v980_v15  ;;  %v5125_v9 = vadd.f32 %v1258_v44, %v1166_v61  ;;  %v982_v12 = vpop.f32.mrf.mxu1  ;;  %v1260_v21 = vpop.f32.mrf.mxu0  ;;  %v733_v15 = vor.u32 %v732_v35, %v729_v34 }
  0xe3   : > { %7919 = vst [vmem:[#allocation37_spill] sm:$0xff] %v5123_v7  ;;  %v734_v5 = vrot.slane %v733_v15, 4  ;;  %v753_v15 = vrot.slane %v751_v22, 4 }
  0xe8   : > { %v1074_v41 = vpop.f32.mrf.mxu2  ;;  %v1168_v50 = vpop.f32.mrf.mxu3 }
  0xe9   : > { %v5128_v53 = vadd.f32 %v1074_v41, %v982_v12  ;;  %v5130_v44 = vadd.f32 %v1260_v21, %v1168_v50  ;;  %v985_v58 = vpop.f32.mrf.mxu1  ;;  %v1263_v61 = vpop.f32.mrf.mxu0  ;;  %v744_v12 = vrot.slane %v743_v54, 4  ;;  %v748_v21 = vrot.slane %v746_v62, 5 }
  0xea   : > { %v756_v54 = vrot.slane %v754_v19, 5  ;;  %v762_v62 = vrot.slane %v760_v29, 5 }
  0xeb   : > { %7920 = vst [vmem:[#allocation38_spill] sm:$0xff] %v5128_v53  ;;  %v4484_v53 = vld [vmem:[%s4837_s15 + $0x44] sm:$0x1] }
  0xec   : > { %4268 = vmatmul.msk.bf16.gmra.mxu1 %vm288_vm1, %v913_v52  ;;  %4317 = vmatmul.msk.bf16.gmra.mxu0 %vm288_vm1, %v4866_v16  ;;  %v757_v47 = vor.u32 %v756_v54, %v753_v15 }
  0xed   : > { %4284 = vmatmul.msk.bf16.gmra.mxu2 %vm288_vm1, %v4866_v16  ;;  %4301 = vmatmul.msk.bf16.gmra.mxu3 %vm288_vm1, %v913_v52  ;;  %v739_v16 = vsel %vm4932_vm4, %v734_v5, %v738_v28  ;;  %v749_v52 = vsel %vm4932_vm4, %v744_v12, %v748_v21 }
  0xee   : > { %v892_v33 = vunpack.c.l.b16 %v739_v16  ;;  %v893_v4 = vunpack.c.l.b16 %v749_v52  ;;  %v758_v21 = vrot.slane %v757_v47, 4 }
  0xf0   : > { %v1077_v34 = vpop.f32.mrf.mxu2  ;;  %v1171_v35 = vpop.f32.mrf.mxu3  ;;  %v914_v18 = vpack.c.b16 %v893_v4, %v892_v33  ;;  %v472_v33 = vld [vmem:[%s4837_s15 + $0x94] sm:$0xf]  ;;  %v763_v29 = vsel %vm4932_vm4, %v758_v21, %v762_v62  ;;  %v473_v21 = vld [vmem:[%s4837_s15 + $0x98] sm:$0x1] }
  0xf1   : > { %v5140_v38 = vadd.f32 %v1077_v34, %v985_v58  ;;  %v5142_v39 = vadd.f32 %v1263_v61, %v1171_v35  ;;  %v987_v41 = vpop.f32.mrf.mxu1  ;;  %v1265_v50 = vpop.f32.mrf.mxu0  ;;  %v767_v58 = vor.u32 %v766_v3, %v762_v62  ;;  %v770_v61 = vshll.u32 %v470_v2, 16  ;;  %v471_v2 = vld [vmem:[%s4837_s15 + $0x90] sm:$0xf] }
  0xf2   : > { %v778_v16 = vshll.u32 %v471_v2, 16  ;;  %v784_v52 = vshll.u32 %v472_v33, 16  ;;  %v788_v15 = vshrl.u32 %v472_v33, 16  ;;  %v894_v4 = vunpack.c.l.b16 %v763_v29 }
  0xf3   : > { %7921 = vst [vmem:[#allocation39_spill] sm:$0xff] %v5140_v38  ;;  %v768_v22 = vrot.slane %v767_v58, 4  ;;  %v772_v19 = vrot.slane %v770_v61, 5 }
  0xf4   : > { %v780_v62 = vrot.slane %v778_v16, 5 }
  0xf5   : > { %v773_v47 = vsel %vm4932_vm4, %v768_v22, %v772_v19 }
  0xf6   : > { %v895_v58 = vunpack.c.l.b16 %v773_v47 }
  0xf8   : > { %v1079_v34 = vpop.f32.mrf.mxu2  ;;  %v1173_v35 = vpop.f32.mrf.mxu3  ;;  %v915_v37 = vpack.c.b16 %v895_v58, %v894_v4 }
  0xf9   : > { %v5149_v57 = vadd.f32 %v1079_v34, %v987_v41  ;;  %v5151_v28 = vadd.f32 %v1265_v50, %v1173_v35  ;;  %v990_v5 = vpop.f32.mrf.mxu1  ;;  %v1268_v12 = vpop.f32.mrf.mxu0  ;;  %v775_v50 = vshrl.u32 %v471_v2, 16  ;;  %v786_v34 = vrot.slane %v784_v52, 5  ;;  %v474_v52 = vld [vmem:[%s4837_s15 + $0x9c] sm:$0xf] }
  0xfa   : > { %v790_v35 = vrot.slane %v788_v15, 4  ;;  %v475_v15 = vld [vmem:[%s4837_s15 + $0xa0] sm:$0xf] }
  0xfb   : > { %7922 = vst [vmem:[#allocation40_spill] sm:$0xff] %v5149_v57  ;;  %v777_v61 = vrot.slane %v775_v50, 4 }
  0xfc   : > { %4269 = vmatmul.msk.bf16.gmra.mxu1 %vm288_vm1, %v914_v18  ;;  %4318 = vmatmul.msk.bf16.gmra.mxu0 %vm288_vm1, %v4886_v20  ;;  %v791_v33 = vor.u32 %v790_v35, %v786_v34 }
  0xfd   : > { %4285 = vmatmul.msk.bf16.gmra.mxu2 %vm288_vm1, %v4886_v20  ;;  %4302 = vmatmul.msk.bf16.gmra.mxu3 %vm288_vm1, %v914_v18  ;;  %v781_v2 = vor.u32 %v780_v62, %v777_v61  ;;  %v799_v61 = vshrl.u32 %v474_v52, 16  ;;  %v802_v62 = vshll.u32 %v474_v52, 16 }
  0xfe   : > { %v792_v50 = vrot.slane %v791_v33, 4 }
  0xff   : > { %v782_v47 = vrot.slane %v781_v2, 4  ;;  %v804_v25 = vrot.slane %v802_v62, 5 }
 0x100   : > { %v1082_v10 = vpop.f32.mrf.mxu2  ;;  %v1176_v41 = vpop.f32.mrf.mxu3 }
 0x101   : > { %v5165_v54 = vadd.f32 %v1082_v10, %v990_v5  ;;  %v5167_v20 = vadd.f32 %v1268_v12, %v1176_v41  ;;  %v992_v18 = vpop.f32.mrf.mxu1  ;;  %v1270_v3 = vpop.f32.mrf.mxu0  ;;  %v794_v5 = vshll.u32 %v473_v21, 16  ;;  %v787_v4 = vsel %vm4932_vm4, %v782_v47, %v786_v34 }
 0x102   : > { %v896_v2 = vunpack.c.l.b16 %v787_v4  ;;  %v818_v4 = vshll.u32 %v476_v1, 16 }
 0x103   : > { %7923 = vst [vmem:[#allocation41_spill] sm:$0xff] %v5165_v54  ;;  %v796_v16 = vrot.slane %v794_v5, 5  ;;  %v801_v5 = vrot.slane %v799_v61, 4  ;;  %v478_v61 = vld [vmem:[%s4837_s15 + $0xac] sm:$0xf] }
 0x104   : > { %v836_v1 = vshrl.u32 %v478_v61, 16  ;;  %v4556_v54 = vld [vmem:[%s4837_s15 + $0xc] sm:$0xff] }
 0x105   : > { %v797_v58 = vsel %vm4932_vm4, %v792_v50, %v796_v16 }
 0x106   : > { %v897_v33 = vunpack.c.l.b16 %v797_v58  ;;  %v477_v58 = vld [vmem:[%s4837_s15 + $0xa8] sm:$0xf] }
 0x108   : > { %v1084_v22 = vpop.f32.mrf.mxu2  ;;  %v1178_v19 = vpop.f32.mrf.mxu3  ;;  %v916_v52 = vpack.c.b16 %v897_v33, %v896_v2 }
 0x109   : > { %v5170_v10 = vadd.f32 %v1084_v22, %v992_v18  ;;  %v5172_v12 = vadd.f32 %v1270_v3, %v1178_v19  ;;  %v995_v41 = vpop.f32.mrf.mxu1  ;;  %v1273_v29 = vpop.f32.mrf.mxu0  ;;  %v812_v19 = vshrl.u32 %v475_v15, 16 }
 0x10b   : > { %7924 = vst [vmem:[#allocation42_spill] sm:$0xff] %v5170_v10  ;;  %v814_v47 = vrot.slane %v812_v19, 4  ;;  %v832_v19 = vshll.u32 %v478_v61, 16 }
 0x10c   : > { %4270 = vmatmul.msk.bf16.gmra.mxu1 %vm288_vm1, %v915_v37  ;;  %4319 = vmatmul.msk.bf16.gmra.mxu0 %vm288_vm1, %v4922_v46 }
 0x10d   : > { %4286 = vmatmul.msk.bf16.gmra.mxu2 %vm288_vm1, %v4922_v46  ;;  %4303 = vmatmul.msk.bf16.gmra.mxu3 %vm288_vm1, %v915_v37  ;;  %v808_v37 = vshll.u32 %v475_v15, 16 }
 0x10f   : > { %v810_v34 = vrot.slane %v808_v37, 5  ;;  %v826_v37 = vshll.u32 %v477_v58, 16 }
 0x110   : > { %v1087_v18 = vpop.f32.mrf.mxu2  ;;  %v1181_v3 = vpop.f32.mrf.mxu3 }
 0x111   : > { %v5186_v35 = vadd.f32 %v1087_v18, %v995_v41  ;;  %v5188_v21 = vadd.f32 %v1273_v29, %v1181_v3  ;;  %v997_v46 = vpop.f32.mrf.mxu1  ;;  %v1275_v22 = vpop.f32.mrf.mxu0  ;;  %v805_v41 = vor.u32 %v804_v25, %v801_v5  ;;  %v815_v15 = vor.u32 %v814_v47, %v810_v34 }
 0x113   : > { %7925 = vst [vmem:[#allocation43_spill] sm:$0xff] %v5186_v35  ;;  %v806_v25 = vrot.slane %v805_v41, 4  ;;  %v816_v62 = vrot.slane %v815_v15, 4  ;;  %v828_v15 = vrot.slane %v826_v37, 5 }
 0x118   : > { %v1089_v50 = vpop.f32.mrf.mxu2  ;;  %v1183_v16 = vpop.f32.mrf.mxu3 }
 0x119   : > { %v5191_v18 = vadd.f32 %v1089_v50, %v997_v46  ;;  %v5193_v29 = vadd.f32 %v1275_v22, %v1183_v16  ;;  %v1000_v3 = vpop.f32.mrf.mxu1  ;;  %v1278_v32 = vpop.f32.mrf.mxu0  ;;  %v820_v46 = vrot.slane %v818_v4, 5  ;;  %v823_v22 = vshrl.u32 %v477_v58, 16 }
 0x11a   : > { %v834_v4 = vrot.slane %v832_v19, 5  ;;  %v838_v58 = vrot.slane %v836_v1, 4 }
 0x11b   : > { %7926 = vst [vmem:[#allocation44_spill] sm:$0xff] %v5191_v18  ;;  %v825_v41 = vrot.slane %v823_v22, 4 }
 0x11c   : > { %4271 = vmatmul.msk.bf16.gmra.mxu1 %vm288_vm1, %v916_v52  ;;  %4320 = vmatmul.msk.bf16.gmra.mxu0 %vm288_vm1, %v4849_v13 }
 0x11d   : > { %4287 = vmatmul.msk.bf16.gmra.mxu2 %vm288_vm1, %v4849_v13  ;;  %4304 = vmatmul.msk.bf16.gmra.mxu3 %vm288_vm1, %v916_v52  ;;  %v811_v13 = vsel %vm4932_vm4, %v806_v25, %v810_v34  ;;  %v821_v52 = vsel %vm4932_vm4, %v816_v62, %v820_v46  ;;  %v829_v18 = vor.u32 %v828_v15, %v825_v41 }
 0x11e   : > { %v898_v63 = vunpack.c.l.b16 %v811_v13  ;;  %v899_v61 = vunpack.c.l.b16 %v821_v52 }
 0x11f   : > { %v830_v46 = vrot.slane %v829_v18, 4 }
 0x120   : > { %v1092_v2 = vpop.f32.mrf.mxu2  ;;  %v1186_v33 = vpop.f32.mrf.mxu3 }
 0x121   : > { %v5203_v5 = vadd.f32 %v1092_v2, %v1000_v3  ;;  %v5205_v47 = vadd.f32 %v1278_v32, %v1186_v33  ;;  %v1002_v50 = vpop.f32.mrf.mxu1  ;;  %v1280_v16 = vpop.f32.mrf.mxu0  ;;  %v839_v3 = vor.u32 %v838_v58, %v834_v4  ;;  %v842_v32 = vshll.u32 %v479_v45, 16  ;;  %v480_v45 = vld [vmem:[%s4837_s15 + $0xb4] sm:$0xf] }
 0x122   : > { %v835_v19 = vsel %vm4932_vm4, %v830_v46, %v834_v4  ;;  %v850_v13 = vshll.u32 %v480_v45, 16  ;;  %v482_v46 = vld [vmem:[%s4837_s15 + $0xbc] sm:$0x1] }
 0x123   : > { %7927 = vst [vmem:[#allocation45_spill] sm:$0xff] %v5203_v5  ;;  %v917_v5 = vpack.c.b16 %v899_v61, %v898_v63  ;;  %v840_v22 = vrot.slane %v839_v3, 4  ;;  %v844_v37 = vrot.slane %v842_v32, 5  ;;  %v481_v63 = vld [vmem:[%s4837_s15 + $0xb8] sm:$0xf]  ;;  %v900_v61 = vunpack.c.l.b16 %v835_v19 }
 0x124   : > { %v856_v52 = vshll.u32 %v481_v63, 16  ;;  %v860_v41 = vshrl.u32 %v481_v63, 16  ;;  %v852_v4 = vrot.slane %v850_v13, 5  ;;  %v866_v63 = vshll.u32 %v482_v46, 16 }
 0x125   : > { %v845_v18 = vsel %vm4932_vm4, %v840_v22, %v844_v37 }
 0x126   : > { %v901_v3 = vunpack.c.l.b16 %v845_v18 }
 0x128   : > { %v1094_v2 = vpop.f32.mrf.mxu2  ;;  %v1188_v33 = vpop.f32.mrf.mxu3 }
 0x129   : > { %v5212_v23 = vadd.f32 %v1094_v2, %v1002_v50  ;;  %v5214_v34 = vadd.f32 %v1280_v16, %v1188_v33  ;;  %v1005_v25 = vpop.f32.mrf.mxu1  ;;  %v1283_v62 = vpop.f32.mrf.mxu0  ;;  %v847_v16 = vshrl.u32 %v480_v45, 16  ;;  %v858_v2 = vrot.slane %v856_v52, 5 }
 0x12a   : > { %v862_v33 = vrot.slane %v860_v41, 4  ;;  %v868_v52 = vrot.slane %v866_v63, 5  ;;  %v4470_v41 = vld [vmem:[%s4837_s15 + $0xc] sm:$0xf] }
 0x12b   : > { %7928 = vst [vmem:[#allocation46_spill] sm:$0xff] %v5212_v23  ;;  %v849_v32 = vrot.slane %v847_v16, 4  ;;  %v918_v23 = vpack.c.b16 %v901_v3, %v900_v61  ;;  %v4471_v61 = vld [vmem:[%s4837_s15 + $0x10] sm:$0xf] }
 0x12c   : > { %4272 = vmatmul.msk.bf16.gmra.mxu1 %vm288_vm1, %v917_v5  ;;  %4321 = vmatmul.msk.bf16.gmra.mxu0 %vm288_vm1, %v4869_v17 }
 0x12d   : > { %4288 = vmatmul.msk.bf16.gmra.mxu2 %vm288_vm1, %v4869_v17  ;;  %4305 = vmatmul.msk.bf16.gmra.mxu3 %vm288_vm1, %v917_v5  ;;  %v853_v45 = vor.u32 %v852_v4, %v849_v32  ;;  %v1860_v4 = vshrl.u32 %v4470_v41, 16 }
 0x12f   : > { %v854_v16 = vrot.slane %v853_v45, 4 }
 0x130   : > { %v1097_v1 = vpop.f32.mrf.mxu2  ;;  %v1191_v50 = vpop.f32.mrf.mxu3 }
 0x131   : > { %v5228_v15 = vadd.f32 %v1097_v1, %v1005_v25  ;;  %v5230_v17 = vadd.f32 %v1283_v62, %v1191_v50  ;;  %v1007_v5 = vpop.f32.mrf.mxu1  ;;  %v1285_v58 = vpop.f32.mrf.mxu0  ;;  %v863_v25 = vor.u32 %v862_v33, %v858_v2  ;;  %v4639_v50 = vld [vmem:[%s4837_s15 + $0xa8] sm:$0xff]  ;;  %v1863_v33 = vshll.u32 %v4470_v41, 16 }
 0x133   : > { %7929 = vst [vmem:[#allocation47_spill] sm:$0xff] %v5228_v15  ;;  %v864_v13 = vrot.slane %v863_v25, 4  ;;  %v1873_v25 = vshrl.u32 %v4471_v61, 16  ;;  %v1865_v15 = vrot.slane %v1863_v33, 5  ;;  %v4473_v33 = vld [vmem:[%s4837_s15 + $0x18] sm:$0xf] }
 0x135   : > { %v869_v32 = vsel %vm4932_vm4, %v864_v13, %v868_v52  ;;  %v4472_v13 = vld [vmem:[%s4837_s15 + $0x14] sm:$0x1] }
 0x138   : > { %v1099_v22 = vpop.f32.mrf.mxu2  ;;  %v1193_v37 = vpop.f32.mrf.mxu3 }
 0x139   : > { %v5233_v62 = vadd.f32 %v1099_v22, %v1007_v5  ;;  %v5235_v1 = vadd.f32 %v1285_v58, %v1193_v37  ;;  %v1010_v19 = vpop.f32.mrf.mxu1  ;;  %v1288_v18 = vpop.f32.mrf.mxu0  ;;  %v859_v58 = vsel %vm4932_vm4, %v854_v16, %v858_v2  ;;  %v1875_v16 = vrot.slane %v1873_v25, 4 }
 0x13a   : > { %v902_v63 = vunpack.c.l.b16 %v859_v58  ;;  %v1887_v25 = vshll.u32 %v4473_v33, 16 }
 0x13b   : > { %7930 = vst [vmem:[#allocation48_spill] sm:$0xff] %v5233_v62  ;;  %v1862_v62 = vrot.slane %v1860_v4, 4  ;;  %v4640_v4 = vld [vmem:[%s4837_s15 + $0xb4] sm:$0xff] }
 0x13c   : > { %4273 = vmatmul.msk.bf16.gmra.mxu1 %vm288_vm1, %v918_v23  ;;  %4322 = vmatmul.msk.bf16.gmra.mxu0 %vm288_vm1, %v4639_v50 }
 0x13d   : > { %4289 = vmatmul.msk.bf16.gmra.mxu2 %vm288_vm1, %v4639_v50  ;;  %4306 = vmatmul.msk.bf16.gmra.mxu3 %vm288_vm1, %v918_v23  ;;  %v1869_v23 = vshll.u32 %v4471_v61, 16  ;;  %v903_v50 = vunpack.c.l.b16 %v869_v32  ;;  %v1879_v32 = vshll.u32 %v4472_v13, 16 }
 0x13f   : > { %v1871_v2 = vrot.slane %v1869_v23, 5  ;;  %v4474_v23 = vld [vmem:[%s4837_s15 + $0x1c] sm:$0xf] }
 0x140   : > { %v1102_v5 = vpop.f32.mrf.mxu2  ;;  %v1196_v3 = vpop.f32.mrf.mxu3 }
 0x141   : > { %v5248_v46 = vadd.f32 %v1102_v5, %v1010_v19  ;;  %v5250_v22 = vadd.f32 %v1288_v18, %v1196_v3  ;;  %v1012_v37 = vpop.f32.mrf.mxu1  ;;  %v1290_v45 = vpop.f32.mrf.mxu0  ;;  %v919_v19 = vpack.c.b16 %v903_v50, %v902_v63  ;;  %v1866_v5 = vor.u32 %v1865_v15, %v1862_v62 }
 0x142   : > { %v1876_v58 = vor.u32 %v1875_v16, %v1871_v2  ;;  %v1893_v63 = vshll.u32 %v4474_v23, 16  ;;  %v1897_v50 = vshrl.u32 %v4474_v23, 16 }
 0x143   : > { %7931 = vst [vmem:[#allocation49_spill] sm:$0xff] %v5248_v46  ;;  %v1867_v15 = vrot.slane %v1866_v5, 4 }
 0x144   : > { %v1877_v62 = vrot.slane %v1876_v58, 4 }
 0x148   : > { %v1104_v52 = vpop.f32.mrf.mxu2  ;;  %v1198_v41 = vpop.f32.mrf.mxu3 }
 0x149   : > { %v5253_v18 = vadd.f32 %v1104_v52, %v1012_v37  ;;  %v5255_v3 = vadd.f32 %v1290_v45, %v1198_v41  ;;  %v1015_v46 = vpop.f32.mrf.mxu1  ;;  %v1293_v61 = vpop.f32.mrf.mxu0  ;;  %v1881_v37 = vrot.slane %v1879_v32, 5  ;;  %v1884_v45 = vshrl.u32 %v4473_v33, 16 }
 0x14a   : > { %v1889_v32 = vrot.slane %v1887_v25, 5  ;;  %v1899_v33 = vrot.slane %v1897_v50, 4 }
 0x14b   : > { %7932 = vst [vmem:[#allocation50_spill] sm:$0xff] %v5253_v18  ;;  %v1882_v5 = vsel %vm4932_vm4, %v1877_v62, %v1881_v37  ;;  %v1886_v58 = vrot.slane %v1884_v45, 4 }
 0x14c   : > { %4274 = vmatmul.msk.bf16.gmra.mxu1 %vm288_vm1, %v919_v19  ;;  %4323 = vmatmul.msk.bf16.gmra.mxu0 %vm288_vm1, %v4640_v4  ;;  %v2246_v10 = vunpack.c.l.b16 %v1882_v5 }
 0x14d   : > { %4290 = vmatmul.msk.bf16.gmra.mxu2 %vm288_vm1, %v4640_v4  ;;  %4307 = vmatmul.msk.bf16.gmra.mxu3 %vm288_vm1, %v919_v19  ;;  %v1872_v19 = vsel %vm4932_vm4, %v1867_v15, %v1871_v2  ;;  %v1895_v4 = vrot.slane %v1893_v63, 5 }
 0x14e   : > { %v2245_v23 = vunpack.c.l.b16 %v1872_v19  ;;  %v4476_v19 = vld [vmem:[%s4837_s15 + $0x24] sm:$0xf] }
 0x150   : > { %v1107_v16 = vpop.f32.mrf.mxu2  ;;  %v1201_v13 = vpop.f32.mrf.mxu3  ;;  %v2277_v2 = vpack.c.b16 %v2246_v10, %v2245_v23  ;;  %v4477_v10 = vld [vmem:[%s4837_s15 + $0x28] sm:$0xf] }
 0x151   : > { %v5264_v52 = vadd.f32 %v1107_v16, %v1015_v46  ;;  %v5266_v41 = vadd.f32 %v1293_v61, %v1201_v13  ;;  %v1017_v18 = vpop.f32.mrf.mxu1  ;;  %v1295_v35 = vpop.f32.mrf.mxu0  ;;  %v1890_v46 = vor.u32 %v1889_v32, %v1886_v58  ;;  %v1900_v61 = vor.u32 %v1899_v33, %v1895_v4 }
 0x152   : > { %v1903_v16 = vshll.u32 %v4475_v55, 16  ;;  %v4641_v55 = vld [vmem:[%s4837_s15] sm:$0xff]  ;;  %v1908_v58 = vshrl.u32 %v4476_v19, 16  ;;  %v1911_v32 = vshll.u32 %v4476_v19, 16  ;;  %v1917_v33 = vshll.u32 %v4477_v10, 16  ;;  %v4557_v19 = vld [vmem:[%s4837_s15 + $0x18] sm:$0xff] }
 0x153   : > { %7933 = vst [vmem:[#allocation51_spill] sm:$0xff] %v5264_v52  ;;  %v1891_v25 = vrot.slane %v1890_v46, 4  ;;  %v1901_v63 = vrot.slane %v1900_v61, 4  ;;  %v1921_v23 = vshrl.u32 %v4477_v10, 16 }
 0x154   : > { %v1905_v50 = vrot.slane %v1903_v16, 5 }
 0x158   : > { %v1109_v13 = vpop.f32.mrf.mxu2  ;;  %v1203_v52 = vpop.f32.mrf.mxu3 }
 0x159   : > { %v5274_v15 = vadd.f32 %v1109_v13, %v1017_v18  ;;  %v5276_v62 = vadd.f32 %v1295_v35, %v1203_v52  ;;  %v1020_v37 = vpop.f32.mrf.mxu1  ;;  %v1298_v45 = vpop.f32.mrf.mxu0  ;;  %v1896_v35 = vsel %vm4932_vm4, %v1891_v25, %v1895_v4  ;;  %v1906_v18 = vsel %vm4932_vm4, %v1901_v63, %v1905_v50  ;;  %v4478_v50 = vld [vmem:[%s4837_s15 + $0x2c] sm:$0x1] }
 0x15a   : > { %v2247_v13 = vunpack.c.l.b16 %v1896_v35  ;;  %v1910_v4 = vrot.slane %v1908_v58, 4  ;;  %v1913_v25 = vrot.slane %v1911_v32, 5  ;;  %v1923_v63 = vrot.slane %v1921_v23, 4  ;;  %v4642_v23 = vld [vmem:[%s4837_s15 + $0xc] sm:$0xff] }
 0x15b   : > { %7934 = vst [vmem:[#allocation52_spill] sm:$0xff] %v5274_v15 }
 0x15c   : > { %4421 = vmatmul.msk.bf16.vlgmr.msra.gmra.mxu1 %vm288_vm1, %v4556_v54  ;;  %4519 = vmatmul.msk.bf16.vlgmr.msra.gmra.mxu0 %vm288_vm1, %v2277_v2  ;;  %v2248_v2 = vunpack.c.l.b16 %v1906_v18  ;;  %v1914_v10 = vor.u32 %v1913_v25, %v1910_v4 }
 0x15d   : > { %4437 = vmatmul.msk.bf16.vlgmr.msra.gmra.mxu2 %vm288_vm1, %v4641_v55  ;;  %4454 = vmatmul.msk.bf16.vlgmr.msra.gmra.mxu3 %vm288_vm1, %v4556_v54  ;;  %v1919_v55 = vrot.slane %v1917_v33, 5 }
 0x15e   : > { %v2278_v36 = vpack.c.b16 %v2248_v2, %v2247_v13  ;;  %v1915_v58 = vrot.slane %v1914_v10, 4  ;;  %v4479_v13 = vld [vmem:[%s4837_s15 + $0x30] sm:$0xf]  ;;  %v4480_v2 = vld [vmem:[%s4837_s15 + $0x34] sm:$0xf] }
 0x15f   : > { %v1935_v4 = vshll.u32 %v4479_v13, 16  ;;  %v1941_v10 = vshll.u32 %v4480_v2, 16 }
 0x160   : > { %v1112_v52 = vpop.f32.mrf.mxu2  ;;  %v1206_v5 = vpop.f32.mrf.mxu3 }
 0x161   : > { %v5289_v46 = vadd.f32 %v1112_v52, %v1020_v37  ;;  %v5291_v61 = vadd.f32 %v1298_v45, %v1206_v5  ;;  %v1022_v54 = vpop.f32.mrf.mxu1  ;;  %v1300_v16 = vpop.f32.mrf.mxu0  ;;  %v1924_v37 = vor.u32 %v1923_v63, %v1919_v55  ;;  %v1927_v45 = vshll.u32 %v4478_v50, 16 }
 0x163   : > { %7935 = vst [vmem:[#allocation53_spill] sm:$0xff] %v5289_v46  ;;  %v1925_v32 = vrot.slane %v1924_v37, 4  ;;  %v1929_v33 = vrot.slane %v1927_v45, 5  ;;  %v1945_v37 = vshrl.u32 %v4480_v2, 16  ;;  %v1937_v46 = vrot.slane %v1935_v4, 5 }
 0x164   : > { %v4482_v4 = vld [vmem:[%s4837_s15 + $0x3c] sm:$0xf] }
 0x168   : > { %v1114_v15 = vpop.f32.mrf.mxu2  ;;  %v1208_v57 = vpop.f32.mrf.mxu3 }
 0x169   : > { %v5295_v52 = vadd.f32 %v1114_v15, %v1022_v54  ;;  %v5297_v5 = vadd.f32 %v1300_v16, %v1208_v57  ;;  %v1025_v35 = vpop.f32.mrf.mxu1  ;;  %v1303_v18 = vpop.f32.mrf.mxu0  ;;  %v1920_v57 = vsel %vm4932_vm4, %v1915_v58, %v1919_v55  ;;  %v1930_v16 = vsel %vm4932_vm4, %v1925_v32, %v1929_v33  ;;  %v4481_v32 = vld [vmem:[%s4837_s15 + $0x38] sm:$0x1] }
 0x16a   : > { %v2249_v45 = vunpack.c.l.b16 %v1920_v57  ;;  %v1943_v55 = vrot.slane %v1941_v10, 5  ;;  %v1947_v58 = vrot.slane %v1945_v37, 4  ;;  %v4483_v10 = vld [vmem:[%s4837_s15 + $0x40] sm:$0xf]  ;;  %v4643_v37 = vld [vmem:[%s4837_s15 + $0x18] sm:$0xff] }
 0x16b   : > { %7936 = vst [vmem:[#allocation54_spill] sm:$0xff] %v5295_v52 }
 0x16c   : > { %4422 = vmatmul.msk.bf16.gmra.mxu1 %vm288_vm1, %v4557_v19  ;;  %4520 = vmatmul.msk.bf16.gmra.mxu0 %vm288_vm1, %v2278_v36  ;;  %v1932_v36 = vshrl.u32 %v4479_v13, 16 }
 0x16d   : > { %4438 = vmatmul.msk.bf16.gmra.mxu2 %vm288_vm1, %v4642_v23  ;;  %4455 = vmatmul.msk.bf16.gmra.mxu3 %vm288_vm1, %v4557_v19  ;;  %v2250_v23 = vunpack.c.l.b16 %v1930_v16  ;;  %v1948_v16 = vor.u32 %v1947_v58, %v1943_v55  ;;  %v1969_v58 = vshrl.u32 %v4483_v10, 16 }
 0x16e   : > { %v1934_v52 = vrot.slane %v1932_v36, 4  ;;  %v1951_v36 = vshll.u32 %v4481_v32, 16 }
 0x170   : > { %v1117_v15 = vpop.f32.mrf.mxu2  ;;  %v1211_v54 = vpop.f32.mrf.mxu3 }
 0x171   : > { %v5310_v25 = vadd.f32 %v1117_v15, %v1025_v35  ;;  %v5312_v63 = vadd.f32 %v1303_v18, %v1211_v54  ;;  %v1027_v50 = vpop.f32.mrf.mxu1  ;;  %v1305_v19 = vpop.f32.mrf.mxu0  ;;  %v4558_v35 = vld [vmem:[%s4837_s15 + $0x24] sm:$0xff]  ;;  %v2279_v15 = vpack.c.b16 %v2250_v23, %v2249_v45  ;;  %v1938_v18 = vor.u32 %v1937_v46, %v1934_v52 }
 0x172   : > { %v1949_v52 = vrot.slane %v1948_v16, 4  ;;  %v1959_v45 = vshll.u32 %v4482_v4, 16  ;;  %v1965_v23 = vshll.u32 %v4483_v10, 16 }
 0x173   : > { %7937 = vst [vmem:[#allocation55_spill] sm:$0xff] %v5310_v25  ;;  %v1939_v46 = vrot.slane %v1938_v18, 4 }
 0x178   : > { %v1119_v33 = vpop.f32.mrf.mxu2  ;;  %v1213_v13 = vpop.f32.mrf.mxu3 }
 0x179   : > { %v5316_v54 = vadd.f32 %v1119_v33, %v1027_v50  ;;  %v5318_v25 = vadd.f32 %v1305_v19, %v1213_v13  ;;  %v1030_v2 = vpop.f32.mrf.mxu1  ;;  %v1308_v57 = vpop.f32.mrf.mxu0  ;;  %v1953_v50 = vrot.slane %v1951_v36, 5  ;;  %v1956_v19 = vshrl.u32 %v4482_v4, 16 }
 0x17a   : > { %v1961_v36 = vrot.slane %v1959_v45, 5  ;;  %v1967_v4 = vrot.slane %v1965_v23, 5 }
 0x17b   : > { %7938 = vst [vmem:[#allocation56_spill] sm:$0xff] %v5316_v54  ;;  %v1954_v18 = vsel %vm4932_vm4, %v1949_v52, %v1953_v50  ;;  %v1958_v16 = vrot.slane %v1956_v19, 4 }
 0x17c   : > { %4423 = vmatmul.msk.bf16.gmra.mxu1 %vm288_vm1, %v4558_v35  ;;  %4521 = vmatmul.msk.bf16.gmra.mxu0 %vm288_vm1, %v2279_v15  ;;  %v2252_v7 = vunpack.c.l.b16 %v1954_v18 }
 0x17d   : > { %4439 = vmatmul.msk.bf16.gmra.mxu2 %vm288_vm1, %v4643_v37  ;;  %4456 = vmatmul.msk.bf16.gmra.mxu3 %vm288_vm1, %v4558_v35  ;;  %v1944_v35 = vsel %vm4932_vm4, %v1939_v46, %v1943_v55  ;;  %v1971_v37 = vrot.slane %v1969_v58, 4 }
 0x17e   : > { %v2251_v10 = vunpack.c.l.b16 %v1944_v35  ;;  %v4485_v35 = vld [vmem:[%s4837_s15 + $0x48] sm:$0xf] }
 0x180   : > { %v1122_v32 = vpop.f32.mrf.mxu2  ;;  %v1216_v33 = vpop.f32.mrf.mxu3  ;;  %v2280_v55 = vpack.c.b16 %v2252_v7, %v2251_v10  ;;  %v4486_v7 = vld [vmem:[%s4837_s15 + $0x4c] sm:$0xf] }
 0x181   : > { %v5327_v13 = vadd.f32 %v1122_v32, %v1030_v2  ;;  %v5329_v15 = vadd.f32 %v1308_v57, %v1216_v33  ;;  %v1032_v54 = vpop.f32.mrf.mxu1  ;;  %v1310_v38 = vpop.f32.mrf.mxu0  ;;  %v1962_v2 = vor.u32 %v1961_v36, %v1958_v16  ;;  %v1972_v57 = vor.u32 %v1971_v37, %v1967_v4 }
 0x182   : > { %v1975_v32 = vshll.u32 %v4484_v53, 16  ;;  %v4644_v53 = vld [vmem:[%s4837_s15 + $0x24] sm:$0xff]  ;;  %v1980_v16 = vshrl.u32 %v4485_v35, 16  ;;  %v1983_v36 = vshll.u32 %v4485_v35, 16  ;;  %v1989_v37 = vshll.u32 %v4486_v7, 16  ;;  %v4560_v35 = vld [vmem:[%s4837_s15 + $0x3c] sm:$0xff] }
 0x183   : > { %7939 = vst [vmem:[#allocation57_spill] sm:$0xff] %v5327_v13  ;;  %v1963_v45 = vrot.slane %v1962_v2, 4  ;;  %v1973_v23 = vrot.slane %v1972_v57, 4  ;;  %v1993_v10 = vshrl.u32 %v4486_v7, 16 }
 0x184   : > { %v1977_v58 = vrot.slane %v1975_v32, 5 }
 0x188   : > { %v1124_v33 = vpop.f32.mrf.mxu2  ;;  %v1218_v13 = vpop.f32.mrf.mxu3 }
 0x189   : > { %v5337_v46 = vadd.f32 %v1124_v33, %v1032_v54  ;;  %v5339_v52 = vadd.f32 %v1310_v38, %v1218_v13  ;;  %v1035_v50 = vpop.f32.mrf.mxu1  ;;  %v1313_v19 = vpop.f32.mrf.mxu0  ;;  %v1968_v38 = vsel %vm4932_vm4, %v1963_v45, %v1967_v4  ;;  %v1978_v54 = vsel %vm4932_vm4, %v1973_v23, %v1977_v58  ;;  %v4487_v58 = vld [vmem:[%s4837_s15 + $0x50] sm:$0x1] }
 0x18a   : > { %v2253_v33 = vunpack.c.l.b16 %v1968_v38  ;;  %v1982_v4 = vrot.slane %v1980_v16, 4  ;;  %v1985_v45 = vrot.slane %v1983_v36, 5  ;;  %v1995_v23 = vrot.slane %v1993_v10, 4  ;;  %v4645_v10 = vld [vmem:[%s4837_s15 + $0x30] sm:$0xff] }
 0x18b   : > { %7940 = vst [vmem:[#allocation58_spill] sm:$0xff] %v5337_v46 }
 0x18c   : > { %7941 = vst [vmem:[#allocation59_spill] sm:$0xff] %v5339_v52  ;;  %4424 = vmatmul.msk.bf16.gmra.mxu1 %vm288_vm1, %v4559_v24  ;;  %4522 = vmatmul.msk.bf16.gmra.mxu0 %vm288_vm1, %v2280_v55  ;;  %v2254_v55 = vunpack.c.l.b16 %v1978_v54  ;;  %v1986_v7 = vor.u32 %v1985_v45, %v1982_v4 }
 0x18d   : > { %4440 = vmatmul.msk.bf16.gmra.mxu2 %vm288_vm1, %v4644_v53  ;;  %4457 = vmatmul.msk.bf16.gmra.mxu3 %vm288_vm1, %v4559_v24  ;;  %v1991_v53 = vrot.slane %v1989_v37, 5 }
 0x18e   : > { %v2281_v0 = vpack.c.b16 %v2254_v55, %v2253_v33  ;;  %v1987_v16 = vrot.slane %v1986_v7, 4  ;;  %v4488_v33 = vld [vmem:[%s4837_s15 + $0x54] sm:$0xf]  ;;  %v4489_v55 = vld [vmem:[%s4837_s15 + $0x58] sm:$0xf] }
 0x18f   : > { %v2007_v4 = vshll.u32 %v4488_v33, 16  ;;  %v2013_v7 = vshll.u32 %v4489_v55, 16 }
 0x190   : > { %v1127_v13 = vpop.f32.mrf.mxu2  ;;  %v1221_v18 = vpop.f32.mrf.mxu3 }
 0x191   : > { %v5352_v2 = vadd.f32 %v1127_v13, %v1035_v50  ;;  %v5354_v57 = vadd.f32 %v1313_v19, %v1221_v18  ;;  %v1037_v24 = vpop.f32.mrf.mxu1  ;;  %v1315_v32 = vpop.f32.mrf.mxu0  ;;  %v1996_v50 = vor.u32 %v1995_v23, %v1991_v53  ;;  %v1999_v19 = vshll.u32 %v4487_v58, 16 }
 0x193   : > { %7942 = vst [vmem:[#allocation60_spill] sm:$0xff] %v5352_v2  ;;  %v1997_v36 = vrot.slane %v1996_v50, 4  ;;  %v2001_v37 = vrot.slane %v1999_v19, 5  ;;  %v2017_v50 = vshrl.u32 %v4489_v55, 16 }
 0x194   : > { %7943 = vst [vmem:[#allocation61_spill] sm:$0xff] %v5354_v57  ;;  %v2009_v57 = vrot.slane %v2007_v4, 5  ;;  %v4491_v4 = vld [vmem:[%s4837_s15 + $0x60] sm:$0xf] }
 0x198   : > { %v1129_v52 = vpop.f32.mrf.mxu2  ;;  %v1223_v46 = vpop.f32.mrf.mxu3 }
 0x199   : > { %v5358_v13 = vadd.f32 %v1129_v52, %v1037_v24  ;;  %v5360_v18 = vadd.f32 %v1315_v32, %v1223_v46  ;;  %v1040_v38 = vpop.f32.mrf.mxu1  ;;  %v1318_v54 = vpop.f32.mrf.mxu0  ;;  %v1992_v46 = vsel %vm4932_vm4, %v1987_v16, %v1991_v53  ;;  %v2002_v32 = vsel %vm4932_vm4, %v1997_v36, %v2001_v37  ;;  %v4490_v36 = vld [vmem:[%s4837_s15 + $0x5c] sm:$0x1] }
 0x19a   : > { %v2255_v19 = vunpack.c.l.b16 %v1992_v46  ;;  %v2015_v53 = vrot.slane %v2013_v7, 5  ;;  %v2019_v16 = vrot.slane %v2017_v50, 4  ;;  %v4492_v7 = vld [vmem:[%s4837_s15 + $0x64] sm:$0xf]  ;;  %v4646_v50 = vld [vmem:[%s4837_s15 + $0x3c] sm:$0xff] }
 0x19b   : > { %7944 = vst [vmem:[#allocation62_spill] sm:$0xff] %v5358_v13  ;;  %v4493_v13 = vld [vmem:[%s4837_s15 + $0x68] sm:$0x1] }
 0x19c   : > { %7945 = vst [vmem:[#allocation63_spill] sm:$0xff] %v5360_v18  ;;  %4425 = vmatmul.msk.bf16.gmra.mxu1 %vm288_vm1, %v4560_v35  ;;  %4523 = vmatmul.msk.bf16.gmra.mxu0 %vm288_vm1, %v2281_v0  ;;  %v2004_v0 = vshrl.u32 %v4488_v33, 16 }
 0x19d   : > { %4441 = vmatmul.msk.bf16.gmra.mxu2 %vm288_vm1, %v4645_v10  ;;  %4458 = vmatmul.msk.bf16.gmra.mxu3 %vm288_vm1, %v4560_v35  ;;  %v2256_v10 = vunpack.c.l.b16 %v2002_v32  ;;  %v2020_v32 = vor.u32 %v2019_v16, %v2015_v53  ;;  %v2041_v16 = vshrl.u32 %v4492_v7, 16 }
 0x19e   : > { %v2006_v18 = vrot.slane %v2004_v0, 4  ;;  %v2023_v0 = vshll.u32 %v4490_v36, 16 }
 0x1a0   : > { %v1132_v52 = vpop.f32.mrf.mxu2  ;;  %v1226_v24 = vpop.f32.mrf.mxu3 }
 0x1a1   : > { %v5373_v45 = vadd.f32 %v1132_v52, %v1040_v38  ;;  %v5375_v23 = vadd.f32 %v1318_v54, %v1226_v24  ;;  %v1042_v58 = vpop.f32.mrf.mxu1  ;;  %v1320_v35 = vpop.f32.mrf.mxu0  ;;  %v4561_v38 = vld [vmem:[%s4837_s15 + $0x48] sm:$0xff]  ;;  %v2282_v52 = vpack.c.b16 %v2256_v10, %v2255_v19  ;;  %v2010_v54 = vor.u32 %v2009_v57, %v2006_v18 }
 0x1a2   : > { %v2021_v18 = vrot.slane %v2020_v32, 4  ;;  %v2031_v19 = vshll.u32 %v4491_v4, 16  ;;  %v2037_v10 = vshll.u32 %v4492_v7, 16 }
 0x1a3   : > { %7946 = vst [vmem:[#allocation64_spill] sm:$0xff] %v5373_v45  ;;  %v2011_v57 = vrot.slane %v2010_v54, 4 }
 0x1a4   : > { %7947 = vst [vmem:[#allocation65_spill] sm:$0xff] %v5375_v23 }
 0x1a8   : > { %v1134_v37 = vpop.f32.mrf.mxu2  ;;  %v1228_v33 = vpop.f32.mrf.mxu3 }
 0x1a9   : > { %v5379_v24 = vadd.f32 %v1134_v37, %v1042_v58  ;;  %v5381_v45 = vadd.f32 %v1320_v35, %v1228_v33  ;;  %v1045_v55 = vpop.f32.mrf.mxu1  ;;  %v1323_v46 = vpop.f32.mrf.mxu0  ;;  %v2025_v58 = vrot.slane %v2023_v0, 5  ;;  %v2028_v35 = vshrl.u32 %v4491_v4, 16 }
 0x1aa   : > { %v2033_v0 = vrot.slane %v2031_v19, 5  ;;  %v2039_v4 = vrot.slane %v2037_v10, 5 }
 0x1ab   : > { %7948 = vst [vmem:[#allocation66_spill] sm:$0xff] %v5379_v24  ;;  %v2026_v54 = vsel %vm4932_vm4, %v2021_v18, %v2025_v58  ;;  %v2030_v32 = vrot.slane %v2028_v35, 4 }
 0x1ac   : > { %7949 = vst [vmem:[#allocation67_spill] sm:$0xff] %v5381_v45  ;;  %4426 = vmatmul.msk.bf16.gmra.mxu1 %vm288_vm1, %v4561_v38  ;;  %4524 = vmatmul.msk.bf16.gmra.mxu0 %vm288_vm1, %v2282_v52  ;;  %v2258_v23 = vunpack.c.l.b16 %v2026_v54 }
 0x1ad   : > { %4442 = vmatmul.msk.bf16.gmra.mxu2 %vm288_vm1, %v4646_v50  ;;  %4459 = vmatmul.msk.bf16.gmra.mxu3 %vm288_vm1, %v4561_v38  ;;  %v2016_v38 = vsel %vm4932_vm4, %v2011_v57, %v2015_v53  ;;  %v2043_v50 = vrot.slane %v2041_v16, 4 }
 0x1ae   : > { %v2257_v7 = vunpack.c.l.b16 %v2016_v38  ;;  %v4494_v38 = vld [vmem:[%s4837_s15 + $0x6c] sm:$0xf] }
 0x1b0   : > { %v1137_v36 = vpop.f32.mrf.mxu2  ;;  %v1231_v37 = vpop.f32.mrf.mxu3  ;;  %v2283_v53 = vpack.c.b16 %v2258_v23, %v2257_v7  ;;  %v4495_v23 = vld [vmem:[%s4837_s15 + $0x70] sm:$0xf] }
 0x1b1   : > { %v5390_v33 = vadd.f32 %v1137_v36, %v1045_v55  ;;  %v5392_v52 = vadd.f32 %v1323_v46, %v1231_v37  ;;  %v1047_v24 = vpop.f32.mrf.mxu1  ;;  %v1325_v45 = vpop.f32.mrf.mxu0  ;;  %v2034_v55 = vor.u32 %v2033_v0, %v2030_v32  ;;  %v2044_v46 = vor.u32 %v2043_v50, %v2039_v4 }
 0x1b2   : > { %v2047_v36 = vshll.u32 %v4493_v13, 16  ;;  %v4647_v13 = vld [vmem:[%s4837_s15 + $0x48] sm:$0xff]  ;;  %v2052_v32 = vshrl.u32 %v4494_v38, 16  ;;  %v2055_v0 = vshll.u32 %v4494_v38, 16  ;;  %v2061_v50 = vshll.u32 %v4495_v23, 16  ;;  %v4563_v38 = vld [vmem:[%s4837_s15 + $0x60] sm:$0xff] }
 0x1b3   : > { %7950 = vst [vmem:[#allocation68_spill] sm:$0xff] %v5390_v33  ;;  %v2035_v19 = vrot.slane %v2034_v55, 4  ;;  %v2045_v10 = vrot.slane %v2044_v46, 4  ;;  %v2065_v7 = vshrl.u32 %v4495_v23, 16 }
 0x1b4   : > { %7951 = vst [vmem:[#allocation69_spill] sm:$0xff] %v5392_v52  ;;  %v4562_v52 = vld [vmem:[%s4837_s15 + $0x54] sm:$0xff]  ;;  %v2049_v16 = vrot.slane %v2047_v36, 5 }
 0x1b8   : > { %v1139_v37 = vpop.f32.mrf.mxu2  ;;  %v1233_v33 = vpop.f32.mrf.mxu3 }
 0x1b9   : > { %v5400_v57 = vadd.f32 %v1139_v37, %v1047_v24  ;;  %v5402_v18 = vadd.f32 %v1325_v45, %v1233_v33  ;;  %v1050_v58 = vpop.f32.mrf.mxu1  ;;  %v1328_v35 = vpop.f32.mrf.mxu0  ;;  %v2040_v45 = vsel %vm4932_vm4, %v2035_v19, %v2039_v4  ;;  %v2050_v24 = vsel %vm4932_vm4, %v2045_v10, %v2049_v16  ;;  %v4496_v16 = vld [vmem:[%s4837_s15 + $0x74] sm:$0x1] }
 0x1ba   : > { %v2259_v37 = vunpack.c.l.b16 %v2040_v45  ;;  %v2054_v4 = vrot.slane %v2052_v32, 4  ;;  %v2057_v19 = vrot.slane %v2055_v0, 5  ;;  %v2067_v10 = vrot.slane %v2065_v7, 4  ;;  %v4648_v7 = vld [vmem:[%s4837_s15 + $0x54] sm:$0xff] }
 0x1bb   : > { %7952 = vst [vmem:[#allocation70_spill] sm:$0xff] %v5400_v57 }
 0x1bc   : > { %7953 = vst [vmem:[#allocation71_spill] sm:$0xff] %v5402_v18  ;;  %4427 = vmatmul.msk.bf16.gmra.mxu1 %vm288_vm1, %v4562_v52  ;;  %4525 = vmatmul.msk.bf16.gmra.mxu0 %vm288_vm1, %v2283_v53  ;;  %v2260_v53 = vunpack.c.l.b16 %v2050_v24  ;;  %v2058_v23 = vor.u32 %v2057_v19, %v2054_v4 }
 0x1bd   : > { %4443 = vmatmul.msk.bf16.gmra.mxu2 %vm288_vm1, %v4647_v13  ;;  %4460 = vmatmul.msk.bf16.gmra.mxu3 %vm288_vm1, %v4562_v52  ;;  %v2063_v13 = vrot.slane %v2061_v50, 5 }
 0x1be   : > { %v2284_v2 = vpack.c.b16 %v2260_v53, %v2259_v37  ;;  %v2059_v32 = vrot.slane %v2058_v23, 4  ;;  %v4497_v37 = vld [vmem:[%s4837_s15 + $0x78] sm:$0xf]  ;;  %v4498_v53 = vld [vmem:[%s4837_s15 + $0x7c] sm:$0xf] }
 0x1bf   : > { %v2079_v4 = vshll.u32 %v4497_v37, 16  ;;  %v2085_v23 = vshll.u32 %v4498_v53, 16 }
 0x1c0   : > { %v1142_v33 = vpop.f32.mrf.mxu2  ;;  %v1236_v54 = vpop.f32.mrf.mxu3 }
 0x1c1   : > { %v5415_v55 = vadd.f32 %v1142_v33, %v1050_v58  ;;  %v5417_v46 = vadd.f32 %v1328_v35, %v1236_v54  ;;  %v1052_v52 = vpop.f32.mrf.mxu1  ;;  %v1330_v36 = vpop.f32.mrf.mxu0  ;;  %v2068_v58 = vor.u32 %v2067_v10, %v2063_v13  ;;  %v2071_v35 = vshll.u32 %v4496_v16, 16 }
 0x1c3   : > { %7954 = vst [vmem:[#allocation72_spill] sm:$0xff] %v5415_v55  ;;  %v2069_v0 = vrot.slane %v2068_v58, 4  ;;  %v2073_v50 = vrot.slane %v2071_v35, 5  ;;  %v2089_v58 = vshrl.u32 %v4498_v53, 16 }
 0x1c4   : > { %7955 = vst [vmem:[#allocation73_spill] sm:$0xff] %v5417_v46 }
 0x1c5   : > { %v2091_v55 = vrot.slane %v2089_v58, 4 }
 0x1c8   : > { %v1144_v57 = vpop.f32.mrf.mxu2  ;;  %v1238_v18 = vpop.f32.mrf.mxu3 }
 0x1c9   : > { %v5421_v33 = vadd.f32 %v1144_v57, %v1052_v52  ;;  %v5423_v54 = vadd.f32 %v1330_v36, %v1238_v18  ;;  %v1055_v45 = vpop.f32.mrf.mxu1  ;;  %v1333_v24 = vpop.f32.mrf.mxu0  ;;  %v2064_v18 = vsel %vm4932_vm4, %v2059_v32, %v2063_v13  ;;  %v2074_v36 = vsel %vm4932_vm4, %v2069_v0, %v2073_v50  ;;  %v4499_v0 = vld [vmem:[%s4837_s15 + $0x80] sm:$0x1] }
 0x1ca   : > { %v2261_v35 = vunpack.c.l.b16 %v2064_v18  ;;  %v2081_v13 = vrot.slane %v2079_v4, 5  ;;  %v2087_v32 = vrot.slane %v2085_v23, 5  ;;  %v4501_v4 = vld [vmem:[%s4837_s15 + $0x88] sm:$0xf]  ;;  %v4649_v23 = vld [vmem:[%s4837_s15 + $0x60] sm:$0xff] }
 0x1cb   : > { %7956 = vst [vmem:[#allocation74_spill] sm:$0xff] %v5421_v33 }
 0x1cc   : > { %7957 = vst [vmem:[#allocation75_spill] sm:$0xff] %v5423_v54  ;;  %4428 = vmatmul.msk.bf16.gmra.mxu1 %vm288_vm1, %v4563_v38  ;;  %4526 = vmatmul.msk.bf16.gmra.mxu0 %vm288_vm1, %v2284_v2  ;;  %v2076_v2 = vshrl.u32 %v4497_v37, 16 }
 0x1cd   : > { %4444 = vmatmul.msk.bf16.gmra.mxu2 %vm288_vm1, %v4648_v7  ;;  %4461 = vmatmul.msk.bf16.gmra.mxu3 %vm288_vm1, %v4563_v38  ;;  %v2262_v7 = vunpack.c.l.b16 %v2074_v36  ;;  %v2092_v36 = vor.u32 %v2091_v55, %v2087_v32 }
 0x1ce   : > { %v2078_v33 = vrot.slane %v2076_v2, 4  ;;  %v2095_v2 = vshll.u32 %v4499_v0, 16 }
 0x1d0   : > { %v1147_v57 = vpop.f32.mrf.mxu2  ;;  %v1241_v52 = vpop.f32.mrf.mxu3  ;;  %v2097_v58 = vrot.slane %v2095_v2, 5 }
 0x1d1   : > { %v5436_v19 = vadd.f32 %v1147_v57, %v1055_v45  ;;  %v5438_v10 = vadd.f32 %v1333_v24, %v1241_v52  ;;  %v1057_v16 = vpop.f32.mrf.mxu1  ;;  %v1335_v38 = vpop.f32.mrf.mxu0  ;;  %v4564_v45 = vld [vmem:[%s4837_s15 + $0x6c] sm:$0xff]  ;;  %v2285_v57 = vpack.c.b16 %v2262_v7, %v2261_v35  ;;  %v2082_v24 = vor.u32 %v2081_v13, %v2078_v33 }
 0x1d2   : > { %v2109_v7 = vshll.u32 %v4501_v4, 16  ;;  %v2113_v13 = vshrl.u32 %v4501_v4, 16 }
 0x1d3   : > { %7958 = vst [vmem:[#allocation76_spill] sm:$0xff] %v5436_v19  ;;  %v2083_v33 = vrot.slane %v2082_v24, 4 }
 0x1d4   : > { %7959 = vst [vmem:[#allocation77_spill] sm:$0xff] %v5438_v10  ;;  %v4500_v10 = vld [vmem:[%s4837_s15 + $0x84] sm:$0xf]  ;;  %v2111_v4 = vrot.slane %v2109_v7, 5 }
 0x1d5   : > { %v2103_v35 = vshll.u32 %v4500_v10, 16 }
 0x1d7   : > { %v2105_v2 = vrot.slane %v2103_v35, 5 }
 0x1d8   : > { %v1149_v50 = vpop.f32.mrf.mxu2  ;;  %v1243_v37 = vpop.f32.mrf.mxu3 }
 0x1d9   : > { %v5442_v52 = vadd.f32 %v1149_v50, %v1057_v16  ;;  %v5444_v19 = vadd.f32 %v1335_v38, %v1243_v37  ;;  %v1513_v53 = vpop.f32.mrf.mxu1  ;;  %v2353_v18 = vpop.f32.mrf.mxu0  ;;  %v2093_v16 = vrot.slane %v2092_v36, 4  ;;  %v2100_v38 = vshrl.u32 %v4500_v10, 16 }
 0x1db   : > { %7960 = vst [vmem:[#allocation78_spill] sm:$0xff] %v5442_v52  ;;  %v2098_v24 = vsel %vm4932_vm4, %v2093_v16, %v2097_v58  ;;  %v2102_v36 = vrot.slane %v2100_v38, 4 }
 0x1dc   : > { %7961 = vst [vmem:[#allocation79_spill] sm:$0xff] %v5444_v19  ;;  %4429 = vmatmul.msk.bf16.gmra.mxu1 %vm288_vm1, %v4564_v45  ;;  %4527 = vmatmul.msk.bf16.gmra.mxu0 %vm288_vm1, %v2285_v57 }
 0x1dd   : > { %4445 = vmatmul.msk.bf16.gmra.mxu2 %vm288_vm1, %v4649_v23  ;;  %4462 = vmatmul.msk.bf16.gmra.mxu3 %vm288_vm1, %v4564_v45  ;;  %v2088_v45 = vsel %vm4932_vm4, %v2083_v33, %v2087_v32  ;;  %v2115_v23 = vrot.slane %v2113_v13, 4  ;;  %v2106_v54 = vor.u32 %v2105_v2, %v2102_v36  ;;  %v4565_v32 = vld [vmem:[%s4837_s15 + $0x78] sm:$0xff] }
 0x1de   : > { %v2263_v19 = vunpack.c.l.b16 %v2088_v45  ;;  %v4650_v45 = vld [vmem:[%s4837_s15 + $0x6c] sm:$0xff] }
 0x1df   : > { %v2107_v7 = vrot.slane %v2106_v54, 4 }
 0x1e0   : > { %v1605_v55 = vpop.f32.mrf.mxu2  ;;  %v1699_v0 = vpop.f32.mrf.mxu3 }
 0x1e1   : > { %v5453_v50 = vadd.f32 %v1605_v55, %v1513_v53  ;;  %v1779_v37 = vadd.f32 %v1699_v0, %v5125_v9  ;;  %v1515_v57 = vpop.f32.mrf.mxu1  ;;  %v2355_v52 = vpop.f32.mrf.mxu0  ;;  %v2264_v53 = vunpack.c.l.b16 %v2098_v24  ;;  %v4502_v55 = vld [vmem:[%s4837_s15 + $0x8c] sm:$0x1]  ;;  %v2116_v9 = vor.u32 %v2115_v23, %v2111_v4 }
 0x1e2   : > { %v2119_v0 = vshll.u32 %v4502_v55, 16 }
 0x1e3   : > { %7962 = vst [vmem:[#allocation80_spill] sm:$0xff] %v5453_v50  ;;  %v5460_v10 = vadd.f32 %v2353_v18, %v1779_v37  ;;  %v2286_v33 = vpack.c.b16 %v2264_v53, %v2263_v19  ;;  %v2117_v13 = vrot.slane %v2116_v9, 4  ;;  %v4504_v19 = vld [vmem:[%s4837_s15 + $0x94] sm:$0xf] }
 0x1e4   : > { %v2121_v37 = vrot.slane %v2119_v0, 5  ;;  %v2133_v36 = vshll.u32 %v4504_v19, 16  ;;  %v2137_v2 = vshrl.u32 %v4504_v19, 16 }
 0x1e5   : > { %7963 = vst [vmem:[#allocation81_spill] sm:$0xff] %v5460_v10  ;;  %v4566_v10 = vld [vmem:[%s4837_s15 + $0x84] sm:$0xff] }
 0x1e8   : > { %v1607_v46 = vpop.f32.mrf.mxu2  ;;  %v1701_v50 = vpop.f32.mrf.mxu3 }
 0x1e9   : > { %v5464_v16 = vadd.f32 %v1607_v46, %v1515_v57  ;;  %v1780_v18 = vadd.f32 %v1701_v50, %v5130_v44  ;;  %v1518_v58 = vpop.f32.mrf.mxu1  ;;  %v2358_v38 = vpop.f32.mrf.mxu0  ;;  %v4503_v46 = vld [vmem:[%s4837_s15 + $0x90] sm:$0xf]  ;;  %v2112_v44 = vsel %vm4932_vm4, %v2107_v7, %v2111_v4  ;;  %v2135_v7 = vrot.slane %v2133_v36, 5 }
 0x1ea   : > { %v2124_v57 = vshrl.u32 %v4503_v46, 16  ;;  %v2127_v24 = vshll.u32 %v4503_v46, 16  ;;  %v2265_v4 = vunpack.c.l.b16 %v2112_v44 }
 0x1eb   : > { %7964 = vst [vmem:[#allocation82_spill] sm:$0xff] %v5464_v16  ;;  %v5467_v35 = vadd.f32 %v2355_v52, %v1780_v18  ;;  %v2122_v52 = vsel %vm4932_vm4, %v2117_v13, %v2121_v37  ;;  %v2139_v13 = vrot.slane %v2137_v2, 4  ;;  %v4505_v37 = vld [vmem:[%s4837_s15 + $0x98] sm:$0x1] }
 0x1ec   : > { %4430 = vmatmul.msk.bf16.gmra.mxu1 %vm288_vm1, %v4565_v32  ;;  %4528 = vmatmul.msk.bf16.gmra.mxu0 %vm288_vm1, %v2286_v33  ;;  %v2126_v33 = vrot.slane %v2124_v57, 4  ;;  %v2129_v18 = vrot.slane %v2127_v24, 5 }
 0x1ed   : > { %7965 = vst [vmem:[#allocation83_spill] sm:$0xff] %v5467_v35  ;;  %4446 = vmatmul.msk.bf16.gmra.mxu2 %vm288_vm1, %v4650_v45  ;;  %4463 = vmatmul.msk.bf16.gmra.mxu3 %vm288_vm1, %v4565_v32  ;;  %v2266_v32 = vunpack.c.l.b16 %v2122_v52 }
 0x1ef   : > { %v2287_v19 = vpack.c.b16 %v2266_v32, %v2265_v4  ;;  %v4507_v4 = vld [vmem:[%s4837_s15 + $0xa0] sm:$0xf] }
 0x1f0   : > { %v1610_v54 = vpop.f32.mrf.mxu2  ;;  %v1704_v50 = vpop.f32.mrf.mxu3 }
 0x1f1   : > { %v5480_v23 = vadd.f32 %v1610_v54, %v1518_v58  ;;  %v1781_v53 = vadd.f32 %v1704_v50, %v5142_v39  ;;  %v1520_v55 = vpop.f32.mrf.mxu1  ;;  %v2360_v9 = vpop.f32.mrf.mxu0  ;;  %v2130_v58 = vor.u32 %v2129_v18, %v2126_v33  ;;  %v2140_v54 = vor.u32 %v2139_v13, %v2135_v7 }
 0x1f2   : > { %v2143_v39 = vshll.u32 %v4505_v37, 16 }
 0x1f3   : > { %7966 = vst [vmem:[#allocation84_spill] sm:$0xff] %v5480_v23  ;;  %v5483_v0 = vadd.f32 %v2358_v38, %v1781_v53  ;;  %v2131_v24 = vrot.slane %v2130_v58, 4  ;;  %v2141_v36 = vrot.slane %v2140_v54, 4  ;;  %v4651_v53 = vld [vmem:[%s4837_s15 + $0x78] sm:$0xff]  ;;  %v2161_v58 = vshrl.u32 %v4507_v4, 16 }
 0x1f4   : > { %v2145_v2 = vrot.slane %v2143_v39, 5 }
 0x1f5   : > { %7967 = vst [vmem:[#allocation85_spill] sm:$0xff] %v5483_v0 }
 0x1f6   : > { %v2146_v33 = vsel %vm4932_vm4, %v2141_v36, %v2145_v2  ;;  %v2163_v2 = vrot.slane %v2161_v58, 4  ;;  %v4652_v58 = vld [vmem:[%s4837_s15 + $0x84] sm:$0xff] }
 0x1f8   : > { %v1612_v45 = vpop.f32.mrf.mxu2  ;;  %v1706_v46 = vpop.f32.mrf.mxu3 }
 0x1f9   : > { %v5487_v50 = vadd.f32 %v1612_v45, %v1520_v55  ;;  %v1782_v38 = vadd.f32 %v1706_v46, %v5151_v28  ;;  %v1523_v44 = vpop.f32.mrf.mxu1  ;;  %v2363_v52 = vpop.f32.mrf.mxu0  ;;  %v4506_v55 = vld [vmem:[%s4837_s15 + $0x9c] sm:$0xf] }
 0x1fa   : > { %v2148_v18 = vshrl.u32 %v4506_v55, 16  ;;  %v2151_v13 = vshll.u32 %v4506_v55, 16 }
 0x1fb   : > { %7968 = vst [vmem:[#allocation86_spill] sm:$0xff] %v5487_v50  ;;  %v5490_v57 = vadd.f32 %v2360_v9, %v1782_v38  ;;  %v2136_v9 = vsel %vm4932_vm4, %v2131_v24, %v2135_v7  ;;  %v2268_v38 = vunpack.c.l.b16 %v2146_v33 }
 0x1fc   : > { %4431 = vmatmul.msk.bf16.gmra.mxu1 %vm288_vm1, %v4566_v10  ;;  %4529 = vmatmul.msk.bf16.gmra.mxu0 %vm288_vm1, %v2287_v19  ;;  %v2157_v19 = vshll.u32 %v4507_v4, 16  ;;  %v2267_v39 = vunpack.c.l.b16 %v2136_v9  ;;  %v2150_v7 = vrot.slane %v2148_v18, 4  ;;  %v2153_v24 = vrot.slane %v2151_v13, 5 }
 0x1fd   : > { %7969 = vst [vmem:[#allocation87_spill] sm:$0xff] %v5490_v57  ;;  %4447 = vmatmul.msk.bf16.gmra.mxu2 %vm288_vm1, %v4651_v53  ;;  %4464 = vmatmul.msk.bf16.gmra.mxu3 %vm288_vm1, %v4566_v10  ;;  %v4508_v53 = vld [vmem:[%s4837_s15 + $0xa4] sm:$0x1] }
 0x1fe   : > { %v2159_v36 = vrot.slane %v2157_v19, 5  ;;  %v2167_v18 = vshll.u32 %v4508_v53, 16  ;;  %v4510_v19 = vld [vmem:[%s4837_s15 + $0xac] sm:$0xf] }
 0x200   : > { %v1615_v32 = vpop.f32.mrf.mxu2  ;;  %v1709_v28 = vpop.f32.mrf.mxu3  ;;  %v2164_v33 = vor.u32 %v2163_v2, %v2159_v36  ;;  %v2185_v2 = vshrl.u32 %v4510_v19, 16 }
 0x201   : > { %v5503_v37 = vadd.f32 %v1615_v32, %v1523_v44  ;;  %v1783_v45 = vadd.f32 %v1709_v28, %v5167_v20  ;;  %v1525_v46 = vpop.f32.mrf.mxu1  ;;  %v2365_v10 = vpop.f32.mrf.mxu0  ;;  %v4567_v32 = vld [vmem:[%s4837_s15 + $0x90] sm:$0xff]  ;;  %v2288_v20 = vpack.c.b16 %v2268_v38, %v2267_v39  ;;  %v2154_v28 = vor.u32 %v2153_v24, %v2150_v7 }
 0x202   : > { %v2165_v39 = vrot.slane %v2164_v33, 4  ;;  %v2181_v24 = vshll.u32 %v4510_v19, 16 }
 0x203   : > { %7970 = vst [vmem:[#allocation88_spill] sm:$0xff] %v5503_v37  ;;  %v5506_v54 = vadd.f32 %v2363_v52, %v1783_v45  ;;  %v4509_v45 = vld [vmem:[%s4837_s15 + $0xa8] sm:$0xf] }
 0x204   : > { %v2172_v38 = vshrl.u32 %v4509_v45, 16  ;;  %v2175_v7 = vshll.u32 %v4509_v45, 16  ;;  %v2183_v19 = vrot.slane %v2181_v24, 5 }
 0x205   : > { %7971 = vst [vmem:[#allocation89_spill] sm:$0xff] %v5506_v54 }
 0x206   : > { %v2174_v33 = vrot.slane %v2172_v38, 4  ;;  %v2177_v45 = vrot.slane %v2175_v7, 5 }
 0x208   : > { %v1617_v44 = vpop.f32.mrf.mxu2  ;;  %v1711_v55 = vpop.f32.mrf.mxu3 }
 0x209   : > { %v5510_v37 = vadd.f32 %v1617_v44, %v1525_v46  ;;  %v1784_v52 = vadd.f32 %v1711_v55, %v5172_v12  ;;  %v1528_v4 = vpop.f32.mrf.mxu1  ;;  %v2368_v9 = vpop.f32.mrf.mxu0  ;;  %v2155_v46 = vrot.slane %v2154_v28, 4  ;;  %v2169_v12 = vrot.slane %v2167_v18, 5 }
 0x20b   : > { %7972 = vst [vmem:[#allocation90_spill] sm:$0xff] %v5510_v37  ;;  %v5513_v13 = vadd.f32 %v2365_v10, %v1784_v52  ;;  %v2170_v28 = vsel %vm4932_vm4, %v2165_v39, %v2169_v12 }
 0x20c   : > { %4432 = vmatmul.msk.bf16.gmra.mxu1 %vm288_vm1, %v4567_v32  ;;  %4530 = vmatmul.msk.bf16.gmra.mxu0 %vm288_vm1, %v2288_v20 }
 0x20d   : > { %7973 = vst [vmem:[#allocation91_spill] sm:$0xff] %v5513_v13  ;;  %4448 = vmatmul.msk.bf16.gmra.mxu2 %vm288_vm1, %v4652_v58  ;;  %4465 = vmatmul.msk.bf16.gmra.mxu3 %vm288_vm1, %v4567_v32  ;;  %v2160_v32 = vsel %vm4932_vm4, %v2155_v46, %v2159_v36  ;;  %v2187_v58 = vrot.slane %v2185_v2, 4  ;;  %v4568_v36 = vld [vmem:[%s4837_s15 + $0x9c] sm:$0xff] }
 0x20e   : > { %v2269_v37 = vunpack.c.l.b16 %v2160_v32  ;;  %v4653_v32 = vld [vmem:[%s4837_s15 + $0x90] sm:$0xff] }
 0x210   : > { %v1620_v10 = vpop.f32.mrf.mxu2  ;;  %v1714_v53 = vpop.f32.mrf.mxu3 }
 0x211   : > { %v5522_v44 = vadd.f32 %v1620_v10, %v1528_v4  ;;  %v1785_v55 = vadd.f32 %v1714_v53, %v5188_v21  ;;  %v1530_v20 = vpop.f32.mrf.mxu1  ;;  %v2370_v52 = vpop.f32.mrf.mxu0  ;;  %v2270_v4 = vunpack.c.l.b16 %v2170_v28  ;;  %v4511_v10 = vld [vmem:[%s4837_s15 + $0xb0] sm:$0x1]  ;;  %v2188_v21 = vor.u32 %v2187_v58, %v2183_v19 }
 0x212   : > { %v2191_v53 = vshll.u32 %v4511_v10, 16 }
 0x213   : > { %7974 = vst [vmem:[#allocation92_spill] sm:$0xff] %v5522_v44  ;;  %v5529_v18 = vadd.f32 %v2368_v9, %v1785_v55  ;;  %v2178_v44 = vor.u32 %v2177_v45, %v2174_v33  ;;  %v2289_v46 = vpack.c.b16 %v2270_v4, %v2269_v37  ;;  %v2189_v2 = vrot.slane %v2188_v21, 4  ;;  %v4512_v37 = vld [vmem:[%s4837_s15 + $0xb4] sm:$0xf] }
 0x214   : > { %v2193_v55 = vrot.slane %v2191_v53, 5  ;;  %v2199_v28 = vshll.u32 %v4512_v37, 16 }
 0x215   : > { %7975 = vst [vmem:[#allocation93_spill] sm:$0xff] %v5529_v18  ;;  %v2179_v24 = vrot.slane %v2178_v44, 4 }
 0x218   : > { %v1622_v13 = vpop.f32.mrf.mxu2  ;;  %v1716_v54 = vpop.f32.mrf.mxu3 }
 0x219   : > { %v5533_v39 = vadd.f32 %v1622_v13, %v1530_v20  ;;  %v1786_v9 = vadd.f32 %v1716_v54, %v5193_v29  ;;  %v1533_v12 = vpop.f32.mrf.mxu1  ;;  %v2373_v38 = vpop.f32.mrf.mxu0  ;;  %v4513_v13 = vld [vmem:[%s4837_s15 + $0xb8] sm:$0xf]  ;;  %v2184_v29 = vsel %vm4932_vm4, %v2179_v24, %v2183_v19  ;;  %v2194_v54 = vsel %vm4932_vm4, %v2189_v2, %v2193_v55  ;;  %v4514_v55 = vld [vmem:[%s4837_s15 + $0xbc] sm:$0x1] }
 0x21a   : > { %v2205_v33 = vshll.u32 %v4513_v13, 16  ;;  %v2209_v45 = vshrl.u32 %v4513_v13, 16  ;;  %v2271_v19 = vunpack.c.l.b16 %v2184_v29 }
 0x21b   : > { %7976 = vst [vmem:[#allocation94_spill] sm:$0xff] %v5533_v39  ;;  %v5536_v7 = vadd.f32 %v2370_v52, %v1786_v9  ;;  %v2196_v52 = vshrl.u32 %v4512_v37, 16  ;;  %v2201_v9 = vrot.slane %v2199_v28, 5  ;;  %v4569_v39 = vld [vmem:[%s4837_s15 + $0xa8] sm:$0xff] }
 0x21c   : > { %4433 = vmatmul.msk.bf16.gmra.mxu1 %vm288_vm1, %v4568_v36  ;;  %4531 = vmatmul.msk.bf16.gmra.mxu0 %vm288_vm1, %v2289_v46  ;;  %v2207_v24 = vrot.slane %v2205_v33, 5  ;;  %v2211_v2 = vrot.slane %v2209_v45, 4 }
 0x21d   : > { %7977 = vst [vmem:[#allocation95_spill] sm:$0xff] %v5536_v7  ;;  %4449 = vmatmul.msk.bf16.gmra.mxu2 %vm288_vm1, %v4653_v32  ;;  %4466 = vmatmul.msk.bf16.gmra.mxu3 %vm288_vm1, %v4568_v36  ;;  %v2272_v36 = vunpack.c.l.b16 %v2194_v54  ;;  %v2198_v46 = vrot.slane %v2196_v52, 4 }
 0x21f   : > { %v2290_v13 = vpack.c.b16 %v2272_v36, %v2271_v19  ;;  %v4516_v19 = vld [vmem:[%s4837_s15 + $0xc4] sm:$0xf] }
 0x220   : > { %v1625_v44 = vpop.f32.mrf.mxu2  ;;  %v1719_v20 = vpop.f32.mrf.mxu3 }
 0x221   : > { %v5549_v58 = vadd.f32 %v1625_v44, %v1533_v12  ;;  %v1787_v4 = vadd.f32 %v1719_v20, %v5205_v47  ;;  %v1535_v10 = vpop.f32.mrf.mxu1  ;;  %v2375_v21 = vpop.f32.mrf.mxu0  ;;  %v2202_v12 = vor.u32 %v2201_v9, %v2198_v46  ;;  %v2212_v44 = vor.u32 %v2211_v2, %v2207_v24 }
 0x222   : > { %v2215_v47 = vshll.u32 %v4514_v55, 16 }
 0x223   : > { %7978 = vst [vmem:[#allocation96_spill] sm:$0xff] %v5549_v58  ;;  %v5552_v53 = vadd.f32 %v2373_v38, %v1787_v4  ;;  %v2203_v28 = vrot.slane %v2202_v12, 4  ;;  %v2213_v33 = vrot.slane %v2212_v44, 4  ;;  %v4654_v4 = vld [vmem:[%s4837_s15 + $0x9c] sm:$0xff]  ;;  %v2233_v12 = vshrl.u32 %v4516_v19, 16 }
 0x224   : > { %v2217_v45 = vrot.slane %v2215_v47, 5 }
 0x225   : > { %7979 = vst [vmem:[#allocation97_spill] sm:$0xff] %v5552_v53 }
 0x226   : > { %v2218_v46 = vsel %vm4932_vm4, %v2213_v33, %v2217_v45  ;;  %v2235_v33 = vrot.slane %v2233_v12, 4  ;;  %v4517_v45 = vld [vmem:[%s4837_s15 + $0xc8] sm:$0x1] }
 0x228   : > { %v1627_v32 = vpop.f32.mrf.mxu2  ;;  %v1721_v37 = vpop.f32.mrf.mxu3 }
 0x229   : > { %v5556_v20 = vadd.f32 %v1627_v32, %v1535_v10  ;;  %v1788_v38 = vadd.f32 %v1721_v37, %v5214_v34  ;;  %v1538_v29 = vpop.f32.mrf.mxu1  ;;  %v2378_v54 = vpop.f32.mrf.mxu0  ;;  %v4515_v10 = vld [vmem:[%s4837_s15 + $0xc0] sm:$0xf] }
 0x22a   : > { %v2220_v9 = vshrl.u32 %v4515_v10, 16  ;;  %v2223_v2 = vshll.u32 %v4515_v10, 16 }
 0x22b   : > { %7980 = vst [vmem:[#allocation98_spill] sm:$0xff] %v5556_v20  ;;  %v5559_v52 = vadd.f32 %v2375_v21, %v1788_v38  ;;  %v2208_v21 = vsel %vm4932_vm4, %v2203_v28, %v2207_v24  ;;  %v2274_v38 = vunpack.c.l.b16 %v2218_v46 }
 0x22c   : > { %4434 = vmatmul.msk.bf16.gmra.mxu1 %vm288_vm1, %v4569_v39  ;;  %4532 = vmatmul.msk.bf16.gmra.mxu0 %vm288_vm1, %v2290_v13  ;;  %v2229_v13 = vshll.u32 %v4516_v19, 16  ;;  %v2273_v47 = vunpack.c.l.b16 %v2208_v21  ;;  %v2222_v24 = vrot.slane %v2220_v9, 4  ;;  %v2225_v28 = vrot.slane %v2223_v2, 5  ;;  %v4655_v9 = vld [vmem:[%s4837_s15 + $0xa8] sm:$0xff] }
 0x22d   : > { %7981 = vst [vmem:[#allocation99_spill] sm:$0xff] %v5559_v52  ;;  %4450 = vmatmul.msk.bf16.gmra.mxu2 %vm288_vm1, %v4654_v4  ;;  %4467 = vmatmul.msk.bf16.gmra.mxu3 %vm288_vm1, %v4569_v39  ;;  %v2239_v21 = vshll.u32 %v4517_v45, 16 }
 0x22e   : > { %v2231_v4 = vrot.slane %v2229_v13, 5  ;;  %v2226_v20 = vor.u32 %v2225_v28, %v2222_v24 }
 0x22f   : > { %v2241_v13 = vrot.slane %v2239_v21, 5 }
 0x230   : > { %v1630_v36 = vpop.f32.mrf.mxu2  ;;  %v1724_v34 = vpop.f32.mrf.mxu3  ;;  %v2227_v2 = vrot.slane %v2226_v20, 4 }
 0x231   : > { %v5572_v55 = vadd.f32 %v1630_v36, %v1538_v29  ;;  %v1789_v32 = vadd.f32 %v1724_v34, %v5230_v17  ;;  %v1540_v37 = vpop.f32.mrf.mxu1  ;;  %v2380_v39 = vpop.f32.mrf.mxu0  ;;  %v4570_v36 = vld [vmem:[%s4837_s15 + $0xb4] sm:$0xff] }
 0x233   : > { %7982 = vst [vmem:[#allocation100_spill] sm:$0xff] %v5572_v55  ;;  %v5575_v44 = vadd.f32 %v2378_v54, %v1789_v32  ;;  %v2291_v55 = vpack.c.b16 %v2274_v38, %v2273_v47  ;;  %v2236_v32 = vor.u32 %v2235_v33, %v2231_v4 }
 0x235   : > { %7983 = vst [vmem:[#allocation101_spill] sm:$0xff] %v5575_v44 }
 0x238   : > { %v1632_v10 = vpop.f32.mrf.mxu2  ;;  %v1726_v29 = vpop.f32.mrf.mxu3 }
 0x239   : > { %v5579_v17 = vadd.f32 %v1632_v10, %v1540_v37  ;;  %v1790_v34 = vadd.f32 %v1726_v29, %v5235_v1  ;;  %v1543_v19 = vpop.f32.mrf.mxu1  ;;  %v2383_v54 = vpop.f32.mrf.mxu0  ;;  %v2237_v37 = vrot.slane %v2236_v32, 4 }
 0x23b   : > { %7984 = vst [vmem:[#allocation102_spill] sm:$0xff] %v5579_v17  ;;  %v5582_v46 = vadd.f32 %v2380_v39, %v1790_v34  ;;  %v2242_v28 = vsel %vm4932_vm4, %v2237_v37, %v2241_v13 }
 0x23c   : > { %4435 = vmatmul.msk.bf16.gmra.mxu1 %vm288_vm1, %v4570_v36  ;;  %4533 = vmatmul.msk.bf16.gmra.mxu0 %vm288_vm1, %v2291_v55  ;;  %v2232_v55 = vsel %vm4932_vm4, %v2227_v2, %v2231_v4  ;;  %v2276_v45 = vunpack.c.l.b16 %v2242_v28 }
 0x23d   : > { %7985 = vst [vmem:[#allocation103_spill] sm:$0xff] %v5582_v46  ;;  %4451 = vmatmul.msk.bf16.gmra.mxu2 %vm288_vm1, %v4655_v9  ;;  %4468 = vmatmul.msk.bf16.gmra.mxu3 %vm288_vm1, %v4570_v36  ;;  %v2275_v20 = vunpack.c.l.b16 %v2232_v55  ;;  %v4571_v36 = vld [vmem:[%s4837_s15 + $0xc0] sm:$0xff]  ;;  %s4076_s15 = scalar_lea.hbm %s7657_s2, %s4572_s6 }
 0x23e   : > { %s4079_s12 = sshll.u32 %s4076_s15, 4  ;;  %s4080_s12 = int_to_ptr.hbm [resolvable:$true] %s4079_s12 }
 0x23f   : > { %v2292_v34 = vpack.c.b16 %v2276_v45, %v2275_v20  ;;  %v2466_v45 = vsel %vm2465_vm5, %v4995_v56, 0.0  ;;  %v8015_v56 = vld [vmem:[#allocation23_spill] sm:$0xff]  ;;  %s4671_s20 = sshra.s32 %s4080_s12, 4  ;;  %s4672_s20 = int_to_ptr.hbm [resolvable:$true] %s4671_s20 }
 0x240   : > { %v1635_v1 = vpop.f32.mrf.mxu2  ;;  %v1729_v12 = vpop.f32.mrf.mxu3  ;;  %s4673_s23 = scalar_lea.hbm %s4672_s20, 256  ;;  %p4678_p1 = scmp.lt.s32.totalorder %s4672_s20, %s7657_s2 }
 0x241   : > { %v5589_v47 = vadd.f32 %v1635_v1, %v1543_v19  ;;  %v1791_v39 = vadd.f32 %v1729_v12, %v5250_v22  ;;  %v1545_v38 = vpop.f32.mrf.mxu1  ;;  %v2385_v24 = vpop.f32.mrf.mxu0  ;;  %p4674_p12 = scmp.ne.s32.totalorder %s4672_s20, %s4673_s23  ;;  %p4679_p2 = scmp.lt.s32.totalorder %s4677_s26, %s4673_s23 }
 0x243   : > { %7986 = vst [vmem:[#allocation104_spill] sm:$0xff] %v5589_v47  ;;  %v5596_v33 = vadd.f32 %v2383_v54, %v1791_v39  ;;  %p4675_p13 = pnand %p4674_p12, %p4797_p4  ;;  %p4680_p3 = por %p4679_p2, %p4678_p1 }
 0x245   : > { %7987 = vst [vmem:[#allocation105_spill] sm:$0xff] %v5596_v33  ;;  %p4676_p0 = pneg %p4675_p13 }
 0x247   : > { %p4681_p5 = pnand %p4680_p3, %p4676_p0 }
 0x248   : > { %v1637_v10 = vpop.f32.mrf.mxu2  ;;  %v1731_v29 = vpop.f32.mrf.mxu3 }
 0x249   : > { %v5599_v19 = vadd.f32 %v1637_v10, %v1545_v38  ;;  %v1792_v22 = vadd.f32 %v1731_v29, %v5255_v3  ;;  %v1548_v32 = vpop.f32.mrf.mxu1  ;;  %v2388_v21 = vpop.f32.mrf.mxu0  ;;  %v2469_v10 = vsel %vm2465_vm5, %v5024_v30, 0.0 }
 0x24b   : > { %7988 = vst [vmem:[#allocation106_spill] sm:$0xff] %v5599_v19  ;;  %v5602_v9 = vadd.f32 %v2385_v24, %v1792_v22 }
 0x24c   : > { %4436 = vmatmul.msk.bf16.gmra.mxu1 %vm288_vm1, %v4571_v36  ;;  %4534 = vmatmul.msk.bf16.gmra.mxu0 %vm288_vm1, %v2292_v34 }
 0x24d   : > { %7989 = vst [vmem:[#allocation107_spill] sm:$0xff] %v5602_v9  ;;  %4452 = vmatmul.msk.bf16.gmra.mxu2 %vm288_vm1, %v4656_v51  ;;  %4469 = vmatmul.msk.bf16.gmra.mxu3 %vm288_vm1, %v4571_v36  ;;  %v2471_v51 = vsel %vm2465_vm5, %v5044_v40, 0.0  ;;  %v8013_v40 = vld [vmem:[#allocation42_spill] sm:$0xff] }
 0x24e   : > { %v2544_v30 = vsel %vm2465_vm5, %v8013_v40, 0.0 }
 0x250   : > { %v1640_v4 = vpop.f32.mrf.mxu2  ;;  %v1734_v54 = vpop.f32.mrf.mxu3 }
 0x251   : > { %v5609_v2 = vadd.f32 %v1640_v4, %v1548_v32  ;;  %v1793_v37 = vadd.f32 %v1734_v54, %v5266_v41  ;;  %v1550_v3 = vpop.f32.mrf.mxu1  ;;  %v2390_v13 = vpop.f32.mrf.mxu0  ;;  %v2467_v41 = vsel %vm2465_vm5, %v5015_v11, 0.0  ;;  %v2676_v11 = vsel %vm2465_vm5, %v5467_v35, 0.0 }
 0x252   : > { %v2468_v34 = vadd.f32 %v2467_v41, %v2466_v45  ;;  %v2678_v35 = vsel %vm2465_vm5, %v5483_v0, 0.0 }
 0x253   : > { %7990 = vst [vmem:[#allocation108_spill] sm:$0xff] %v5609_v2  ;;  %v5612_v1 = vadd.f32 %v2388_v21, %v1793_v37  ;;  %v2473_v37 = vsel %vm2465_vm5, %v5053_v59, 0.0  ;;  %v8012_v59 = vld [vmem:[#allocation19_spill] sm:$0xff] }
 0x254   : > { %v2470_v4 = vadd.f32 %v2469_v10, %v2468_v34 }
 0x255   : > { %7991 = vst [vmem:[#allocation109_spill] sm:$0xff] %v5612_v1 }
 0x258   : > { %v1642_v12 = vpop.f32.mrf.mxu2  ;;  %v1736_v39 = vpop.f32.mrf.mxu3 }
 0x259   : > { %v5614_v38 = vadd.f32 %v1642_v12, %v1550_v3  ;;  %v1794_v24 = vadd.f32 %v1736_v39, %v5276_v62  ;;  %v1553_v55 = vpop.f32.mrf.mxu1  ;;  %v2393_v28 = vpop.f32.mrf.mxu0  ;;  %v2472_v3 = vadd.f32 %v2471_v51, %v2470_v4  ;;  %v2477_v39 = vsel %vm2465_vm5, %v5082_v48, 0.0 }
 0x25a   : > { %v2481_v51 = vsel %vm2465_vm5, %v4997_v14, 0.0 }
 0x25b   : > { %7992 = vst [vmem:[#allocation110_spill] sm:$0xff] %v5614_v38  ;;  %v5617_v20 = vadd.f32 %v2390_v13, %v1794_v24  ;;  %v2475_v13 = vsel %vm2465_vm5, %v5069_v26, 0.0  ;;  %v2474_v12 = vadd.f32 %v2473_v37, %v2472_v3  ;;  %v8011_v26 = vld [vmem:[#allocation41_spill] sm:$0xff] }
 0x25d   : > { %7993 = vst [vmem:[#allocation111_spill] sm:$0xff] %v5617_v20 }
 0x260   : > { %v1645_v29 = vpop.f32.mrf.mxu2  ;;  %v1739_v36 = vpop.f32.mrf.mxu3 }
 0x261   : > { %v5625_v22 = vadd.f32 %v1645_v29, %v1553_v55  ;;  %v1795_v62 = vadd.f32 %v1739_v36, %v5291_v61  ;;  %v1555_v32 = vpop.f32.mrf.mxu1  ;;  %v2395_v21 = vpop.f32.mrf.mxu0  ;;  %v2476_v55 = vadd.f32 %v2475_v13, %v2474_v12  ;;  %v2479_v29 = vsel %vm2465_vm5, %v5102_v42, 0.0 }
 0x263   : > { %7994 = vst [vmem:[#allocation112_spill] sm:$0xff] %v5625_v22  ;;  %v5630_v54 = vadd.f32 %v2393_v28, %v1795_v62  ;;  %v2478_v36 = vadd.f32 %v2477_v39, %v2476_v55  ;;  %v2483_v39 = vsel %vm2465_vm5, %v5017_v6, 0.0  ;;  %v8006_v6 = vld [vmem:[#allocation15_spill] sm:$0xff] }
 0x265   : > { %7995 = vst [vmem:[#allocation113_spill] sm:$0xff] %v5630_v54  ;;  %v2480_v62 = vadd.f32 %v2479_v29, %v2478_v36 }
 0x267   : > { %v2482_v3 = vadd.f32 %v2481_v51, %v2480_v62 }
 0x268   : > { %v1647_v61 = vpop.f32.mrf.mxu2  ;;  %v1741_v24 = vpop.f32.mrf.mxu3 }
 0x269   : > { %v5638_v45 = vadd.f32 %v1647_v61, %v1555_v32  ;;  %v1796_v41 = vadd.f32 %v1741_v24, %v5297_v5  ;;  %v1558_v28 = vpop.f32.mrf.mxu1  ;;  %v2398_v10 = vpop.f32.mrf.mxu0  ;;  %v2485_v24 = vsel %vm2465_vm5, %v5026_v31, 0.0 }
 0x26b   : > { %7996 = vst [vmem:[#allocation114_spill] sm:$0xff] %v5638_v45  ;;  %v5643_v34 = vadd.f32 %v2395_v21, %v1796_v41  ;;  %v2484_v21 = vadd.f32 %v2483_v39, %v2482_v3 }
 0x26d   : > { %7997 = vst [vmem:[#allocation115_spill] sm:$0xff] %v5643_v34  ;;  %v2486_v29 = vadd.f32 %v2485_v24, %v2484_v21  ;;  %v2491_v24 = vsel %vm2465_vm5, %v5071_v27, 0.0 }
 0x270   : > { %v1650_v4 = vpop.f32.mrf.mxu2  ;;  %v1744_v37 = vpop.f32.mrf.mxu3 }
 0x271   : > { %v5647_v13 = vadd.f32 %v1650_v4, %v1558_v28  ;;  %v1797_v32 = vadd.f32 %v1744_v37, %v5312_v63  ;;  %v1560_v5 = vpop.f32.mrf.mxu1  ;;  %v2400_v12 = vpop.f32.mrf.mxu0  ;;  %v2489_v37 = vsel %vm2465_vm5, %v5055_v60, 0.0  ;;  %v8003_v60 = vld [vmem:[#allocation38_spill] sm:$0xff] }
 0x273   : > { %v5650_v61 = vadd.f32 %v2398_v10, %v1797_v32  ;;  %v2487_v10 = vsel %vm2465_vm5, %v5046_v43, 0.0 }
 0x274   : > { %v2488_v4 = vadd.f32 %v2487_v10, %v2486_v29 }
 0x275   : > { %7998 = vst [vmem:[#allocation116_spill] sm:$0xff] %v5650_v61 }
 0x276   : > { %v2490_v39 = vadd.f32 %v2489_v37, %v2488_v4  ;;  %v8001_v37 = vld [vmem:[#allocation7_spill] sm:$0xff] }
 0x278   : > { %v1652_v55 = vpop.f32.mrf.mxu2  ;;  %v1746_v41 = vpop.f32.mrf.mxu3 }
 0x279   : > { %v5656_v36 = vadd.f32 %v1652_v55, %v1560_v5  ;;  %v1798_v28 = vadd.f32 %v1746_v41, %v5318_v25  ;;  %v1563_v62 = vpop.f32.mrf.mxu1  ;;  %v2403_v63 = vpop.f32.mrf.mxu0  ;;  %v2492_v55 = vadd.f32 %v2491_v24, %v2490_v39  ;;  %v2493_v41 = vsel %vm2465_vm5, %v5084_v49, 0.0 }
 0x27b   : > { %v5659_v51 = vadd.f32 %v2400_v12, %v1798_v28 }
 0x27d   : > { %7999 = vst [vmem:[#allocation117_spill] sm:$0xff] %v5659_v51 }
 0x280   : > { %v1655_v3 = vpop.f32.mrf.mxu2  ;;  %v1749_v32 = vpop.f32.mrf.mxu3 }
 0x281   : > { %v5665_v31 = vadd.f32 %v1655_v3, %v1563_v62  ;;  %v1799_v5 = vadd.f32 %v1749_v32, %v5329_v15  ;;  %v5668_v21 = vpop.f32.mrf.mxu1  ;;  %v5670_v25 = vpop.f32.mrf.mxu0  ;;  %v2494_v62 = vadd.f32 %v2493_v41, %v2492_v55  ;;  %v2497_v3 = vsel %vm2465_vm5, %v8001_v37, 0.0  ;;  %v8002_v55 = vld [vmem:[#allocation11_spill] sm:$0xff] }
 0x282   : > { %v2499_v41 = vsel %vm2465_vm5, %v8002_v55, 0.0  ;;  %v8005_v37 = vld [vmem:[#allocation39_spill] sm:$0xff]  ;;  %v8008_v55 = vld [vmem:[#allocation40_spill] sm:$0xff] }
 0x283   : > { %v5672_v12 = vadd.f32 %v2403_v63, %v1799_v5  ;;  %v2495_v63 = vsel %vm2465_vm5, %v5104_v8, 0.0  ;;  %v2536_v8 = vsel %vm2465_vm5, %v8003_v60, 0.0  ;;  %v2538_v43 = vsel %vm2465_vm5, %v8005_v37, 0.0 }
 0x284   : > { %v2496_v4 = vadd.f32 %v2495_v63, %v2494_v62  ;;  %v8004_v62 = vld [vmem:[#allocation37_spill] sm:$0xff]  ;;  %v2542_v37 = vsel %vm2465_vm5, %v8011_v26, 0.0  ;;  %v2606_v26 = vsel %vm2465_vm5, %v5464_v16, 0.0  ;;  %v8021_v16 = vld [vmem:[#allocation80_spill] sm:$0xff] }
 0x285   : > { %8000 = vst [vmem:[#allocation118_spill] sm:$0xff] %v5672_v12  ;;  %v2535_v63 = vsel %vm2465_vm5, %v8004_v62, 0.0  ;;  %v2605_v40 = vsel %vm2465_vm5, %v8021_v16, 0.0  ;;  %v8024_v16 = vld [vmem:[#allocation46_spill] sm:$0xff] }
 0x286   : > { %v2498_v5 = vadd.f32 %v2497_v3, %v2496_v4  ;;  %v2501_v4 = vsel %vm2465_vm5, %v8006_v6, 0.0  ;;  %v2537_v3 = vadd.f32 %v2536_v8, %v2535_v63  ;;  %v2503_v6 = vsel %vm2465_vm5, %v8012_v59, 0.0 }
 0x288   : > { %v5678_v29 = vpop.f32.mrf.mxu2  ;;  %v5680_v28 = vpop.f32.mrf.mxu3  ;;  %v2500_v27 = vadd.f32 %v2499_v41, %v2498_v5  ;;  %v2540_v5 = vsel %vm2465_vm5, %v8008_v55, 0.0  ;;  %v2539_v62 = vadd.f32 %v2538_v43, %v2537_v3  ;;  %v2505_v43 = vsel %vm2465_vm5, %v8015_v56, 0.0 }
 0x289   : > { %v5682_v10 = vpop.f32.mrf.mxu1  ;;  %v5684_v15 = vpop.f32.mrf.mxu0 }
 0x28a   : > { %v2502_v48 = vadd.f32 %v2501_v4, %v2500_v27  ;;  %v2541_v8 = vadd.f32 %v2540_v5, %v2539_v62  ;;  %v8014_v4 = vld [vmem:[#allocation43_spill] sm:$0xff]  ;;  %v8017_v62 = vld [vmem:[#allocation44_spill] sm:$0xff]  ;;  %v8018_v5 = vld [vmem:[#allocation81_spill] sm:$0xff] }
 0x28b   : > { %v2546_v55 = vsel %vm2465_vm5, %v8014_v4, 0.0 }
 0x28c   : > { %v2504_v63 = vadd.f32 %v2503_v6, %v2502_v48  ;;  %v2543_v27 = vadd.f32 %v2542_v37, %v2541_v8  ;;  %v2548_v37 = vsel %vm2465_vm5, %v8017_v62, 0.0  ;;  %v2675_v8 = vsel %vm2465_vm5, %v8018_v5, 0.0 }
 0x28d   : > { %v2677_v56 = vadd.f32 %v2676_v11, %v2675_v8  ;;  %v2680_v5 = vsel %vm2465_vm5, %v5490_v57, 0.0  ;;  %v2552_v11 = vsel %vm2465_vm5, %v8024_v16, 0.0  ;;  %v8028_v57 = vld [vmem:[#allocation91_spill] sm:$0xff]  ;;  %v8029_v16 = vld [vmem:[#allocation90_spill] sm:$0xff] }
 0x28e   : > { %v2545_v3 = vadd.f32 %v2544_v30, %v2543_v27  ;;  %v2506_v48 = vadd.f32 %v2505_v43, %v2504_v63  ;;  %v2608_v63 = vsel %vm2465_vm5, %v5480_v23, 0.0  ;;  %v8022_v43 = vld [vmem:[#allocation45_spill] sm:$0xff] }
 0x28f   : > { %v2550_v62 = vsel %vm2465_vm5, %v8022_v43, 0.0  ;;  %v8025_v23 = vld [vmem:[#allocation89_spill] sm:$0xff] }
 0x290   : > { %v5690_v32 = vpop.f32.mrf.mxu2  ;;  %v5692_v39 = vpop.f32.mrf.mxu3  ;;  %v2547_v27 = vadd.f32 %v2546_v55, %v2545_v3  ;;  %v8023_v55 = vld [vmem:[#allocation27_spill] sm:$0xff] }
 0x291   : > { %v5694_v24 = vpop.f32.mrf.mxu1  ;;  %v5696_v49 = vpop.f32.mrf.mxu0  ;;  %v2507_v3 = vsel %vm2465_vm5, %v8023_v55, 0.0 }
 0x292   : > { %v2549_v0 = vadd.f32 %v2548_v37, %v2547_v27  ;;  %v2508_v43 = vadd.f32 %v2507_v3, %v2506_v48 }
 0x298   : > { %v5708_v14 = vpop.f32.mrf.mxu2  ;;  %v5710_v42 = vpop.f32.mrf.mxu3 }
 0x299   : > { %8007 = vst [vmem:[#allocation119_spill] sm:$0xff] %v5708_v14  ;;  %v5714_v41 = vpop.f32.mrf.mxu1  ;;  %v5716_v60 = vpop.f32.mrf.mxu0 }
 0x29a   : > { %8009 = vst [vmem:[#allocation120_spill] sm:$0xff] %v5714_v41  ;;  %v2679_v41 = vadd.f32 %v2678_v35, %v2677_v56  ;;  %v8027_v56 = vld [vmem:[#allocation47_spill] sm:$0xff] }
 0x29b   : > { %8010 = vst [vmem:[#allocation121_spill] sm:$0xff] %v5716_v60  ;;  %v8026_v60 = vld [vmem:[#allocation88_spill] sm:$0xff]  ;;  %v2554_v35 = vsel %vm2465_vm5, %v8027_v56, 0.0 }
 0x29c   : > { %v2612_v37 = vsel %vm2465_vm5, %v8026_v60, 0.0 }
 0x2a0   : > { %v5732_v59 = vpop.f32.mrf.mxu2  ;;  %v5734_v6 = vpop.f32.mrf.mxu3 }
 0x2a1   : > { %8016 = vst [vmem:[#allocation122_spill] sm:$0xff] %v5732_v59  ;;  %v5742_v4 = vpop.f32.mrf.mxu1  ;;  %v5744_v30 = vpop.f32.mrf.mxu0  ;;  %v2607_v59 = vadd.f32 %v2606_v26, %v2605_v40  ;;  %v2551_v40 = vadd.f32 %v2550_v62, %v2549_v0  ;;  %v2681_v26 = vadd.f32 %v2680_v5, %v2679_v41  ;;  %v8030_v0 = vld [vmem:[#allocation31_spill] sm:$0xff]  ;;  %v8031_v62 = vld [vmem:[#allocation48_spill] sm:$0xff] }
 0x2a2   : > { %8019 = vst [vmem:[#allocation123_spill] sm:$0xff] %v5742_v4  ;;  %v2610_v4 = vsel %vm2465_vm5, %v5487_v50, 0.0  ;;  %v2684_v50 = vsel %vm2465_vm5, %v8028_v57, 0.0  ;;  %v2509_v41 = vsel %vm2465_vm5, %v8030_v0, 0.0  ;;  %v2556_v5 = vsel %vm2465_vm5, %v8031_v62, 0.0  ;;  %v8033_v57 = vld [vmem:[#allocation92_spill] sm:$0xff] }
 0x2a3   : > { %8020 = vst [vmem:[#allocation124_spill] sm:$0xff] %v5744_v30  ;;  %v2609_v8 = vadd.f32 %v2608_v63, %v2607_v59  ;;  %v2682_v30 = vsel %vm2465_vm5, %v8025_v23, 0.0  ;;  %v2553_v55 = vadd.f32 %v2552_v11, %v2551_v40  ;;  %v2614_v59 = vsel %vm2465_vm5, %v8029_v16, 0.0  ;;  %v8034_v16 = vld [vmem:[#allocation49_spill] sm:$0xff] }
 0x2a4   : > { %v2683_v14 = vadd.f32 %v2682_v30, %v2681_v26  ;;  %v2510_v11 = vadd.f32 %v2509_v41, %v2508_v43  ;;  %v2616_v23 = vsel %vm2465_vm5, %v8033_v57, 0.0  ;;  %v2558_v60 = vsel %vm2465_vm5, %v8034_v16, 0.0  ;;  %v8044_v16 = vld [vmem:[#allocation12_spill] sm:$0xff] }
 0x2a5   : > { %v2611_v27 = vadd.f32 %v2610_v4, %v2609_v8  ;;  %v2686_v4 = vsel %vm2465_vm5, %v5529_v18, 0.0  ;;  %v2555_v40 = vadd.f32 %v2554_v35, %v2553_v55  ;;  %v8035_v18 = vld [vmem:[#allocation94_spill] sm:$0xff]  ;;  %v2690_v35 = vsel %vm2465_vm5, %v5552_v53, 0.0 }
 0x2a6   : > { %v2685_v26 = vadd.f32 %v2684_v50, %v2683_v14  ;;  %v2618_v0 = vsel %vm2465_vm5, %v8035_v18, 0.0  ;;  %v8037_v55 = vld [vmem:[#allocation50_spill] sm:$0xff] }
 0x2a7   : > { %v2613_v3 = vadd.f32 %v2612_v37, %v2611_v27  ;;  %v2688_v37 = vsel %vm2465_vm5, %v5536_v7, 0.0  ;;  %v2557_v27 = vadd.f32 %v2556_v5, %v2555_v40  ;;  %v2560_v14 = vsel %vm2465_vm5, %v8037_v55, 0.0  ;;  %v8039_v55 = vld [vmem:[#allocation98_spill] sm:$0xff] }
 0x2a8   : > { %v5770_v63 = vpop.f32.mrf.mxu2  ;;  %v5772_v48 = vpop.f32.mrf.mxu3  ;;  %v2687_v62 = vadd.f32 %v2686_v4, %v2685_v26  ;;  %v2620_v5 = vsel %vm2465_vm5, %v5549_v58, 0.0  ;;  %v8038_v4 = vld [vmem:[#allocation51_spill] sm:$0xff]  ;;  %v2692_v7 = vsel %vm2465_vm5, %v5559_v52, 0.0  ;;  %v8042_v52 = vld [vmem:[#allocation100_spill] sm:$0xff] }
 0x2a9   : > { %v5780_v8 = vpop.f32.mrf.mxu1  ;;  %v5782_v30 = vpop.f32.mrf.mxu0  ;;  %v2615_v56 = vadd.f32 %v2614_v59, %v2613_v3  ;;  %v2559_v59 = vadd.f32 %v2558_v60, %v2557_v27  ;;  %v2562_v40 = vsel %vm2465_vm5, %v8038_v4, 0.0  ;;  %v8040_v60 = vld [vmem:[#allocation8_spill] sm:$0xff]  ;;  %v2624_v53 = vsel %vm2465_vm5, %v8042_v52, 0.0 }
 0x2aa   : > { %8032 = vst [vmem:[#allocation125_spill] sm:$0xff] %v5780_v8  ;;  %v8036_v8 = vld [vmem:[#allocation35_spill] sm:$0xff]  ;;  %v2689_v3 = vadd.f32 %v2688_v37, %v2687_v62  ;;  %v2513_v62 = vsel %vm2465_vm5, %v8040_v60, 0.0  ;;  %v8041_v37 = vld [vmem:[#allocation52_spill] sm:$0xff] }
 0x2ab   : > { %v2511_v43 = vsel %vm2465_vm5, %v8036_v8, 0.0  ;;  %v2617_v50 = vadd.f32 %v2616_v23, %v2615_v56  ;;  %v2561_v18 = vadd.f32 %v2560_v14, %v2559_v59  ;;  %v2622_v23 = vsel %vm2465_vm5, %v8039_v55, 0.0  ;;  %v8043_v55 = vld [vmem:[#allocation53_spill] sm:$0xff] }
 0x2ac   : > { %v2512_v41 = vadd.f32 %v2511_v43, %v2510_v11  ;;  %v2691_v57 = vadd.f32 %v2690_v35, %v2689_v3  ;;  %v2564_v27 = vsel %vm2465_vm5, %v8041_v37, 0.0  ;;  %v2566_v58 = vsel %vm2465_vm5, %v8043_v55, 0.0 }
 0x2ad   : > { %v2619_v26 = vadd.f32 %v2618_v0, %v2617_v50  ;;  %v2694_v0 = vsel %vm2465_vm5, %v5575_v44, 0.0  ;;  %v2563_v59 = vadd.f32 %v2562_v40, %v2561_v18  ;;  %v2626_v44 = vsel %vm2465_vm5, %v5579_v17, 0.0  ;;  %v8045_v18 = vld [vmem:[#allocation54_spill] sm:$0xff] }
 0x2ae   : > { %v2514_v35 = vadd.f32 %v2513_v62, %v2512_v41  ;;  %v2693_v3 = vadd.f32 %v2692_v7, %v2691_v57  ;;  %v2515_v41 = vsel %vm2465_vm5, %v8044_v16, 0.0  ;;  %v2568_v57 = vsel %vm2465_vm5, %v8045_v18, 0.0 }
 0x2af   : > { %v2621_v43 = vadd.f32 %v2620_v5, %v2619_v26  ;;  %v2696_v5 = vsel %vm2465_vm5, %v5582_v46, 0.0  ;;  %v2565_v26 = vadd.f32 %v2564_v27, %v2563_v59  ;;  %v2698_v40 = vsel %vm2465_vm5, %v5596_v33, 0.0 }
 0x2b0   : > { %v5806_v56 = vpop.f32.mrf.mxu2  ;;  %v5808_v11 = vpop.f32.mrf.mxu3  ;;  %v2695_v37 = vadd.f32 %v2694_v0, %v2693_v3  ;;  %v2516_v62 = vadd.f32 %v2515_v41, %v2514_v35  ;;  %v2628_v27 = vsel %vm2465_vm5, %v5589_v47, 0.0  ;;  %v8046_v0 = vld [vmem:[#allocation55_spill] sm:$0xff]  ;;  %v2700_v46 = vsel %vm2465_vm5, %v5602_v9, 0.0  ;;  %v8049_v9 = vld [vmem:[#allocation57_spill] sm:$0xff] }
 0x2b1   : > { %v5816_v50 = vpop.f32.mrf.mxu1  ;;  %v5818_v14 = vpop.f32.mrf.mxu0  ;;  %v2623_v4 = vadd.f32 %v2622_v23, %v2621_v43  ;;  %v2567_v23 = vadd.f32 %v2566_v58, %v2565_v26  ;;  %v2570_v59 = vsel %vm2465_vm5, %v8046_v0, 0.0  ;;  %v8047_v58 = vld [vmem:[#allocation16_spill] sm:$0xff]  ;;  %v2574_v33 = vsel %vm2465_vm5, %v8049_v9, 0.0  ;;  %v8054_v9 = vld [vmem:[#allocation59_spill] sm:$0xff] }
 0x2b2   : > { %v2697_v43 = vadd.f32 %v2696_v5, %v2695_v37  ;;  %v2517_v37 = vsel %vm2465_vm5, %v8047_v58, 0.0  ;;  %v8048_v5 = vld [vmem:[#allocation56_spill] sm:$0xff]  ;;  %v2704_v47 = vsel %vm2465_vm5, %v5617_v20, 0.0 }
 0x2b3   : > { %v2625_v7 = vadd.f32 %v2624_v53, %v2623_v4  ;;  %v2569_v17 = vadd.f32 %v2568_v57, %v2567_v23  ;;  %v2630_v53 = vsel %vm2465_vm5, %v5599_v19, 0.0  ;;  %v2572_v26 = vsel %vm2465_vm5, %v8048_v5, 0.0 }
 0x2b4   : > { %v2699_v52 = vadd.f32 %v2698_v40, %v2697_v43  ;;  %v2518_v57 = vadd.f32 %v2517_v37, %v2516_v62  ;;  %v2632_v43 = vsel %vm2465_vm5, %v5609_v2, 0.0  ;;  %v8052_v62 = vld [vmem:[#allocation58_spill] sm:$0xff]  ;;  %v2706_v37 = vsel %vm2465_vm5, %v5630_v54, 0.0 }
 0x2b5   : > { %v2627_v3 = vadd.f32 %v2626_v44, %v2625_v7  ;;  %v2702_v44 = vsel %vm2465_vm5, %v5612_v1, 0.0  ;;  %v2571_v40 = vadd.f32 %v2570_v59, %v2569_v17  ;;  %v8051_v17 = vld [vmem:[#allocation24_spill] sm:$0xff]  ;;  %v2576_v59 = vsel %vm2465_vm5, %v8052_v62, 0.0 }
 0x2b6   : > { %v2701_v23 = vadd.f32 %v2700_v46, %v2699_v52  ;;  %v2634_v52 = vsel %vm2465_vm5, %v5614_v38, 0.0  ;;  %v2521_v46 = vsel %vm2465_vm5, %v8051_v17, 0.0  ;;  %v2708_v38 = vsel %vm2465_vm5, %v5643_v34, 0.0 }
 0x2b7   : > { %v2629_v41 = vadd.f32 %v2628_v27, %v2627_v3  ;;  %v8050_v27 = vld [vmem:[#allocation20_spill] sm:$0xff]  ;;  %v2573_v1 = vadd.f32 %v2572_v26, %v2571_v40  ;;  %v2636_v26 = vsel %vm2465_vm5, %v5625_v22, 0.0  ;;  %v1800_v62 = vadd.f32 %v5680_v28, %v8054_v9  ;;  %v8057_v9 = vld [vmem:[#allocation61_spill] sm:$0xff] }
 0x2b8   : > { %v5842_v4 = vpop.f32.mrf.mxu2  ;;  %v5844_v35 = vpop.f32.mrf.mxu3  ;;  %v2519_v3 = vsel %vm2465_vm5, %v8050_v27, 0.0  ;;  %v2703_v0 = vadd.f32 %v2702_v44, %v2701_v23  ;;  %v8053_v44 = vld [vmem:[#allocation60_spill] sm:$0xff]  ;;  %v2710_v34 = vsel %vm2465_vm5, %v5650_v61, 0.0  ;;  %v1801_v28 = vadd.f32 %v5692_v39, %v8057_v9 }
 0x2b9   : > { %v5852_v7 = vpop.f32.mrf.mxu1  ;;  %v2631_v19 = vadd.f32 %v2630_v53, %v2629_v41  ;;  %v5860_v5 = vpop.f32.mrf.mxu0  ;;  %v2520_v41 = vadd.f32 %v2519_v3, %v2518_v57  ;;  %v2575_v20 = vadd.f32 %v2574_v33, %v2573_v1  ;;  %v2578_v40 = vsel %vm2465_vm5, %v8053_v44, 0.0  ;;  %v8056_v3 = vld [vmem:[#allocation62_spill] sm:$0xff] }
 0x2ba   : > { %v2705_v2 = vadd.f32 %v2704_v47, %v2703_v0  ;;  %v2638_v47 = vsel %vm2465_vm5, %v5638_v45, 0.0  ;;  %v2712_v45 = vsel %vm2465_vm5, %v5659_v51, 0.0  ;;  %v5901_v22 = vadd.f32 %v5670_v25, %v1800_v62  ;;  %v8061_v62 = vld [vmem:[#allocation65_spill] sm:$0xff] }
 0x2bb   : > { %v2633_v53 = vadd.f32 %v2632_v43, %v2631_v19  ;;  %v8055_v19 = vld [vmem:[#allocation28_spill] sm:$0xff]  ;;  %v2577_v57 = vadd.f32 %v2576_v59, %v2575_v20  ;;  %v5894_v54 = vadd.f32 %v2521_v46, %v2520_v41  ;;  %v2640_v59 = vsel %vm2465_vm5, %v5647_v13, 0.0 }
 0x2bc   : > { %v5882_v43 = vsel %vm2465_vm5, %v8055_v19, 0.0  ;;  %v2707_v33 = vadd.f32 %v2706_v37, %v2705_v2  ;;  %8058 = vst [vmem:[#allocation35_spill] sm:$0xff] %v5901_v22  ;;  %v5911_v41 = vadd.f32 %v5678_v29, %v5668_v21  ;;  %v5916_v25 = vadd.f32 %v5684_v15, %v1801_v28 }
 0x2bd   : > { %v2635_v23 = vadd.f32 %v2634_v52, %v2633_v53  ;;  %v2580_v52 = vsel %vm2465_vm5, %v8056_v3, 0.0  ;;  %v2579_v20 = vadd.f32 %v2578_v40, %v2577_v57  ;;  %v2714_v57 = vsel %vm2465_vm5, %v5672_v12, 0.0 }
 0x2be   : > { %v2709_v2 = vadd.f32 %v2708_v38, %v2707_v33  ;;  %v2642_v38 = vsel %vm2465_vm5, %v5656_v36, 0.0  ;;  %8060 = vst [vmem:[#allocation8_spill] sm:$0xff] %v5916_v25  ;;  %v5926_v21 = vadd.f32 %v5690_v32, %v5682_v10  ;;  %v2716_v15 = vsel %vm2465_vm5, %v5901_v22, 0.0  ;;  %v8066_v10 = vld [vmem:[#allocation119_spill] sm:$0xff] }
 0x2bf   : > { %v2637_v53 = vadd.f32 %v2636_v26, %v2635_v23  ;;  %v8059_v26 = vld [vmem:[#allocation63_spill] sm:$0xff]  ;;  %v2581_v39 = vadd.f32 %v2580_v52, %v2579_v20  ;;  %v8065_v20 = vld [vmem:[#allocation66_spill] sm:$0xff]  ;;  %v5941_v32 = vadd.f32 %v8066_v10, %v5694_v24 }
 0x2c0   : > { %v5886_v1 = vpop.f32.mrf.mxu2  ;;  %v1769_v0 = vpop.f32.mrf.mxu3  ;;  %v1802_v23 = vadd.f32 %v5710_v42, %v8059_v26  ;;  %v2711_v46 = vadd.f32 %v2710_v34, %v2709_v2  ;;  %v1803_v42 = vadd.f32 %v5734_v6, %v8061_v62  ;;  %v8064_v6 = vld [vmem:[#allocation67_spill] sm:$0xff]  ;;  %v8071_v24 = vld [vmem:[#allocation122_spill] sm:$0xff] }
 0x2c1   : > { %v2639_v37 = vadd.f32 %v2638_v47, %v2637_v53  ;;  %v5905_v61 = vpop.f32.mrf.mxu1  ;;  %v2425_v33 = vpop.f32.mrf.mxu0  ;;  %v8062_v47 = vld [vmem:[#allocation64_spill] sm:$0xff]  ;;  %v2644_v53 = vsel %vm2465_vm5, %v5665_v31, 0.0  ;;  %v1804_v28 = vadd.f32 %v5772_v48, %v8064_v6  ;;  %v8069_v48 = vld [vmem:[#allocation69_spill] sm:$0xff] }
 0x2c2   : > { %v2582_v34 = vsel %vm2465_vm5, %v8062_v47, 0.0  ;;  %v2713_v52 = vadd.f32 %v2712_v45, %v2711_v46  ;;  %v5931_v9 = vadd.f32 %v5696_v49, %v1802_v23  ;;  %v2584_v45 = vsel %vm2465_vm5, %v8065_v20, 0.0  ;;  %v8067_v23 = vld [vmem:[#allocation121_spill] sm:$0xff]  ;;  %v8070_v6 = vld [vmem:[#allocation120_spill] sm:$0xff] }
 0x2c3   : > { %v2641_v40 = vadd.f32 %v2640_v59, %v2639_v37  ;;  %v2646_v59 = vsel %vm2465_vm5, %v5911_v41, 0.0  ;;  %v2718_v49 = vsel %vm2465_vm5, %v5916_v25, 0.0  ;;  %v5954_v10 = vadd.f32 %v8071_v24, %v8070_v6 }
 0x2c4   : > { %8063 = vst [vmem:[#allocation53_spill] sm:$0xff] %v5931_v9  ;;  %v2715_v2 = vadd.f32 %v2714_v57, %v2713_v52  ;;  %v2583_v57 = vadd.f32 %v2582_v34, %v2581_v39  ;;  %v2648_v52 = vsel %vm2465_vm5, %v5926_v21, 0.0  ;;  %v2650_v34 = vsel %vm2465_vm5, %v5941_v32, 0.0 }
 0x2c5   : > { %v2643_v29 = vadd.f32 %v2642_v38, %v2641_v40  ;;  %v5946_v38 = vadd.f32 %v8067_v23, %v1803_v42  ;;  %v1805_v40 = vadd.f32 %v5808_v11, %v8069_v48  ;;  %v8074_v42 = vld [vmem:[#allocation71_spill] sm:$0xff] }
 0x2c6   : > { %v2717_v62 = vadd.f32 %v2716_v15, %v2715_v2  ;;  %v1806_v23 = vadd.f32 %v5844_v35, %v8074_v42  ;;  %v2585_v11 = vadd.f32 %v2584_v45, %v2583_v57  ;;  %v8075_v15 = vld [vmem:[#allocation123_spill] sm:$0xff]  ;;  %v8078_v35 = vld [vmem:[#allocation68_spill] sm:$0xff]  ;;  %v2652_v57 = vsel %vm2465_vm5, %v5954_v10, 0.0  ;;  %v8082_v42 = vld [vmem:[#allocation70_spill] sm:$0xff] }
 0x2c7   : > { %v2645_v46 = vadd.f32 %v2644_v53, %v2643_v29  ;;  %8068 = vst [vmem:[#allocation12_spill] sm:$0xff] %v5946_v38  ;;  %v2720_v53 = vsel %vm2465_vm5, %v5931_v9, 0.0  ;;  %v8072_v29 = vld [vmem:[#allocation124_spill] sm:$0xff]  ;;  %v5967_v2 = vadd.f32 %v5770_v63, %v8075_v15  ;;  %v2586_v45 = vsel %vm2465_vm5, %v8078_v35, 0.0 }
 0x2c8   : > { %v1677_v37 = vpop.f32.mrf.mxu2  ;;  %v1771_v26 = vpop.f32.mrf.mxu3  ;;  %v5959_v25 = vadd.f32 %v8072_v29, %v1804_v28  ;;  %v2719_v39 = vadd.f32 %v2718_v49, %v2717_v62  ;;  %v8077_v28 = vld [vmem:[#allocation73_spill] sm:$0xff] }
 0x2c9   : > { %v2647_v22 = vadd.f32 %v2646_v59, %v2645_v46  ;;  %v2722_v59 = vsel %vm2465_vm5, %v5946_v38, 0.0  ;;  %v5972_v46 = vadd.f32 %v5782_v30, %v1805_v40  ;;  %v1807_v6 = vadd.f32 %v1769_v0, %v8077_v28  ;;  %v1588_v24 = vpop.f32.mrf.mxu1  ;;  %v8079_v62 = vld [vmem:[#allocation125_spill] sm:$0xff]  ;;  %v8081_v0 = vld [vmem:[#allocation75_spill] sm:$0xff]  ;;  %v2428_v29 = vpop.f32.mrf.mxu0 }
 0x2ca   : > { %8073 = vst [vmem:[#allocation54_spill] sm:$0xff] %v5959_v25  ;;  %v2721_v49 = vadd.f32 %v2720_v53, %v2719_v39  ;;  %v5981_v63 = vadd.f32 %v5806_v56, %v8079_v62  ;;  %v5986_v30 = vadd.f32 %v5818_v14, %v1806_v23  ;;  %v1808_v40 = vadd.f32 %v1771_v26, %v8081_v0  ;;  %v8084_v23 = vld [vmem:[#allocation77_spill] sm:$0xff] }
 0x2cb   : > { %v2649_v48 = vadd.f32 %v2648_v52, %v2647_v22  ;;  %8076 = vst [vmem:[#allocation16_spill] sm:$0xff] %v5972_v46  ;;  %v2724_v52 = vsel %vm2465_vm5, %v5959_v25, 0.0  ;;  %v2588_v53 = vsel %vm2465_vm5, %v8082_v42, 0.0  ;;  %v2654_v15 = vsel %vm2465_vm5, %v5967_v2, 0.0 }
 0x2cc   : > { %8080 = vst [vmem:[#allocation20_spill] sm:$0xff] %v5986_v30  ;;  %v2723_v39 = vadd.f32 %v2722_v59, %v2721_v49  ;;  %v5995_v56 = vadd.f32 %v5842_v4, %v5816_v50  ;;  %v2726_v14 = vsel %vm2465_vm5, %v5972_v46, 0.0  ;;  %v6000_v26 = vadd.f32 %v5860_v5, %v1807_v6  ;;  %v8085_v4 = vld [vmem:[#allocation72_spill] sm:$0xff] }
 0x2cd   : > { %v2651_v22 = vadd.f32 %v2650_v34, %v2649_v48  ;;  %v2587_v0 = vadd.f32 %v2586_v45, %v2585_v11  ;;  %v2656_v49 = vsel %vm2465_vm5, %v5981_v63, 0.0  ;;  %v6007_v50 = vadd.f32 %v5886_v1, %v5852_v7 }
 0x2ce   : > { %8083 = vst [vmem:[#allocation24_spill] sm:$0xff] %v6000_v26  ;;  %v2725_v59 = vadd.f32 %v2724_v52, %v2723_v39  ;;  %v2728_v46 = vsel %vm2465_vm5, %v5986_v30, 0.0  ;;  %v6013_v5 = vadd.f32 %v2425_v33, %v1808_v40  ;;  %v2658_v11 = vsel %vm2465_vm5, %v5995_v56, 0.0  ;;  %v8087_v52 = vld [vmem:[#allocation74_spill] sm:$0xff] }
 0x2cf   : > { %v2653_v28 = vadd.f32 %v2652_v57, %v2651_v22  ;;  %v2590_v57 = vsel %vm2465_vm5, %v8085_v4, 0.0  ;;  %v2589_v6 = vadd.f32 %v2588_v53, %v2587_v0  ;;  %v6018_v45 = vadd.f32 %v1677_v37, %v5905_v61 }
 0x2d0   : > { %v1680_v34 = vpop.f32.mrf.mxu2  ;;  %v1774_v48 = vpop.f32.mrf.mxu3  ;;  %8086 = vst [vmem:[#allocation60_spill] sm:$0xff] %v6013_v5  ;;  %v2592_v7 = vsel %vm2465_vm5, %v8087_v52, 0.0  ;;  %v2730_v39 = vsel %vm2465_vm5, %v6000_v26, 0.0  ;;  %v2660_v40 = vsel %vm2465_vm5, %v6007_v50, 0.0  ;;  %v2732_v37 = vsel %vm2465_vm5, %v6013_v5, 0.0 }
 0x2d1   : > { %v1809_v62 = vadd.f32 %v1774_v48, %v8084_v23  ;;  %v2655_v22 = vadd.f32 %v2654_v15, %v2653_v28  ;;  %v2727_v48 = vadd.f32 %v2726_v14, %v2725_v59  ;;  %v2591_v28 = vadd.f32 %v2590_v57, %v2589_v6  ;;  %v1590_v23 = vpop.f32.mrf.mxu1  ;;  %v8088_v59 = vld [vmem:[#allocation76_spill] sm:$0xff] }
 0x2d2   : > { %v1681_v53 = vadd.f32 %v1680_v34, %v1588_v24  ;;  %v2524_v14 = vadd.f32 %v5882_v43, %v5894_v54  ;;  %v8089_v43 = vld [vmem:[#allocation79_spill] sm:$0xff]  ;;  %v8090_v6 = vld [vmem:[#allocation32_spill] sm:$0xff] }
 0x2d3   : > { %v2657_v1 = vadd.f32 %v2656_v49, %v2655_v22  ;;  %v6024_v15 = vadd.f32 %v2428_v29, %v1809_v62  ;;  %v2729_v33 = vadd.f32 %v2728_v46, %v2727_v48  ;;  %v2593_v0 = vadd.f32 %v2592_v7, %v2591_v28  ;;  %v2430_v28 = vpop.f32.mrf.mxu0 }
 0x2d4   : > { %v2594_v49 = vsel %vm2465_vm5, %v8088_v59, 0.0  ;;  %v2662_v46 = vsel %vm2465_vm5, %v6018_v45, 0.0  ;;  %v2525_v48 = vsel %vm2465_vm5, %v8090_v6, 0.0 }
 0x2d5   : > { %v2659_v61 = vadd.f32 %v2658_v11, %v2657_v1  ;;  %v2731_v29 = vadd.f32 %v2730_v39, %v2729_v33  ;;  %v2734_v24 = vsel %vm2465_vm5, %v6024_v15, 0.0  ;;  %v8091_v11 = vld [vmem:[#allocation78_spill] sm:$0xff]  ;;  %v2664_v39 = vsel %vm2465_vm5, %v1681_v53, 0.0 }
 0x2d6   : > { %v2596_v7 = vsel %vm2465_vm5, %v8091_v11, 0.0  ;;  %v2526_v33 = vadd.f32 %v2525_v48, %v2524_v14  ;;  %v2595_v5 = vadd.f32 %v2594_v49, %v2593_v0 }
 0x2d7   : > { %v2661_v22 = vadd.f32 %v2660_v40, %v2659_v61  ;;  %v2733_v1 = vadd.f32 %v2732_v37, %v2731_v29 }
 0x2d8   : > { %v1682_v62 = vpop.f32.mrf.mxu2  ;;  %v1776_v57 = vpop.f32.mrf.mxu3 }
 0x2d9   : > { %v1683_v54 = vadd.f32 %v1682_v62, %v1590_v23  ;;  %v1810_v34 = vadd.f32 %v1776_v57, %v8089_v43  ;;  %v2663_v26 = vadd.f32 %v2662_v46, %v2661_v22  ;;  %v2735_v61 = vadd.f32 %v2734_v24, %v2733_v1  ;;  %v8092_v43 = vld [vmem:[#allocation36_spill] sm:$0xff] }
 0x2da   : > { %v2597_v23 = vadd.f32 %v2596_v7, %v2595_v5  ;;  %v2527_v25 = vsel %vm2465_vm5, %v8092_v43, 0.0 }
 0x2db   : > { %v2464_v40 = vadd.f32 %v2430_v28, %v1810_v34  ;;  %v2666_v30 = vsel %vm2465_vm5, %v1683_v54, 0.0  ;;  %v2665_v62 = vadd.f32 %v2664_v39, %v2663_v26  ;;  %v2528_v9 = vadd.f32 %v2527_v25, %v2526_v33 }
 0x2dc   : > { %v2598_v29 = vrot.slane %v2597_v23, 4 }
 0x2dd   : > { %v2736_v57 = vsel %vm2465_vm5, %v2464_v40, 0.0  ;;  %v2667_v37 = vadd.f32 %v2666_v30, %v2665_v62  ;;  %v2529_v12 = vrot.slane %v2528_v9, 4 }
 0x2de   : > { %v2737_v38 = vadd.f32 %v2736_v57, %v2735_v61  ;;  %v2599_v14 = vadd.f32 %v2598_v29, %v2597_v23 }
 0x2df   : > { %v2668_v51 = vrot.slane %v2667_v37, 4  ;;  %v2530_v0 = vadd.f32 %v2529_v12, %v2528_v9 }
 0x2e0   : > { %v2738_v46 = vrot.slane %v2737_v38, 4  ;;  %v2600_v22 = vrot.slane %v2599_v14, 2 }
 0x2e1   : > { %v2669_v49 = vadd.f32 %v2668_v51, %v2667_v37  ;;  %v2531_v24 = vrot.slane %v2530_v0, 2 }
 0x2e2   : > { %v2739_v5 = vadd.f32 %v2738_v46, %v2737_v38  ;;  %v2601_v26 = vadd.f32 %v2600_v22, %v2599_v14  ;;  %v8098_v46 = vld [vmem:[#allocation9_spill] sm:$0xff] }
 0x2e3   : > { %v2670_v34 = vrot.slane %v2669_v49, 2  ;;  %v2532_v48 = vadd.f32 %v2531_v24, %v2530_v0  ;;  %v8096_v0 = vld [vmem:[#allocation5_spill] sm:$0xff] }
 0x2e4   : > { %v2740_v1 = vrot.slane %v2739_v5, 2  ;;  %v2602_v39 = vrot.slane %v2601_v26, 1  ;;  %v8100_v24 = vld [vmem:[#allocation13_spill] sm:$0xff] }
 0x2e5   : > { %v2671_v7 = vadd.f32 %v2670_v34, %v2669_v49  ;;  %v2533_v28 = vrot.slane %v2532_v48, 1 }
 0x2e6   : > { %v2741_v25 = vadd.f32 %v2740_v1, %v2739_v5  ;;  %v2603_v30 = vadd.f32 %v2602_v39, %v2601_v26  ;;  %v8106_v26 = vld [vmem:[#allocation25_spill] sm:$0xff] }
 0x2e7   : > { %v2672_v61 = vrot.slane %v2671_v7, 1  ;;  %v2534_v33 = vadd.f32 %v2533_v28, %v2532_v48  ;;  %v8110_v39 = vld [vmem:[#allocation33_spill] sm:$0xff] }
 0x2e8   : > { %v2742_v57 = vrot.slane %v2741_v25, 1 }
 0x2e9   : > { %v2673_v62 = vadd.f32 %v2672_v61, %v2671_v7  ;;  %v2604_v23 = vadd.f32 %v2603_v30, %v2534_v33  ;;  %v8108_v7 = vld [vmem:[#allocation29_spill] sm:$0xff]  ;;  %v8112_v61 = vld [vmem:[#allocation6_spill] sm:$0xff] }
 0x2ea   : > { %v2743_v51 = vadd.f32 %v2742_v57, %v2741_v25  ;;  %v8114_v30 = vld [vmem:[#allocation10_spill] sm:$0xff] }
 0x2eb   : > { %v2674_v12 = vadd.f32 %v2673_v62, %v2604_v23  ;;  %v8116_v62 = vld [vmem:[#allocation14_spill] sm:$0xff] }
 0x2ec   : > { %v8118_v23 = vld [vmem:[#allocation18_spill] sm:$0xff] }
 0x2ed   : > { %v2744_v9 = vadd.f32 %v2743_v51, %v2674_v12 }
 0x2ef   : > { %v6048_v37 = vmul.f32 0.0009765625, %v2744_v9 }
 0x2f1   : > { %v6052_v38 = vsub.f32 %v6018_v45, %v6048_v37  ;;  %v6055_v29 = vsub.f32 %v1681_v53, %v6048_v37  ;;  %v6058_v14 = vsub.f32 %v1683_v54, %v6048_v37  ;;  %v6062_v49 = vsub.f32 %v8096_v0, %v6048_v37  ;;  %v8102_v45 = vld [vmem:[#allocation17_spill] sm:$0xff]  ;;  %v8122_v0 = vld [vmem:[#allocation22_spill] sm:$0xff] }
 0x2f2   : > { %v6066_v22 = vsub.f32 %v8098_v46, %v6048_v37  ;;  %v6070_v34 = vsub.f32 %v8100_v24, %v6048_v37  ;;  %v6074_v5 = vsub.f32 %v8102_v45, %v6048_v37  ;;  %v8104_v53 = vld [vmem:[#allocation21_spill] sm:$0xff]  ;;  %v6082_v48 = vsub.f32 %v8106_v26, %v6048_v37  ;;  %v8124_v24 = vld [vmem:[#allocation26_spill] sm:$0xff] }
 0x2f3   : > { %8093 = vst [vmem:[#allocation59_spill] sm:$0xff] %v6052_v38  ;;  %v6078_v54 = vsub.f32 %v8104_v53, %v6048_v37  ;;  %v6086_v1 = vsub.f32 %v8108_v7, %v6048_v37  ;;  %v6090_v28 = vsub.f32 %v8110_v39, %v6048_v37  ;;  %v6094_v25 = vsub.f32 %v8112_v61, %v6048_v37  ;;  %v8126_v53 = vld [vmem:[#allocation30_spill] sm:$0xff]  ;;  %v8132_v61 = vld [vmem:[#allocation11_spill] sm:$0xff] }
 0x2f4   : > { %8094 = vst [vmem:[#allocation28_spill] sm:$0xff] %v6055_v29  ;;  %v6098_v33 = vsub.f32 %v8114_v30, %v6048_v37  ;;  %v6102_v57 = vsub.f32 %v8116_v62, %v6048_v37  ;;  %v6106_v12 = vsub.f32 %v8118_v23, %v6048_v37  ;;  %v6110_v51 = vsub.f32 %v6024_v15, %v6048_v37  ;;  %v8128_v7 = vld [vmem:[#allocation34_spill] sm:$0xff]  ;;  %v8130_v15 = vld [vmem:[#allocation7_spill] sm:$0xff] }
 0x2f5   : > { %8095 = vst [vmem:[#allocation62_spill] sm:$0xff] %v6058_v14  ;;  %v6113_v9 = vsub.f32 %v2464_v40, %v6048_v37  ;;  %v6117_v46 = vsub.f32 %v8122_v0, %v6048_v37  ;;  %v6121_v45 = vsub.f32 %v8124_v24, %v6048_v37  ;;  %v6125_v26 = vsub.f32 %v8126_v53, %v6048_v37  ;;  %v8134_v62 = vld [vmem:[#allocation15_spill] sm:$0xff] }
 0x2f6   : > { %8097 = vst [vmem:[#allocation61_spill] sm:$0xff] %v6062_v49  ;;  %v6129_v39 = vsub.f32 %v8128_v7, %v6048_v37  ;;  %v6133_v40 = vsub.f32 %v8130_v15, %v6048_v37  ;;  %v6137_v30 = vsub.f32 %v8132_v61, %v6048_v37  ;;  %v6141_v23 = vsub.f32 %v8134_v62, %v6048_v37  ;;  %v8136_v0 = vld [vmem:[#allocation19_spill] sm:$0xff] }
 0x2f7   : > { %8099 = vst [vmem:[#allocation63_spill] sm:$0xff] %v6066_v22  ;;  %v6145_v24 = vsub.f32 %v8136_v0, %v6048_v37  ;;  %v8138_v53 = vld [vmem:[#allocation23_spill] sm:$0xff]  ;;  %v6161_v62 = vsub.f32 %v8036_v8, %v6048_v37  ;;  %v6165_v0 = vsub.f32 %v8040_v60, %v6048_v37  ;;  %v6181_v8 = vsub.f32 %v8051_v17, %v6048_v37  ;;  %v8153_v17 = vld [vmem:[#allocation37_spill] sm:$0xff] }
 0x2f8   : > { %8101 = vst [vmem:[#allocation65_spill] sm:$0xff] %v6070_v34  ;;  %v6149_v7 = vsub.f32 %v8138_v53, %v6048_v37  ;;  %v6169_v53 = vsub.f32 %v8044_v16, %v6048_v37  ;;  %v6185_v60 = vsub.f32 %v8055_v19, %v6048_v37  ;;  %v2874_v16 = vmul.f32 %v6062_v49, %v6062_v49  ;;  %v8155_v19 = vld [vmem:[#allocation38_spill] sm:$0xff]  ;;  %v8157_v49 = vld [vmem:[#allocation39_spill] sm:$0xff] }
 0x2f9   : > { %8103 = vst [vmem:[#allocation64_spill] sm:$0xff] %v6074_v5  ;;  %v2875_v14 = vmul.f32 %v6066_v22, %v6066_v22  ;;  %v6201_v29 = vsub.f32 %v8153_v17, %v6048_v37  ;;  %v6205_v38 = vsub.f32 %v8155_v19, %v6048_v37  ;;  %v8159_v22 = vld [vmem:[#allocation40_spill] sm:$0xff]  ;;  %v2876_v17 = vmul.f32 %v6070_v34, %v6070_v34  ;;  %v8165_v19 = vld [vmem:[#allocation43_spill] sm:$0xff] }
 0x2fa   : > { %8105 = vst [vmem:[#allocation67_spill] sm:$0xff] %v6078_v54  ;;  %v2906_v34 = vsel %vm2465_vm5, %v2874_v16, 0.0  ;;  %v8181_v16 = vld [vmem:[#allocation51_spill] sm:$0xff] }
 0x2fb   : > { %8107 = vst [vmem:[#allocation66_spill] sm:$0xff] %v6082_v48 }
 0x2fc   : > { %8109 = vst [vmem:[#allocation119_spill] sm:$0xff] %v6086_v1 }
 0x2fd   : > { %8111 = vst [vmem:[#allocation121_spill] sm:$0xff] %v6090_v28 }
 0x2fe   : > { %8113 = vst [vmem:[#allocation69_spill] sm:$0xff] %v6094_v25 }
 0x2ff   : > { %8115 = vst [vmem:[#allocation120_spill] sm:$0xff] %v6098_v33 }
 0x300   : > { %8117 = vst [vmem:[#allocation122_spill] sm:$0xff] %v6102_v57 }
 0x301   : > { %8119 = vst [vmem:[#allocation124_spill] sm:$0xff] %v6106_v12 }
 0x302   : > { %8120 = vst [vmem:[#allocation71_spill] sm:$0xff] %v6110_v51  ;;  %v8142_v51 = vld [vmem:[#allocation31_spill] sm:$0xff] }
 0x303   : > { %8121 = vst [vmem:[#allocation123_spill] sm:$0xff] %v6113_v9  ;;  %v8140_v9 = vld [vmem:[#allocation27_spill] sm:$0xff]  ;;  %v6157_v61 = vsub.f32 %v8142_v51, %v6048_v37  ;;  %v6177_v51 = vsub.f32 %v8050_v27, %v6048_v37  ;;  %v6197_v27 = vsub.f32 %v8092_v43, %v6048_v37 }
 0x304   : > { %8123 = vst [vmem:[#allocation73_spill] sm:$0xff] %v6117_v46  ;;  %v6153_v15 = vsub.f32 %v8140_v9, %v6048_v37  ;;  %v6173_v9 = vsub.f32 %v8047_v58, %v6048_v37  ;;  %v6193_v58 = vsub.f32 %v8090_v6, %v6048_v37  ;;  %v6213_v6 = vsub.f32 %v8159_v22, %v6048_v37  ;;  %v8169_v22 = vld [vmem:[#allocation45_spill] sm:$0xff] }
 0x305   : > { %8125 = vst [vmem:[#allocation68_spill] sm:$0xff] %v6121_v45 }
 0x306   : > { %8127 = vst [vmem:[#allocation125_spill] sm:$0xff] %v6125_v26 }
 0x307   : > { %8129 = vst [vmem:[#allocation75_spill] sm:$0xff] %v6129_v39 }
 0x308   : > { %8131 = vst [vmem:[#allocation70_spill] sm:$0xff] %v6133_v40 }
 0x309   : > { %8133 = vst [vmem:[#allocation77_spill] sm:$0xff] %v6137_v30 }
 0x30a   : > { %8135 = vst [vmem:[#allocation72_spill] sm:$0xff] %v6141_v23  ;;  %v2909_v23 = vsel %vm2465_vm5, %v2876_v17, 0.0 }
 0x30b   : > { %8137 = vst [vmem:[#allocation74_spill] sm:$0xff] %v6145_v24  ;;  %v8179_v24 = vld [vmem:[#allocation50_spill] sm:$0xff] }
 0x30c   : > { %8139 = vst [vmem:[#allocation76_spill] sm:$0xff] %v6149_v7 }
 0x30d   : > { %8141 = vst [vmem:[#allocation79_spill] sm:$0xff] %v6153_v15 }
 0x30e   : > { %8143 = vst [vmem:[#allocation32_spill] sm:$0xff] %v6157_v61 }
 0x30f   : > { %8144 = vst [vmem:[#allocation78_spill] sm:$0xff] %v6161_v62  ;;  %v8173_v62 = vld [vmem:[#allocation47_spill] sm:$0xff] }
 0x310   : > { %8145 = vst [vmem:[#allocation36_spill] sm:$0xff] %v6165_v0  ;;  %v6247_v61 = vsub.f32 %v8173_v62, %v6048_v37  ;;  %v2878_v62 = vmul.f32 %v6078_v54, %v6078_v54  ;;  %v8187_v54 = vld [vmem:[#allocation56_spill] sm:$0xff] }
 0x311   : > { %8146 = vst [vmem:[#allocation5_spill] sm:$0xff] %v6169_v53  ;;  %v6235_v53 = vsub.f32 %v8169_v22, %v6048_v37  ;;  %v8177_v22 = vld [vmem:[#allocation49_spill] sm:$0xff]  ;;  %v6286_v17 = vsub.f32 %v8187_v54, %v6048_v37  ;;  %v6305_v54 = vsub.f32 %v8056_v3, %v6048_v37  ;;  %v6324_v3 = vsub.f32 %v8082_v42, %v6048_v37 }
 0x312   : > { %8147 = vst [vmem:[#allocation9_spill] sm:$0xff] %v6173_v9  ;;  %v6255_v7 = vsub.f32 %v8177_v22, %v6048_v37  ;;  %v8186_v22 = vld [vmem:[#allocation55_spill] sm:$0xff]  ;;  %v6343_v42 = vsub.f32 %v8091_v11, %v6048_v37  ;;  %v8207_v11 = vld [vmem:[#allocation86_spill] sm:$0xff] }
 0x313   : > { %8148 = vst [vmem:[#allocation13_spill] sm:$0xff] %v6177_v51  ;;  %v6227_v51 = vsub.f32 %v8165_v19, %v6048_v37  ;;  %v2907_v19 = vsel %vm2465_vm5, %v2875_v14, 0.0  ;;  %v6263_v14 = vsub.f32 %v8181_v16, %v6048_v37  ;;  %v6282_v16 = vsub.f32 %v8186_v22, %v6048_v37 }
 0x314   : > { %8149 = vst [vmem:[#allocation17_spill] sm:$0xff] %v6181_v8 }
 0x315   : > { %8150 = vst [vmem:[#allocation21_spill] sm:$0xff] %v6185_v60  ;;  %v6209_v60 = vsub.f32 %v8157_v49, %v6048_v37  ;;  %v8167_v49 = vld [vmem:[#allocation44_spill] sm:$0xff] }
 0x316   : > { %8151 = vst [vmem:[#allocation25_spill] sm:$0xff] %v6193_v58  ;;  %v8161_v58 = vld [vmem:[#allocation41_spill] sm:$0xff]  ;;  %v6231_v9 = vsub.f32 %v8167_v49, %v6048_v37  ;;  %v8175_v49 = vld [vmem:[#allocation48_spill] sm:$0xff] }
 0x317   : > { %8152 = vst [vmem:[#allocation29_spill] sm:$0xff] %v6197_v27  ;;  %v6217_v43 = vsub.f32 %v8161_v58, %v6048_v37  ;;  %v8163_v27 = vld [vmem:[#allocation42_spill] sm:$0xff]  ;;  %v6251_v15 = vsub.f32 %v8175_v49, %v6048_v37  ;;  %v8183_v49 = vld [vmem:[#allocation52_spill] sm:$0xff] }
 0x318   : > { %8154 = vst [vmem:[#allocation33_spill] sm:$0xff] %v6201_v29  ;;  %v6223_v8 = vsub.f32 %v8163_v27, %v6048_v37  ;;  %v8171_v58 = vld [vmem:[#allocation46_spill] sm:$0xff]  ;;  %v2877_v27 = vmul.f32 %v6074_v5, %v6074_v5  ;;  %v6259_v5 = vsub.f32 %v8179_v24, %v6048_v37  ;;  %v6270_v30 = vsub.f32 %v8183_v49, %v6048_v37 }
 0x319   : > { %8156 = vst [vmem:[#allocation6_spill] sm:$0xff] %v6205_v38  ;;  %v6239_v0 = vsub.f32 %v8171_v58, %v6048_v37  ;;  %v2908_v58 = vadd.f32 %v2907_v19, %v2906_v34  ;;  %v6274_v34 = vsub.f32 %v8043_v55, %v6048_v37  ;;  %v6278_v24 = vsub.f32 %v8045_v18, %v6048_v37  ;;  %v8188_v55 = vld [vmem:[#allocation57_spill] sm:$0xff]  ;;  %v8189_v18 = vld [vmem:[#allocation58_spill] sm:$0xff] }
 0x31a   : > { %8158 = vst [vmem:[#allocation10_spill] sm:$0xff] %v6209_v60  ;;  %v2879_v49 = vmul.f32 %v6082_v48, %v6082_v48  ;;  %v2913_v48 = vsel %vm2465_vm5, %v2878_v62, 0.0  ;;  %v6332_v62 = vsub.f32 %v8087_v52, %v6048_v37  ;;  %v8203_v52 = vld [vmem:[#allocation82_spill] sm:$0xff] }
 0x31b   : > { %8160 = vst [vmem:[#allocation14_spill] sm:$0xff] %v6213_v6  ;;  %v2910_v19 = vadd.f32 %v2909_v23, %v2908_v58  ;;  %v6297_v23 = vsub.f32 %v8189_v18, %v6048_v37  ;;  %v6301_v58 = vsub.f32 %v8053_v44, %v6048_v37  ;;  %v6316_v18 = vsub.f32 %v8065_v20, %v6048_v37 }
 0x31c   : > { %8162 = vst [vmem:[#allocation18_spill] sm:$0xff] %v6217_v43  ;;  %v6320_v44 = vsub.f32 %v8078_v35, %v6048_v37  ;;  %v2881_v20 = vmul.f32 %v6090_v28, %v6090_v28  ;;  %v6339_v35 = vsub.f32 %v8088_v59, %v6048_v37  ;;  %v8205_v28 = vld [vmem:[#allocation84_spill] sm:$0xff]  ;;  %v2882_v59 = vmul.f32 %v6094_v25, %v6094_v25  ;;  %v8215_v25 = vld [vmem:[#allocation94_spill] sm:$0xff] }
 0x31d   : > { %8164 = vst [vmem:[#allocation22_spill] sm:$0xff] %v6223_v8 }
 0x31e   : > { %8166 = vst [vmem:[#allocation26_spill] sm:$0xff] %v6227_v51 }
 0x31f   : > { %8168 = vst [vmem:[#allocation30_spill] sm:$0xff] %v6231_v9 }
 0x320   : > { %8170 = vst [vmem:[#allocation34_spill] sm:$0xff] %v6235_v53 }
 0x321   : > { %8172 = vst [vmem:[#allocation7_spill] sm:$0xff] %v6239_v0 }
 0x322   : > { %8174 = vst [vmem:[#allocation11_spill] sm:$0xff] %v6247_v61 }
 0x323   : > { %8176 = vst [vmem:[#allocation15_spill] sm:$0xff] %v6251_v15 }
 0x324   : > { %8178 = vst [vmem:[#allocation19_spill] sm:$0xff] %v6255_v7 }
 0x325   : > { %8180 = vst [vmem:[#allocation23_spill] sm:$0xff] %v6259_v5 }
 0x326   : > { %8182 = vst [vmem:[#allocation27_spill] sm:$0xff] %v6263_v14 }
 0x327   : > { %8184 = vst [vmem:[#allocation31_spill] sm:$0xff] %v6270_v30  ;;  %v2911_v30 = vsel %vm2465_vm5, %v2877_v27, 0.0  ;;  %v6309_v27 = vsub.f32 %v8062_v47, %v6048_v37  ;;  %v6328_v47 = vsub.f32 %v8085_v4, %v6048_v37  ;;  %v8201_v4 = vld [vmem:[#allocation80_spill] sm:$0xff] }
 0x328   : > { %8185 = vst [vmem:[#allocation37_spill] sm:$0xff] %v6274_v34  ;;  %v6293_v34 = vsub.f32 %v8188_v55, %v6048_v37  ;;  %v2912_v22 = vadd.f32 %v2911_v30, %v2910_v19  ;;  %v2880_v55 = vmul.f32 %v6086_v1, %v6086_v1  ;;  %v2915_v19 = vsel %vm2465_vm5, %v2879_v49, 0.0 }
 0x329   : > { %8190 = vst [vmem:[#allocation38_spill] sm:$0xff] %v6297_v23  ;;  %v6351_v1 = vsub.f32 %v8203_v52, %v6048_v37  ;;  %v6355_v49 = vsub.f32 %v8205_v28, %v6048_v37  ;;  %v8213_v28 = vld [vmem:[#allocation92_spill] sm:$0xff] }
 0x32a   : > { %8191 = vst [vmem:[#allocation39_spill] sm:$0xff] %v6301_v58  ;;  %v2914_v30 = vadd.f32 %v2913_v48, %v2912_v22  ;;  %v6347_v48 = vsub.f32 %v8201_v4, %v6048_v37  ;;  %v8209_v4 = vld [vmem:[#allocation88_spill] sm:$0xff] }
 0x32b   : > { %8192 = vst [vmem:[#allocation40_spill] sm:$0xff] %v6305_v54 }
 0x32c   : > { %8193 = vst [vmem:[#allocation41_spill] sm:$0xff] %v6309_v27  ;;  %v2916_v22 = vadd.f32 %v2915_v19, %v2914_v30  ;;  %v6366_v30 = vsub.f32 %v8209_v4, %v6048_v37  ;;  %v8211_v19 = vld [vmem:[#allocation90_spill] sm:$0xff]  ;;  %v8217_v4 = vld [vmem:[#allocation96_spill] sm:$0xff] }
 0x32d   : > { %8194 = vst [vmem:[#allocation42_spill] sm:$0xff] %v6316_v18  ;;  %v6370_v52 = vsub.f32 %v8211_v19, %v6048_v37  ;;  %v8218_v19 = vld [vmem:[#allocation98_spill] sm:$0xff] }
 0x32e   : > { %8195 = vst [vmem:[#allocation43_spill] sm:$0xff] %v6320_v44  ;;  %v6385_v44 = vsub.f32 %v8217_v4, %v6048_v37  ;;  %v2976_v4 = vmul.f32 %v6205_v38, %v6205_v38 }
 0x32f   : > { %8196 = vst [vmem:[#allocation44_spill] sm:$0xff] %v6324_v3  ;;  %v2919_v3 = vsel %vm2465_vm5, %v2881_v20, 0.0  ;;  %v2975_v20 = vmul.f32 %v6201_v29, %v6201_v29  ;;  %v8227_v29 = vld [vmem:[#allocation110_spill] sm:$0xff] }
 0x330   : > { %8197 = vst [vmem:[#allocation45_spill] sm:$0xff] %v6328_v47  ;;  %v6374_v47 = vsub.f32 %v8213_v28, %v6048_v37  ;;  %v6420_v23 = vsub.f32 %v8227_v29, %v6048_v37  ;;  %v6439_v29 = vsub.f32 %v5656_v36, %v6048_v37  ;;  %v6454_v36 = vsub.f32 %v5911_v41, %v6048_v37 }
 0x331   : > { %8198 = vst [vmem:[#allocation46_spill] sm:$0xff] %v6332_v62 }
 0x332   : > { %8199 = vst [vmem:[#allocation47_spill] sm:$0xff] %v6339_v35  ;;  %v2917_v35 = vsel %vm2465_vm5, %v2880_v55, 0.0  ;;  %v6378_v55 = vsub.f32 %v8215_v25, %v6048_v37  ;;  %v8221_v25 = vld [vmem:[#allocation102_spill] sm:$0xff] }
 0x333   : > { %8200 = vst [vmem:[#allocation48_spill] sm:$0xff] %v6343_v42  ;;  %v6362_v42 = vsub.f32 %v8207_v11, %v6048_v37  ;;  %v2918_v62 = vadd.f32 %v2917_v35, %v2916_v22  ;;  %v2883_v11 = vmul.f32 %v6098_v33, %v6098_v33  ;;  %v6389_v35 = vsub.f32 %v8218_v19, %v6048_v37  ;;  %v8219_v22 = vld [vmem:[#allocation100_spill] sm:$0xff] }
 0x334   : > { %8202 = vst [vmem:[#allocation49_spill] sm:$0xff] %v6347_v48  ;;  %v6393_v28 = vsub.f32 %v8219_v22, %v6048_v37  ;;  %v6397_v27 = vsub.f32 %v8221_v25, %v6048_v37  ;;  %v2921_v33 = vsel %vm2465_vm5, %v2882_v59, 0.0  ;;  %v8223_v19 = vld [vmem:[#allocation104_spill] sm:$0xff]  ;;  %v8224_v22 = vld [vmem:[#allocation106_spill] sm:$0xff] }
 0x335   : > { %8204 = vst [vmem:[#allocation50_spill] sm:$0xff] %v6351_v1  ;;  %v2920_v18 = vadd.f32 %v2919_v3, %v2918_v62  ;;  %v6406_v54 = vsub.f32 %v8223_v19, %v6048_v37  ;;  %v6410_v58 = vsub.f32 %v8224_v22, %v6048_v37  ;;  %v2884_v3 = vmul.f32 %v6102_v57, %v6102_v57  ;;  %v8226_v59 = vld [vmem:[#allocation108_spill] sm:$0xff]  ;;  %v8230_v57 = vld [vmem:[#allocation114_spill] sm:$0xff] }
 0x336   : > { %8206 = vst [vmem:[#allocation51_spill] sm:$0xff] %v6355_v49  ;;  %v6416_v25 = vsub.f32 %v8226_v59, %v6048_v37  ;;  %v2923_v38 = vsel %vm2465_vm5, %v2883_v11, 0.0  ;;  %v2977_v19 = vmul.f32 %v6209_v60, %v6209_v60  ;;  %v8228_v22 = vld [vmem:[#allocation112_spill] sm:$0xff]  ;;  %v2978_v11 = vmul.f32 %v6213_v6, %v6213_v6  ;;  %v8239_v6 = vld [vmem:[#allocation83_spill] sm:$0xff] }
 0x337   : > { %8208 = vst [vmem:[#allocation52_spill] sm:$0xff] %v6362_v42  ;;  %v2922_v62 = vadd.f32 %v2921_v33, %v2920_v18  ;;  %v6431_v33 = vsub.f32 %v8230_v57, %v6048_v37  ;;  %v6435_v18 = vsub.f32 %v5647_v13, %v6048_v37  ;;  %v3007_v60 = vsel %vm2465_vm5, %v2975_v20, 0.0 }
 0x338   : > { %8210 = vst [vmem:[#allocation55_spill] sm:$0xff] %v6366_v30  ;;  %v6447_v57 = vsub.f32 %v5665_v31, %v6048_v37  ;;  %v2885_v13 = vmul.f32 %v6106_v12, %v6106_v12  ;;  %v2979_v20 = vmul.f32 %v6217_v43, %v6217_v43  ;;  %v6461_v31 = vsub.f32 %v5926_v21, %v6048_v37 }
 0x339   : > { %8212 = vst [vmem:[#allocation56_spill] sm:$0xff] %v6370_v52  ;;  %v2924_v59 = vadd.f32 %v2923_v38, %v2922_v62  ;;  %v2925_v38 = vsel %vm2465_vm5, %v2884_v3, 0.0  ;;  %v6465_v12 = vsub.f32 %v5941_v32, %v6048_v37  ;;  %v6473_v3 = vsub.f32 %v5967_v2, %v6048_v37 }
 0x33a   : > { %8214 = vst [vmem:[#allocation57_spill] sm:$0xff] %v6374_v47  ;;  %v2980_v21 = vmul.f32 %v6223_v8, %v6223_v8  ;;  %v6484_v32 = vsub.f32 %v5995_v56, %v6048_v37 }
 0x33b   : > { %8216 = vst [vmem:[#allocation58_spill] sm:$0xff] %v6378_v55 }
 0x33c   : > { %8220 = vst [vmem:[#allocation80_spill] sm:$0xff] %v6393_v28 }
 0x33d   : > { %8222 = vst [vmem:[#allocation82_spill] sm:$0xff] %v6397_v27 }
 0x33e   : > { %8225 = vst [vmem:[#allocation84_spill] sm:$0xff] %v6410_v58  ;;  %v6427_v58 = vsub.f32 %v8228_v22, %v6048_v37  ;;  %v3008_v22 = vsel %vm2465_vm5, %v2976_v4, 0.0  ;;  %v3010_v4 = vsel %vm2465_vm5, %v2977_v19, 0.0  ;;  %v6477_v19 = vsub.f32 %v5981_v63, %v6048_v37 }
 0x33f   : > { %8231 = vst [vmem:[#allocation88_spill] sm:$0xff] %v6439_v29  ;;  %v3009_v62 = vadd.f32 %v3008_v22, %v3007_v60  ;;  %v2926_v29 = vadd.f32 %v2925_v38, %v2924_v59  ;;  %v6469_v60 = vsub.f32 %v5954_v10, %v6048_v37  ;;  %v3012_v59 = vsel %vm2465_vm5, %v2978_v11, 0.0 }
 0x340   : > { %8229 = vst [vmem:[#allocation86_spill] sm:$0xff] %v6427_v58  ;;  %v2886_v10 = vmul.f32 %v6117_v46, %v6117_v46  ;;  %v2927_v22 = vsel %vm2465_vm5, %v2885_v13, 0.0  ;;  %v6491_v38 = vsub.f32 %v6007_v50, %v6048_v37  ;;  %v3014_v11 = vsel %vm2465_vm5, %v2979_v20, 0.0  ;;  %v8241_v13 = vld [vmem:[#allocation85_spill] sm:$0xff] }
 0x341   : > { %8232 = vst [vmem:[#allocation90_spill] sm:$0xff] %v6469_v60  ;;  %v3011_v41 = vadd.f32 %v3010_v4, %v3009_v62  ;;  %v2928_v63 = vadd.f32 %v2927_v22, %v2926_v29  ;;  %v2981_v62 = vmul.f32 %v6227_v51, %v6227_v51  ;;  %v8237_v4 = vld [vmem:[#allocation81_spill] sm:$0xff]  ;;  %v6502_v46 = vsub.f32 %v8239_v6, %v6048_v37  ;;  %v8243_v29 = vld [vmem:[#allocation87_spill] sm:$0xff] }
 0x342   : > { %8233 = vst [vmem:[#allocation92_spill] sm:$0xff] %v6473_v3  ;;  %v6498_v56 = vsub.f32 %v8237_v4, %v6048_v37  ;;  %v8245_v22 = vld [vmem:[#allocation89_spill] sm:$0xff]  ;;  %v2982_v4 = vmul.f32 %v6231_v9, %v6231_v9  ;;  %v3016_v51 = vsel %vm2465_vm5, %v2980_v21, 0.0  ;;  %v8247_v6 = vld [vmem:[#allocation91_spill] sm:$0xff]  ;;  %v2983_v9 = vmul.f32 %v6235_v53, %v6235_v53 }
 0x343   : > { %8234 = vst [vmem:[#allocation94_spill] sm:$0xff] %v6477_v19  ;;  %v3013_v2 = vadd.f32 %v3012_v59, %v3011_v41  ;;  %v6506_v41 = vsub.f32 %v8241_v13, %v6048_v37  ;;  %v6510_v59 = vsub.f32 %v8243_v29, %v6048_v37  ;;  %v6514_v20 = vsub.f32 %v8245_v22, %v6048_v37  ;;  %v8249_v29 = vld [vmem:[#allocation93_spill] sm:$0xff] }
 0x344   : > { %8235 = vst [vmem:[#allocation96_spill] sm:$0xff] %v6484_v32  ;;  %v6521_v8 = vsub.f32 %v8247_v6, %v6048_v37  ;;  %v6528_v43 = vsub.f32 %v8249_v29, %v6048_v37  ;;  %v3018_v21 = vsel %vm2465_vm5, %v2981_v62, 0.0  ;;  %v8253_v32 = vld [vmem:[#allocation97_spill] sm:$0xff]  ;;  %v8259_v29 = vld [vmem:[#allocation103_spill] sm:$0xff]  ;;  %v3020_v53 = vsel %vm2465_vm5, %v2982_v4, 0.0 }
 0x345   : > { %8236 = vst [vmem:[#allocation98_spill] sm:$0xff] %v6491_v38  ;;  %v3015_v50 = vadd.f32 %v3014_v11, %v3013_v2  ;;  %v2887_v2 = vmul.f32 %v6121_v45, %v6121_v45  ;;  %v2929_v11 = vsel %vm2465_vm5, %v2886_v10, 0.0  ;;  %v8251_v38 = vld [vmem:[#allocation95_spill] sm:$0xff]  ;;  %v6539_v45 = vsub.f32 %v8253_v32, %v6048_v37  ;;  %v8261_v32 = vld [vmem:[#allocation105_spill] sm:$0xff] }
 0x346   : > { %8238 = vst [vmem:[#allocation100_spill] sm:$0xff] %v6498_v56  ;;  %v2930_v22 = vadd.f32 %v2929_v11, %v2928_v63  ;;  %v6535_v6 = vsub.f32 %v8251_v38, %v6048_v37  ;;  %v8257_v63 = vld [vmem:[#allocation101_spill] sm:$0xff]  ;;  %v6551_v62 = vsub.f32 %v8259_v29, %v6048_v37  ;;  %v2984_v38 = vmul.f32 %v6239_v0, %v6239_v0 }
 0x347   : > { %8240 = vst [vmem:[#allocation102_spill] sm:$0xff] %v6502_v46  ;;  %v3017_v13 = vadd.f32 %v3016_v51, %v3015_v50  ;;  %v8255_v51 = vld [vmem:[#allocation99_spill] sm:$0xff]  ;;  %v6547_v11 = vsub.f32 %v8257_v63, %v6048_v37  ;;  %v6558_v19 = vsub.f32 %v8261_v32, %v6048_v37  ;;  %v2985_v0 = vmul.f32 %v6247_v61, %v6247_v61  ;;  %v8265_v60 = vld [vmem:[#allocation109_spill] sm:$0xff] }
 0x348   : > { %8242 = vst [vmem:[#allocation104_spill] sm:$0xff] %v6506_v41  ;;  %v6543_v10 = vsub.f32 %v8255_v51, %v6048_v37  ;;  %v8263_v63 = vld [vmem:[#allocation107_spill] sm:$0xff]  ;;  %v3022_v4 = vsel %vm2465_vm5, %v2983_v9, 0.0  ;;  %v6572_v32 = vsub.f32 %v8265_v60, %v6048_v37  ;;  %v2986_v60 = vmul.f32 %v6251_v15, %v6251_v15 }
 0x349   : > { %8244 = vst [vmem:[#allocation106_spill] sm:$0xff] %v6510_v59  ;;  %v3019_v50 = vadd.f32 %v3018_v21, %v3017_v13  ;;  %v2888_v13 = vmul.f32 %v6125_v26, %v6125_v26  ;;  %v2931_v21 = vsel %vm2465_vm5, %v2887_v2, 0.0  ;;  %v6565_v3 = vsub.f32 %v8263_v63, %v6048_v37  ;;  %v8273_v63 = vld [vmem:[#allocation116_spill] sm:$0xff] }
 0x34a   : > { %8246 = vst [vmem:[#allocation108_spill] sm:$0xff] %v6514_v20  ;;  %v2932_v29 = vadd.f32 %v2931_v21, %v2930_v22  ;;  %v8271_v22 = vld [vmem:[#allocation115_spill] sm:$0xff]  ;;  %v6588_v9 = vsub.f32 %v8273_v63, %v6048_v37  ;;  %v3024_v61 = vsel %vm2465_vm5, %v2984_v38, 0.0  ;;  %v3026_v63 = vsel %vm2465_vm5, %v2985_v0, 0.0  ;;  %v8275_v38 = vld [vmem:[#allocation117_spill] sm:$0xff] }
 0x34b   : > { %8248 = vst [vmem:[#allocation110_spill] sm:$0xff] %v6521_v8  ;;  %v3021_v51 = vadd.f32 %v3020_v53, %v3019_v50  ;;  %v8269_v53 = vld [vmem:[#allocation113_spill] sm:$0xff]  ;;  %v6584_v21 = vsub.f32 %v8271_v22, %v6048_v37  ;;  %v2987_v22 = vmul.f32 %v6255_v7, %v6255_v7  ;;  %v3078_v15 = vmul.f32 %v6351_v1, %v6351_v1 }
 0x34c   : > { %8250 = vst [vmem:[#allocation112_spill] sm:$0xff] %v6528_v43  ;;  %v6580_v2 = vsub.f32 %v8269_v53, %v6048_v37  ;;  %v2933_v53 = vsel %vm2465_vm5, %v2888_v13, 0.0  ;;  %v2988_v0 = vmul.f32 %v6259_v5, %v6259_v5  ;;  %v3028_v1 = vsel %vm2465_vm5, %v2986_v60, 0.0  ;;  %v8280_v60 = vld [vmem:[#allocation72_spill] sm:$0xff] }
 0x34d   : > { %8252 = vst [vmem:[#allocation114_spill] sm:$0xff] %v6535_v6  ;;  %v3023_v50 = vadd.f32 %v3022_v4, %v3021_v51  ;;  %v3077_v51 = vmul.f32 %v6347_v48, %v6347_v48  ;;  %v2934_v4 = vadd.f32 %v2933_v53, %v2932_v29  ;;  %v3110_v5 = vsel %vm2465_vm5, %v3078_v15, 0.0 }
 0x34e   : > { %8254 = vst [vmem:[#allocation81_spill] sm:$0xff] %v6539_v45 }
 0x34f   : > { %8256 = vst [vmem:[#allocation83_spill] sm:$0xff] %v6543_v10 }
 0x350   : > { %8258 = vst [vmem:[#allocation85_spill] sm:$0xff] %v6547_v11 }
 0x351   : > { %8260 = vst [vmem:[#allocation87_spill] sm:$0xff] %v6551_v62 }
 0x352   : > { %8262 = vst [vmem:[#allocation89_spill] sm:$0xff] %v6558_v19  ;;  %v8267_v19 = vld [vmem:[#allocation111_spill] sm:$0xff] }
 0x353   : > { %8264 = vst [vmem:[#allocation91_spill] sm:$0xff] %v6565_v3  ;;  %v6576_v26 = vsub.f32 %v8267_v19, %v6048_v37  ;;  %v2889_v19 = vmul.f32 %v6129_v39, %v6129_v39  ;;  %v8277_v39 = vld [vmem:[#allocation118_spill] sm:$0xff] }
 0x354   : > { %8266 = vst [vmem:[#allocation93_spill] sm:$0xff] %v6572_v32  ;;  %v6609_v13 = vsub.f32 %v8277_v39, %v6048_v37  ;;  %v2989_v39 = vmul.f32 %v6263_v14, %v6263_v14  ;;  %v8282_v14 = vld [vmem:[#allocation31_spill] sm:$0xff] }
 0x355   : > { %8268 = vst [vmem:[#allocation95_spill] sm:$0xff] %v6576_v26  ;;  %v2935_v48 = vsel %vm2465_vm5, %v2889_v19, 0.0 }
 0x356   : > { %8270 = vst [vmem:[#allocation97_spill] sm:$0xff] %v6580_v2  ;;  %v3025_v2 = vadd.f32 %v3024_v61, %v3023_v50  ;;  %v2890_v61 = vmul.f32 %v6133_v40, %v6133_v40  ;;  %v8279_v50 = vld [vmem:[#allocation77_spill] sm:$0xff]  ;;  %v3109_v40 = vsel %vm2465_vm5, %v3077_v51, 0.0  ;;  %v3081_v51 = vmul.f32 %v6366_v30, %v6366_v30  ;;  %v8285_v30 = vld [vmem:[#allocation79_spill] sm:$0xff] }
 0x357   : > { %8272 = vst [vmem:[#allocation99_spill] sm:$0xff] %v6584_v21  ;;  %v2891_v53 = vmul.f32 %v8279_v50, %v8279_v50  ;;  %v3080_v50 = vmul.f32 %v6362_v42, %v6362_v42  ;;  %v3111_v21 = vadd.f32 %v3110_v5, %v3109_v40  ;;  %v3034_v5 = vsel %vm2465_vm5, %v2989_v39, 0.0 }
 0x358   : > { %8274 = vst [vmem:[#allocation101_spill] sm:$0xff] %v6588_v9  ;;  %v6605_v9 = vsub.f32 %v8275_v38, %v6048_v37  ;;  %v3027_v29 = vadd.f32 %v3026_v63, %v3025_v2  ;;  %v3079_v38 = vmul.f32 %v6355_v49, %v6355_v49  ;;  %v2936_v2 = vadd.f32 %v2935_v48, %v2934_v4  ;;  %v8281_v49 = vld [vmem:[#allocation74_spill] sm:$0xff] }
 0x359   : > { %8278 = vst [vmem:[#allocation105_spill] sm:$0xff] %v6609_v13  ;;  %v3030_v63 = vsel %vm2465_vm5, %v2987_v22, 0.0  ;;  %v2892_v13 = vmul.f32 %v8280_v60, %v8280_v60  ;;  %v2893_v19 = vmul.f32 %v8281_v49, %v8281_v49  ;;  %v3032_v48 = vsel %vm2465_vm5, %v2988_v0, 0.0  ;;  %v8283_v22 = vld [vmem:[#allocation37_spill] sm:$0xff]  ;;  %v8284_v0 = vld [vmem:[#allocation76_spill] sm:$0xff] }
 0x35a   : > { %8276 = vst [vmem:[#allocation103_spill] sm:$0xff] %v6605_v9  ;;  %v3029_v7 = vadd.f32 %v3028_v1, %v3027_v29  ;;  %v2990_v1 = vmul.f32 %v8282_v14, %v8282_v14  ;;  %v3112_v4 = vsel %vm2465_vm5, %v3079_v38, 0.0  ;;  %v2937_v15 = vsel %vm2465_vm5, %v2890_v61, 0.0 }
 0x35b   : > { %v2991_v29 = vmul.f32 %v8283_v22, %v8283_v22  ;;  %v3113_v42 = vadd.f32 %v3112_v4, %v3111_v21  ;;  %v2938_v49 = vadd.f32 %v2937_v15, %v2936_v2  ;;  %v3082_v40 = vmul.f32 %v6370_v52, %v6370_v52 }
 0x35c   : > { %v3031_v9 = vadd.f32 %v3030_v63, %v3029_v7  ;;  %v3114_v7 = vsel %vm2465_vm5, %v3080_v50, 0.0  ;;  %v2894_v63 = vmul.f32 %v8284_v0, %v8284_v0  ;;  %v2895_v38 = vmul.f32 %v8285_v30, %v8285_v30  ;;  %v8287_v0 = vld [vmem:[#allocation78_spill] sm:$0xff] }
 0x35d   : > { %v3115_v14 = vadd.f32 %v3114_v7, %v3113_v42  ;;  %v3036_v21 = vsel %vm2465_vm5, %v2990_v1, 0.0  ;;  %v3083_v39 = vmul.f32 %v6374_v47, %v6374_v47  ;;  %v3116_v2 = vsel %vm2465_vm5, %v3081_v51, 0.0  ;;  %v8288_v47 = vld [vmem:[#allocation36_spill] sm:$0xff] }
 0x35e   : > { %v3033_v60 = vadd.f32 %v3032_v48, %v3031_v9  ;;  %v2992_v9 = vmul.f32 %v6278_v24, %v6278_v24  ;;  %v2939_v50 = vsel %vm2465_vm5, %v2891_v53, 0.0  ;;  %v2993_v48 = vmul.f32 %v6282_v16, %v6282_v16 }
 0x35f   : > { %v3117_v15 = vadd.f32 %v3116_v2, %v3115_v14  ;;  %v2940_v30 = vadd.f32 %v2939_v50, %v2938_v49  ;;  %v3038_v42 = vsel %vm2465_vm5, %v2991_v29, 0.0  ;;  %v3118_v1 = vsel %vm2465_vm5, %v3082_v40, 0.0 }
 0x360   : > { %v3035_v61 = vadd.f32 %v3034_v5, %v3033_v60  ;;  %v3084_v60 = vmul.f32 %v6378_v55, %v6378_v55  ;;  %v8286_v5 = vld [vmem:[#allocation32_spill] sm:$0xff]  ;;  %v2897_v51 = vmul.f32 %v8287_v0, %v8287_v0  ;;  %v3040_v14 = vsel %vm2465_vm5, %v2992_v9, 0.0  ;;  %v8291_v55 = vld [vmem:[#allocation13_spill] sm:$0xff] }
 0x361   : > { %v2896_v7 = vmul.f32 %v8286_v5, %v8286_v5  ;;  %v3119_v52 = vadd.f32 %v3118_v1, %v3117_v15  ;;  %v3085_v49 = vmul.f32 %v6385_v44, %v6385_v44  ;;  %v3120_v29 = vsel %vm2465_vm5, %v3083_v39, 0.0 }
 0x362   : > { %v3037_v4 = vadd.f32 %v3036_v21, %v3035_v61  ;;  %v2898_v61 = vmul.f32 %v8288_v47, %v8288_v47  ;;  %v2941_v40 = vsel %vm2465_vm5, %v2892_v13, 0.0  ;;  %v2994_v21 = vmul.f32 %v6286_v17, %v6286_v17  ;;  %v8290_v47 = vld [vmem:[#allocation9_spill] sm:$0xff] }
 0x363   : > { %v3121_v50 = vadd.f32 %v3120_v29, %v3119_v52  ;;  %v2942_v5 = vadd.f32 %v2941_v40, %v2940_v30  ;;  %v3086_v15 = vmul.f32 %v6389_v35, %v6389_v35  ;;  %v3122_v9 = vsel %vm2465_vm5, %v3084_v60, 0.0  ;;  %v8292_v30 = vld [vmem:[#allocation17_spill] sm:$0xff] }
 0x364   : > { %v3039_v53 = vadd.f32 %v3038_v42, %v3037_v4  ;;  %v3042_v4 = vsel %vm2465_vm5, %v2993_v48, 0.0  ;;  %v8289_v42 = vld [vmem:[#allocation5_spill] sm:$0xff]  ;;  %v2900_v39 = vmul.f32 %v8290_v47, %v8290_v47  ;;  %v6689_v52 = vmul.f32 %v8292_v30, %v8292_v30 }
 0x365   : > { %v2899_v1 = vmul.f32 %v8289_v42, %v8289_v42  ;;  %v3123_v0 = vadd.f32 %v3122_v9, %v3121_v50  ;;  %v3087_v48 = vmul.f32 %v6393_v28, %v6393_v28  ;;  %v3124_v60 = vsel %vm2465_vm5, %v3085_v49, 0.0 }
 0x366   : > { %v3041_v2 = vadd.f32 %v3040_v14, %v3039_v53  ;;  %v6685_v53 = vmul.f32 %v8291_v55, %v8291_v55  ;;  %v2943_v14 = vsel %vm2465_vm5, %v2893_v19, 0.0  ;;  %v2995_v29 = vmul.f32 %v6293_v34, %v6293_v34  ;;  %v8293_v55 = vld [vmem:[#allocation21_spill] sm:$0xff] }
 0x367   : > { %v3044_v40 = vsel %vm2465_vm5, %v2994_v21, 0.0  ;;  %v2944_v50 = vadd.f32 %v2943_v14, %v2942_v5  ;;  %v3088_v9 = vmul.f32 %v6397_v27, %v6397_v27  ;;  %v3126_v30 = vsel %vm2465_vm5, %v3086_v15, 0.0  ;;  %v8295_v14 = vld [vmem:[#allocation84_spill] sm:$0xff] }
 0x368   : > { %v3043_v13 = vadd.f32 %v3042_v4, %v3041_v2  ;;  %v3125_v2 = vadd.f32 %v3124_v60, %v3123_v0  ;;  %v6703_v42 = vmul.f32 %v8293_v55, %v8293_v55  ;;  %v2945_v49 = vsel %vm2465_vm5, %v2894_v63, 0.0 }
 0x369   : > { %v2947_v19 = vsel %vm2465_vm5, %v2895_v38, 0.0  ;;  %v2949_v28 = vsel %vm2465_vm5, %v2896_v7, 0.0  ;;  %v2951_v0 = vsel %vm2465_vm5, %v2897_v51, 0.0  ;;  %v3089_v5 = vmul.f32 %v6406_v54, %v6406_v54 }
 0x36a   : > { %v3045_v4 = vadd.f32 %v3044_v40, %v3043_v13  ;;  %v3127_v47 = vadd.f32 %v3126_v30, %v3125_v2  ;;  %v3128_v21 = vsel %vm2465_vm5, %v3087_v48, 0.0  ;;  %v8294_v13 = vld [vmem:[#allocation38_spill] sm:$0xff]  ;;  %v3046_v60 = vsel %vm2465_vm5, %v2995_v29, 0.0 }
 0x36b   : > { %v2996_v15 = vmul.f32 %v8294_v13, %v8294_v13  ;;  %v3090_v63 = vmul.f32 %v8295_v14, %v8295_v14  ;;  %v2946_v38 = vadd.f32 %v2945_v49, %v2944_v50  ;;  %v3130_v7 = vsel %vm2465_vm5, %v3088_v9, 0.0 }
 0x36c   : > { %v3129_v40 = vadd.f32 %v3128_v21, %v3127_v47  ;;  %v3047_v30 = vadd.f32 %v3046_v60, %v3045_v4  ;;  %v3179_v51 = vmul.f32 %v6498_v56, %v6498_v56  ;;  %v2953_v2 = vsel %vm2465_vm5, %v2898_v61, 0.0  ;;  %v8296_v47 = vld [vmem:[#allocation39_spill] sm:$0xff]  ;;  %v8297_v56 = vld [vmem:[#allocation40_spill] sm:$0xff] }
 0x36d   : > { %v6722_v48 = vsel %vm2465_vm5, %v2899_v1, 0.0  ;;  %v3180_v29 = vmul.f32 %v6502_v46, %v6502_v46  ;;  %v6727_v27 = vsel %vm2465_vm5, %v2900_v39, 0.0  ;;  %v2997_v50 = vmul.f32 %v8296_v47, %v8296_v47 }
 0x36e   : > { %v3131_v55 = vadd.f32 %v3130_v7, %v3129_v40  ;;  %v3091_v4 = vmul.f32 %v6416_v25, %v6416_v25  ;;  %v3132_v9 = vsel %vm2465_vm5, %v3089_v5, 0.0  ;;  %v3048_v61 = vsel %vm2465_vm5, %v2996_v15, 0.0 }
 0x36f   : > { %v3092_v1 = vmul.f32 %v6420_v23, %v6420_v23  ;;  %v3181_v21 = vmul.f32 %v6506_v41, %v6506_v41  ;;  %v2948_v60 = vadd.f32 %v2947_v19, %v2946_v38  ;;  %v3049_v39 = vadd.f32 %v3048_v61, %v3047_v30  ;;  %v8298_v41 = vld [vmem:[#allocation41_spill] sm:$0xff] }
 0x370   : > { %v3133_v49 = vadd.f32 %v3132_v9, %v3131_v55  ;;  %v3134_v40 = vsel %vm2465_vm5, %v3090_v63, 0.0  ;;  %v3211_v7 = vsel %vm2465_vm5, %v3179_v51, 0.0  ;;  %v2998_v46 = vmul.f32 %v8297_v56, %v8297_v56 }
 0x371   : > { %v3182_v5 = vmul.f32 %v6510_v59, %v6510_v59  ;;  %v3212_v15 = vsel %vm2465_vm5, %v3180_v29, 0.0  ;;  %v3050_v55 = vsel %vm2465_vm5, %v2997_v50, 0.0  ;;  %v3093_v9 = vmul.f32 %v6427_v58, %v6427_v58 }
 0x372   : > { %v3135_v14 = vadd.f32 %v3134_v40, %v3133_v49  ;;  %v3136_v19 = vsel %vm2465_vm5, %v3091_v4, 0.0  ;;  %v3213_v38 = vadd.f32 %v3212_v15, %v3211_v7  ;;  %v3094_v63 = vmul.f32 %v6431_v33, %v6431_v33 }
 0x373   : > { %v3183_v51 = vmul.f32 %v6514_v20, %v6514_v20  ;;  %v3214_v61 = vsel %vm2465_vm5, %v3181_v21, 0.0  ;;  %v2950_v49 = vadd.f32 %v2949_v28, %v2948_v60  ;;  %v3051_v40 = vadd.f32 %v3050_v55, %v3049_v39  ;;  %v8299_v60 = vld [vmem:[#allocation88_spill] sm:$0xff] }
 0x374   : > { %v3137_v30 = vadd.f32 %v3136_v19, %v3135_v14  ;;  %v3138_v29 = vsel %vm2465_vm5, %v3092_v1, 0.0  ;;  %v3215_v50 = vadd.f32 %v3214_v61, %v3213_v38  ;;  %v2999_v59 = vmul.f32 %v8298_v41, %v8298_v41  ;;  %v8300_v61 = vld [vmem:[#allocation42_spill] sm:$0xff] }
 0x375   : > { %v3184_v4 = vmul.f32 %v6521_v8, %v6521_v8  ;;  %v3216_v7 = vsel %vm2465_vm5, %v3182_v5, 0.0  ;;  %v3052_v14 = vsel %vm2465_vm5, %v2998_v46, 0.0  ;;  %v3095_v15 = vmul.f32 %v6435_v18, %v6435_v18 }
 0x376   : > { %v3139_v58 = vadd.f32 %v3138_v29, %v3137_v30  ;;  %v3140_v28 = vsel %vm2465_vm5, %v3093_v9, 0.0  ;;  %v3217_v21 = vadd.f32 %v3216_v7, %v3215_v50  ;;  %v3096_v1 = vmul.f32 %v8299_v60, %v8299_v60 }
 0x377   : > { %v3185_v55 = vmul.f32 %v6528_v43, %v6528_v43  ;;  %v3218_v19 = vsel %vm2465_vm5, %v3183_v51, 0.0  ;;  %v2952_v38 = vadd.f32 %v2951_v0, %v2950_v49  ;;  %v3053_v30 = vadd.f32 %v3052_v14, %v3051_v40 }
 0x378   : > { %v3141_v39 = vadd.f32 %v3140_v28, %v3139_v58  ;;  %v3142_v5 = vsel %vm2465_vm5, %v3094_v63, 0.0  ;;  %v3219_v46 = vadd.f32 %v3218_v19, %v3217_v21  ;;  %v3000_v29 = vmul.f32 %v8300_v61, %v8300_v61 }
 0x379   : > { %v3186_v9 = vmul.f32 %v6535_v6, %v6535_v6  ;;  %v3220_v50 = vsel %vm2465_vm5, %v3184_v4, 0.0  ;;  %v3054_v58 = vsel %vm2465_vm5, %v2999_v59, 0.0  ;;  %v3097_v7 = vmul.f32 %v6447_v57, %v6447_v57 }
 0x37a   : > { %v3143_v8 = vadd.f32 %v3142_v5, %v3141_v39  ;;  %v3144_v0 = vsel %vm2465_vm5, %v3095_v15, 0.0  ;;  %v3221_v51 = vadd.f32 %v3220_v50, %v3219_v46  ;;  %v3098_v63 = vmul.f32 %v6454_v36, %v6454_v36  ;;  %v8301_v39 = vld [vmem:[#allocation43_spill] sm:$0xff] }
 0x37b   : > { %v3187_v40 = vmul.f32 %v6539_v45, %v6539_v45  ;;  %v3222_v14 = vsel %vm2465_vm5, %v3185_v55, 0.0  ;;  %v2954_v28 = vadd.f32 %v2953_v2, %v2952_v38  ;;  %v3055_v21 = vadd.f32 %v3054_v58, %v3053_v30 }
 0x37c   : > { %v3145_v49 = vadd.f32 %v3144_v0, %v3143_v8  ;;  %v3146_v4 = vsel %vm2465_vm5, %v3096_v1, 0.0  ;;  %v3223_v59 = vadd.f32 %v3222_v14, %v3221_v51  ;;  %v3001_v19 = vmul.f32 %v8301_v39, %v8301_v39 }
 0x37d   : > { %v3188_v15 = vmul.f32 %v6543_v10, %v6543_v10  ;;  %v3224_v46 = vsel %vm2465_vm5, %v3186_v9, 0.0  ;;  %v3056_v8 = vsel %vm2465_vm5, %v3000_v29, 0.0  ;;  %v3099_v50 = vmul.f32 %v6461_v31, %v6461_v31 }
 0x37e   : > { %v3147_v5 = vadd.f32 %v3146_v4, %v3145_v49  ;;  %v3148_v2 = vsel %vm2465_vm5, %v3097_v7, 0.0  ;;  %v3225_v55 = vadd.f32 %v3224_v46, %v3223_v59  ;;  %v3100_v1 = vmul.f32 %v6465_v12, %v6465_v12  ;;  %v8302_v49 = vld [vmem:[#allocation44_spill] sm:$0xff]  ;;  %v8303_v46 = vld [vmem:[#allocation90_spill] sm:$0xff] }
 0x37f   : > { %v3189_v30 = vmul.f32 %v6547_v11, %v6547_v11  ;;  %v3226_v58 = vsel %vm2465_vm5, %v3187_v40, 0.0  ;;  %v2956_v0 = vadd.f32 %v6722_v48, %v2954_v28  ;;  %v3057_v9 = vadd.f32 %v3056_v8, %v3055_v21  ;;  %v8304_v21 = vld [vmem:[#allocation92_spill] sm:$0xff] }
 0x380   : > { %v3149_v38 = vadd.f32 %v3148_v2, %v3147_v5  ;;  %v3150_v29 = vsel %vm2465_vm5, %v3098_v63, 0.0  ;;  %v3227_v51 = vadd.f32 %v3226_v58, %v3225_v55  ;;  %v3002_v14 = vmul.f32 %v8302_v49, %v8302_v49  ;;  %v8305_v2 = vld [vmem:[#allocation89_spill] sm:$0xff] }
 0x381   : > { %v3190_v4 = vmul.f32 %v6551_v62, %v6551_v62  ;;  %v3228_v59 = vsel %vm2465_vm5, %v3188_v15, 0.0  ;;  %v3058_v5 = vsel %vm2465_vm5, %v3001_v19, 0.0  ;;  %v3101_v40 = vmul.f32 %v8303_v46, %v8303_v46 }
 0x382   : > { %v3151_v7 = vadd.f32 %v3150_v29, %v3149_v38  ;;  %v3152_v48 = vsel %vm2465_vm5, %v3099_v50, 0.0  ;;  %v3229_v28 = vadd.f32 %v3228_v59, %v3227_v51  ;;  %v3102_v63 = vmul.f32 %v8304_v21, %v8304_v21  ;;  %v8306_v59 = vld [vmem:[#allocation45_spill] sm:$0xff] }
 0x383   : > { %v3191_v55 = vmul.f32 %v8305_v2, %v8305_v2  ;;  %v3230_v38 = vsel %vm2465_vm5, %v3189_v30, 0.0  ;;  %v2958_v58 = vadd.f32 %v6727_v27, %v2956_v0  ;;  %v3059_v15 = vadd.f32 %v3058_v5, %v3057_v9  ;;  %v8307_v2 = vld [vmem:[#allocation94_spill] sm:$0xff] }
 0x384   : > { %v3153_v8 = vadd.f32 %v3152_v48, %v3151_v7  ;;  %v3154_v19 = vsel %vm2465_vm5, %v3100_v1, 0.0  ;;  %v3231_v29 = vadd.f32 %v3230_v38, %v3229_v28  ;;  %v2959_v62 = vsel %vm2465_vm5, %v6685_v53, 0.0 }
 0x385   : > { %v3192_v51 = vmul.f32 %v6565_v3, %v6565_v3  ;;  %v3232_v7 = vsel %vm2465_vm5, %v3190_v4, 0.0  ;;  %v3003_v48 = vmul.f32 %v8306_v59, %v8306_v59  ;;  %v3103_v30 = vmul.f32 %v8307_v2, %v8307_v2 }
 0x386   : > { %v3155_v50 = vadd.f32 %v3154_v19, %v3153_v8  ;;  %v3156_v27 = vsel %vm2465_vm5, %v3101_v40, 0.0  ;;  %v3233_v0 = vadd.f32 %v3232_v7, %v3231_v29  ;;  %v3060_v1 = vsel %vm2465_vm5, %v3002_v14, 0.0  ;;  %v8308_v19 = vld [vmem:[#allocation96_spill] sm:$0xff]  ;;  %v8310_v7 = vld [vmem:[#allocation97_spill] sm:$0xff] }
 0x387   : > { %v3193_v53 = vmul.f32 %v6572_v32, %v6572_v32  ;;  %v3234_v5 = vsel %vm2465_vm5, %v3191_v55, 0.0  ;;  %v2960_v28 = vadd.f32 %v2959_v62, %v2958_v58  ;;  %v3061_v8 = vadd.f32 %v3060_v1, %v3059_v15  ;;  %v8311_v1 = vld [vmem:[#allocation35_spill] sm:$0xff] }
 0x388   : > { %v3157_v9 = vadd.f32 %v3156_v27, %v3155_v50  ;;  %v3158_v4 = vsel %vm2465_vm5, %v3102_v63, 0.0  ;;  %v3235_v38 = vadd.f32 %v3234_v5, %v3233_v0  ;;  %v3104_v3 = vmul.f32 %v8308_v19, %v8308_v19  ;;  %v8309_v50 = vld [vmem:[#allocation46_spill] sm:$0xff] }
 0x389   : > { %v3194_v40 = vmul.f32 %v6576_v26, %v6576_v26  ;;  %v3236_v14 = vsel %vm2465_vm5, %v3192_v51, 0.0  ;;  %v2961_v29 = vsel %vm2465_vm5, %v6689_v52, 0.0  ;;  %v3004_v55 = vmul.f32 %v8309_v50, %v8309_v50 }
 0x38a   : > { %v3159_v45 = vadd.f32 %v3158_v4, %v3157_v9  ;;  %v3160_v62 = vsel %vm2465_vm5, %v3103_v30, 0.0  ;;  %v3237_v58 = vadd.f32 %v3236_v14, %v3235_v38  ;;  %v3062_v63 = vsel %vm2465_vm5, %v3003_v48, 0.0  ;;  %v8313_v4 = vld [vmem:[#allocation98_spill] sm:$0xff]  ;;  %v8314_v38 = vld [vmem:[#allocation99_spill] sm:$0xff]  ;;  %v8315_v14 = vld [vmem:[#allocation25_spill] sm:$0xff] }
 0x38b   : > { %v3195_v27 = vmul.f32 %v8310_v7, %v8310_v7  ;;  %v3238_v0 = vsel %vm2465_vm5, %v3193_v53, 0.0  ;;  %v6849_v51 = vsub.f32 %v8311_v1, %v6048_v37  ;;  %v2962_v9 = vadd.f32 %v2961_v29, %v2960_v28 }
 0x38c   : > { %v3161_v15 = vadd.f32 %v3160_v62, %v3159_v45  ;;  %v3063_v52 = vadd.f32 %v3062_v63, %v3061_v8  ;;  %v3239_v5 = vadd.f32 %v3238_v0, %v3237_v58  ;;  %v3105_v32 = vmul.f32 %v8313_v4, %v8313_v4  ;;  %v8316_v8 = vld [vmem:[#allocation47_spill] sm:$0xff]  ;;  %v8317_v63 = vld [vmem:[#allocation101_spill] sm:$0xff] }
 0x38d   : > { %8312 = vst [vmem:[#allocation107_spill] sm:$0xff] %v6849_v51  ;;  %v3162_v30 = vsel %vm2465_vm5, %v3104_v3, 0.0  ;;  %v3196_v45 = vmul.f32 %v8314_v38, %v8314_v38  ;;  %v3240_v48 = vsel %vm2465_vm5, %v3194_v40, 0.0  ;;  %v2904_v53 = vmul.f32 %v8315_v14, %v8315_v14  ;;  %v8318_v40 = vld [vmem:[#allocation8_spill] sm:$0xff] }
 0x38e   : > { %v2963_v62 = vsel %vm2465_vm5, %v6703_v42, 0.0  ;;  %v3163_v1 = vadd.f32 %v3162_v30, %v3161_v15  ;;  %v3241_v28 = vadd.f32 %v3240_v48, %v3239_v5  ;;  %v3005_v29 = vmul.f32 %v8316_v8, %v8316_v8  ;;  %v8320_v42 = vld [vmem:[#allocation59_spill] sm:$0xff] }
 0x38f   : > { %v3064_v58 = vsel %vm2465_vm5, %v3004_v55, 0.0  ;;  %v3197_v3 = vmul.f32 %v8317_v63, %v8317_v63  ;;  %v3242_v0 = vsel %vm2465_vm5, %v3195_v27, 0.0  ;;  %v6869_v38 = vsub.f32 %v8318_v40, %v6048_v37  ;;  %v8321_v30 = vld [vmem:[#allocation103_spill] sm:$0xff]  ;;  %v8322_v63 = vld [vmem:[#allocation29_spill] sm:$0xff] }
 0x390   : > { %v2964_v26 = vadd.f32 %v2963_v62, %v2962_v9  ;;  %v3065_v7 = vadd.f32 %v3064_v58, %v3063_v52  ;;  %v3243_v14 = vadd.f32 %v3242_v0, %v3241_v28  ;;  %v3106_v15 = vmul.f32 %v8320_v42, %v8320_v42  ;;  %v8323_v9 = vld [vmem:[#allocation48_spill] sm:$0xff]  ;;  %v8324_v28 = vld [vmem:[#allocation105_spill] sm:$0xff] }
 0x391   : > { %8319 = vst [vmem:[#allocation109_spill] sm:$0xff] %v6869_v38  ;;  %v3164_v5 = vsel %vm2465_vm5, %v3105_v32, 0.0  ;;  %v3198_v55 = vmul.f32 %v8321_v30, %v8321_v30  ;;  %v3244_v48 = vsel %vm2465_vm5, %v3196_v45, 0.0  ;;  %v2905_v27 = vmul.f32 %v8322_v63, %v8322_v63  ;;  %v8325_v0 = vld [vmem:[#allocation53_spill] sm:$0xff] }
 0x392   : > { %v2965_v10 = vsel %vm2465_vm5, %v2904_v53, 0.0  ;;  %v3165_v40 = vadd.f32 %v3164_v5, %v3163_v1  ;;  %v3245_v11 = vadd.f32 %v3244_v48, %v3243_v14  ;;  %v3006_v52 = vmul.f32 %v8323_v9, %v8323_v9  ;;  %v8327_v53 = vld [vmem:[#allocation28_spill] sm:$0xff] }
 0x393   : > { %v3066_v62 = vsel %vm2465_vm5, %v3005_v29, 0.0  ;;  %v3199_v32 = vmul.f32 %v8324_v28, %v8324_v28  ;;  %v3246_v58 = vsel %vm2465_vm5, %v3197_v3, 0.0  ;;  %v6888_v45 = vsub.f32 %v8325_v0, %v6048_v37  ;;  %v8328_v48 = vld [vmem:[#allocation12_spill] sm:$0xff] }
 0x394   : > { %v2966_v30 = vadd.f32 %v2965_v10, %v2964_v26  ;;  %v3067_v63 = vadd.f32 %v3066_v62, %v3065_v7  ;;  %v3247_v43 = vadd.f32 %v3246_v58, %v3245_v11  ;;  %v3107_v14 = vmul.f32 %v8327_v53, %v8327_v53 }
 0x395   : > { %8326 = vst [vmem:[#allocation111_spill] sm:$0xff] %v6888_v45  ;;  %v3166_v1 = vsel %vm2465_vm5, %v3106_v15, 0.0  ;;  %v3200_v29 = vmul.f32 %v6849_v51, %v6849_v51  ;;  %v3248_v5 = vsel %vm2465_vm5, %v3198_v55, 0.0  ;;  %v6898_v3 = vsub.f32 %v8328_v48, %v6048_v37  ;;  %v8330_v15 = vld [vmem:[#allocation54_spill] sm:$0xff] }
 0x396   : > { %v3167_v28 = vadd.f32 %v3166_v1, %v3165_v40  ;;  %v3249_v0 = vadd.f32 %v3248_v5, %v3247_v43  ;;  %v2967_v26 = vsel %vm2465_vm5, %v2905_v27, 0.0  ;;  %v3068_v10 = vsel %vm2465_vm5, %v3006_v52, 0.0  ;;  %v8332_v48 = vld [vmem:[#allocation62_spill] sm:$0xff] }
 0x397   : > { %8329 = vst [vmem:[#allocation113_spill] sm:$0xff] %v6898_v3  ;;  %v3201_v11 = vmul.f32 %v6869_v38, %v6869_v38  ;;  %v3250_v7 = vsel %vm2465_vm5, %v3199_v32, 0.0  ;;  %v6907_v62 = vsub.f32 %v8330_v15, %v6048_v37  ;;  %v2968_v55 = vadd.f32 %v2967_v26, %v2966_v30  ;;  %v8333_v32 = vld [vmem:[#allocation16_spill] sm:$0xff] }
 0x398   : > { %v3069_v58 = vadd.f32 %v3068_v10, %v3067_v63  ;;  %v3251_v51 = vadd.f32 %v3250_v7, %v3249_v0  ;;  %v3108_v40 = vmul.f32 %v8332_v48, %v8332_v48  ;;  %v3168_v43 = vsel %vm2465_vm5, %v3107_v14, 0.0  ;;  %v8335_v14 = vld [vmem:[#allocation20_spill] sm:$0xff] }
 0x399   : > { %8331 = vst [vmem:[#allocation115_spill] sm:$0xff] %v6907_v62  ;;  %v3202_v27 = vmul.f32 %v6888_v45, %v6888_v45  ;;  %v3252_v52 = vsel %vm2465_vm5, %v3200_v29, 0.0  ;;  %v3169_v1 = vadd.f32 %v3168_v43, %v3167_v28  ;;  %v6917_v38 = vsub.f32 %v8333_v32, %v6048_v37 }
 0x39a   : > { %v3253_v5 = vadd.f32 %v3252_v52, %v3251_v51  ;;  %v3203_v63 = vmul.f32 %v6898_v3, %v6898_v3  ;;  %v3254_v30 = vsel %vm2465_vm5, %v3201_v11, 0.0  ;;  %v2969_v0 = vrot.slane %v2968_v55, 4  ;;  %v8337_v52 = vld [vmem:[#allocation24_spill] sm:$0xff] }
 0x39b   : > { %8334 = vst [vmem:[#allocation116_spill] sm:$0xff] %v6917_v38  ;;  %v3070_v26 = vrot.slane %v3069_v58, 4  ;;  %v6924_v7 = vsub.f32 %v8335_v14, %v6048_v37  ;;  %v3170_v29 = vsel %vm2465_vm5, %v3108_v40, 0.0  ;;  %v3204_v51 = vmul.f32 %v6907_v62, %v6907_v62  ;;  %v8339_v40 = vld [vmem:[#allocation60_spill] sm:$0xff] }
 0x39c   : > { %v3255_v10 = vadd.f32 %v3254_v30, %v3253_v5  ;;  %v3256_v28 = vsel %vm2465_vm5, %v3202_v27, 0.0  ;;  %v3171_v15 = vadd.f32 %v3170_v29, %v3169_v1  ;;  %v6932_v32 = vsub.f32 %v8337_v52, %v6048_v37 }
 0x39d   : > { %8336 = vst [vmem:[#allocation117_spill] sm:$0xff] %v6924_v7  ;;  %v3205_v11 = vmul.f32 %v6917_v38, %v6917_v38  ;;  %v3258_v5 = vsel %vm2465_vm5, %v3203_v63, 0.0  ;;  %v2970_v30 = vadd.f32 %v2969_v0, %v2968_v55  ;;  %v3071_v14 = vadd.f32 %v3070_v26, %v3069_v58 }
 0x39e   : > { %v3257_v43 = vadd.f32 %v3256_v28, %v3255_v10  ;;  %8338 = vst [vmem:[#allocation118_spill] sm:$0xff] %v6932_v32  ;;  %v6939_v3 = vsub.f32 %v8339_v40, %v6048_v37  ;;  %v3206_v27 = vmul.f32 %v6924_v7, %v6924_v7  ;;  %v3260_v1 = vsel %vm2465_vm5, %v3204_v51, 0.0  ;;  %v8342_v7 = vld [vmem:[#allocation123_spill] sm:$0xff] }
 0x39f   : > { %v3172_v10 = vrot.slane %v3171_v15, 4  ;;  %v3207_v28 = vmul.f32 %v6932_v32, %v6932_v32  ;;  %v3262_v52 = vsel %vm2465_vm5, %v3205_v11, 0.0  ;;  %v2971_v63 = vrot.slane %v2970_v30, 2 }
 0x3a0   : > { %v3259_v45 = vadd.f32 %v3258_v5, %v3257_v43  ;;  %8340 = vst [vmem:[#allocation37_spill] sm:$0xff] %v6939_v3  ;;  %v3072_v55 = vrot.slane %v3071_v14, 2  ;;  %v3208_v0 = vmul.f32 %v6939_v3, %v6939_v3  ;;  %v3264_v37 = vsel %vm2465_vm5, %v3206_v27, 0.0  ;;  %v8341_v5 = vld [vmem:[#allocation71_spill] sm:$0xff] }
 0x3a1   : > { %v3173_v26 = vadd.f32 %v3172_v10, %v3171_v15  ;;  %v3209_v51 = vmul.f32 %v8341_v5, %v8341_v5  ;;  %v2972_v40 = vadd.f32 %v2971_v63, %v2970_v30  ;;  %v3210_v11 = vmul.f32 %v8342_v7, %v8342_v7 }
 0x3a2   : > { %v3261_v29 = vadd.f32 %v3260_v1, %v3259_v45  ;;  %v3266_v45 = vsel %vm2465_vm5, %v3207_v28, 0.0  ;;  %v3073_v1 = vadd.f32 %v3072_v55, %v3071_v14 }
 0x3a3   : > { %v3270_v3 = vsel %vm2465_vm5, %v3209_v51, 0.0  ;;  %v2973_v27 = vrot.slane %v2972_v40, 1 }
 0x3a4   : > { %v3263_v58 = vadd.f32 %v3262_v52, %v3261_v29  ;;  %v3268_v29 = vsel %vm2465_vm5, %v3208_v0, 0.0  ;;  %v3174_v52 = vrot.slane %v3173_v26, 2  ;;  %v3074_v15 = vrot.slane %v3073_v1, 1 }
 0x3a5   : > { %v2974_v28 = vadd.f32 %v2973_v27, %v2972_v40 }
 0x3a6   : > { %v3265_v43 = vadd.f32 %v3264_v37, %v3263_v58  ;;  %v3272_v58 = vsel %vm2465_vm5, %v3210_v11, 0.0  ;;  %v3175_v37 = vadd.f32 %v3174_v52, %v3173_v26  ;;  %v3075_v30 = vadd.f32 %v3074_v15, %v3073_v1  ;;  %v8343_v52 = vld [vmem:[#allocation18_spill] sm:$0xff]  ;;  %v8345_v15 = vld [vmem:[#allocation33_spill] sm:$0xff] }
 0x3a8   : > { %v3267_v38 = vadd.f32 %v3266_v45, %v3265_v43  ;;  %v3176_v63 = vrot.slane %v3175_v37, 1  ;;  %v3076_v43 = vadd.f32 %v3075_v30, %v2974_v28 }
 0x3aa   : > { %v3269_v32 = vadd.f32 %v3268_v29, %v3267_v38  ;;  %v3177_v7 = vadd.f32 %v3176_v63, %v3175_v37 }
 0x3ac   : > { %v3271_v10 = vadd.f32 %v3270_v3, %v3269_v32  ;;  %v3178_v62 = vadd.f32 %v3177_v7, %v3076_v43 }
 0x3ae   : > { %v3273_v5 = vadd.f32 %v3272_v58, %v3271_v10  ;;  %v8346_v58 = vld [vmem:[#allocation22_spill] sm:$0xff] }
 0x3b0   : > { %v3274_v14 = vrot.slane %v3273_v5, 4 }
 0x3b2   : > { %v3275_v55 = vadd.f32 %v3274_v14, %v3273_v5  ;;  %v8347_v14 = vld [vmem:[#allocation14_spill] sm:$0xff] }
 0x3b4   : > { %v3276_v45 = vrot.slane %v3275_v55, 2 }
 0x3b6   : > { %v3277_v0 = vadd.f32 %v3276_v45, %v3275_v55  ;;  %v8348_v55 = vld [vmem:[#allocation6_spill] sm:$0xff] }
 0x3b7   : > { %v8349_v45 = vld [vmem:[#allocation34_spill] sm:$0xff] }
 0x3b8   : > { %v3278_v38 = vrot.slane %v3277_v0, 1 }
 0x3ba   : > { %v3279_v29 = vadd.f32 %v3278_v38, %v3277_v0 }
 0x3bc   : > { %v3280_v51 = vadd.f32 %v3279_v29, %v3178_v62 }
 0x3be   : > { %v3281_v6 = vmul.f32 0.0009765625, %v3280_v51 }
 0x3c0   : > { %v3282_v20 = vadd.f32 1e-05, %v3281_v6  ;;  %v8344_v6 = vld [vmem:[#allocation10_spill] sm:$0xff] }
 0x3c2   : > { %4637 = vrsqrt.f32 %v3282_v20  ;;  %vm3289_vm7 = vweird.f32 %v3282_v20 }
 0x3c8   : > { %v4638_v3 = vpop.eup %4637 }
 0x3c9   : > { %v3284_v32 = vmul.f32 %v4638_v3, %v3282_v20  ;;  %vm3290_vm6 = vweird.f32 %v4638_v3 }
 0x3ca   : > { %vm3291_vm8 = vmor %vm3289_vm7, %vm3290_vm6 }
 0x3cb   : > { %v3285_v26 = vmul.f32 %v4638_v3, %v3284_v32 }
 0x3cd   : > { %v3286_v11 = vmul.f32 0.5, %v3285_v26  ;;  %v8351_v26 = vld [vmem:[#allocation26_spill] sm:$0xff] }
 0x3cf   : > { %v3287_v40 = vsub.f32 1.5, %v3286_v11 }
 0x3d1   : > { %v3288_v1 = vmul.f32 %v4638_v3, %v3287_v40  ;;  %v8352_v40 = vld [vmem:[#allocation15_spill] sm:$0xff] }
 0x3d3   : > { %v6958_v5 = vsel %vm3291_vm8, %v4638_v3, %v3288_v1  ;;  %v8350_v3 = vld [vmem:[#allocation30_spill] sm:$0xff] }
 0x3d4   : > { %v3361_v7 = vmul.f32 %v6958_v5, %v8343_v52  ;;  %v3359_v62 = vmul.f32 %v6958_v5, %v8344_v6  ;;  %v3357_v10 = vmul.f32 %v6958_v5, %v8345_v15  ;;  %v3362_v37 = vmul.f32 %v6958_v5, %v8346_v58  ;;  %v8353_v6 = vld [vmem:[#allocation11_spill] sm:$0xff] }
 0x3d5   : > { %v3360_v63 = vmul.f32 %v6958_v5, %v8347_v14  ;;  %v3358_v43 = vmul.f32 %v6958_v5, %v8348_v55  ;;  %v3365_v0 = vmul.f32 %v6958_v5, %v8349_v45  ;;  %v3364_v32 = vmul.f32 %v6958_v5, %v8350_v3  ;;  %v8354_v15 = vld [vmem:[#allocation7_spill] sm:$0xff] }
 0x3d6   : > { %v3393_v27 = vmax.f32 %v3361_v7, 0.0  ;;  %v3391_v20 = vmax.f32 %v3359_v62, 0.0  ;;  %v3389_v28 = vmax.f32 %v3357_v10, 0.0  ;;  %v3394_v30 = vmax.f32 %v3362_v37, 0.0  ;;  %v8355_v58 = vld [vmem:[#allocation27_spill] sm:$0xff] }
 0x3d7   : > { %v3392_v38 = vmax.f32 %v3360_v63, 0.0  ;;  %v3390_v29 = vmax.f32 %v3358_v43, 0.0  ;;  %v3397_v51 = vmax.f32 %v3365_v0, 0.0  ;;  %v3363_v11 = vmul.f32 %v6958_v5, %v8351_v26  ;;  %v8356_v14 = vld [vmem:[#allocation23_spill] sm:$0xff] }
 0x3d8   : > { %3589 = vrot.lane.b32.xlu2 %v3393_v27, %s4737_s28  ;;  %3585 = vrot.lane.b32.xlu1 %v3391_v20, %s4737_s28  ;;  %v3368_v1 = vmul.f32 %v6958_v5, %v8352_v40  ;;  %v3396_v52 = vmax.f32 %v3364_v32, 0.0  ;;  %v3367_v62 = vmul.f32 %v6958_v5, %v8353_v6  ;;  %v3366_v10 = vmul.f32 %v6958_v5, %v8354_v15  ;;  %v8357_v55 = vld [vmem:[#allocation19_spill] sm:$0xff] }
 0x3d9   : > { %3581 = vrot.lane.b32.xlu0 %v3389_v28, %s4737_s28  ;;  %v3395_v7 = vmax.f32 %v3363_v11, 0.0  ;;  %v3371_v37 = vmul.f32 %v6958_v5, %v8355_v58  ;;  %v3370_v63 = vmul.f32 %v6958_v5, %v8356_v14  ;;  %v3369_v43 = vmul.f32 %v6958_v5, %v8357_v55  ;;  %v8358_v3 = vld [vmem:[#allocation31_spill] sm:$0xff] }
 0x3da   : > { %v3400_v27 = vmax.f32 %v3368_v1, 0.0  ;;  %v3399_v20 = vmax.f32 %v3367_v62, 0.0  ;;  %v3398_v28 = vmax.f32 %v3366_v10, 0.0  ;;  %v3374_v45 = vmul.f32 %v6958_v5, %v6278_v24 }
 0x3db   : > { %v3402_v0 = vmax.f32 %v3370_v63, 0.0  ;;  %v3372_v32 = vmul.f32 %v6958_v5, %v8358_v3  ;;  %v3377_v26 = vmul.f32 %v6958_v5, %v6293_v34  ;;  %v3376_v1 = vmul.f32 %v6958_v5, %v6286_v17 }
 0x3dc   : > { %v3379_v6 = vmul.f32 %v6958_v5, %v8296_v47  ;;  %v3378_v17 = vmul.f32 %v6958_v5, %v8294_v13  ;;  %v3382_v10 = vmul.f32 %v6958_v5, %v8300_v61  ;;  %v3381_v47 = vmul.f32 %v6958_v5, %v8298_v41 }
 0x3dd   : > { %v3404_v24 = vmax.f32 %v3372_v32, 0.0  ;;  %v3409_v40 = vmax.f32 %v3377_v26, 0.0  ;;  %v3386_v13 = vmul.f32 %v6958_v5, %v8309_v50  ;;  %v3384_v61 = vmul.f32 %v6958_v5, %v8302_v49  ;;  %v8360_v49 = vld [vmem:[#allocation52_spill] sm:$0xff] }
 0x3de   : > { %v3411_v62 = vmax.f32 %v3379_v6, 0.0  ;;  %v3414_v58 = vmax.f32 %v3382_v10, 0.0  ;;  %v3388_v63 = vmul.f32 %v6958_v5, %v8323_v9  ;;  %v3424_v55 = vmul.f32 %v6958_v5, %v8360_v49  ;;  %v8362_v9 = vld [vmem:[#allocation51_spill] sm:$0xff]  ;;  %v8366_v6 = vld [vmem:[#allocation56_spill] sm:$0xff] }
 0x3df   : > { %v3416_v50 = vmax.f32 %v3384_v61, 0.0  ;;  %v3423_v3 = vmul.f32 %v6958_v5, %v8362_v9  ;;  %v3429_v61 = vmul.f32 %v6958_v5, %v6385_v44  ;;  %v8373_v9 = vld [vmem:[#allocation61_spill] sm:$0xff] }
 0x3e0   : > { %3591 = vrot.lane.b32.xlu2 %v3394_v30, %s4737_s28  ;;  %3587 = vrot.lane.b32.xlu1 %v3392_v38, %s4737_s28  ;;  %v3403_v30 = vmax.f32 %v3371_v37, 0.0  ;;  %v3401_v38 = vmax.f32 %v3369_v43, 0.0  ;;  %v3418_v37 = vmax.f32 %v3386_v13, 0.0  ;;  %v8361_v43 = vld [vmem:[#allocation67_spill] sm:$0xff] }
 0x3e1   : > { %3583 = vrot.lane.b32.xlu0 %v3390_v29, %s4737_s28  ;;  %v3406_v29 = vmax.f32 %v3374_v45, 0.0  ;;  %v3297_v45 = vmul.f32 %v6958_v5, %v8361_v43  ;;  %v8371_v43 = vld [vmem:[#allocation82_spill] sm:$0xff] }
 0x3e8   : > { %3597 = vrot.lane.b32.xlu2 %v3397_v51, %s4737_s28  ;;  %3595 = vrot.lane.b32.xlu1 %v3396_v52, %s4737_s28  ;;  %v3373_v51 = vmul.f32 %v6958_v5, %v8283_v22  ;;  %v3375_v22 = vmul.f32 %v6958_v5, %v6282_v16  ;;  %v3380_v52 = vmul.f32 %v6958_v5, %v8297_v56  ;;  %v3410_v56 = vmax.f32 %v3378_v17, 0.0 }
 0x3e9   : > { %3593 = vrot.lane.b32.xlu0 %v3395_v7, %s4737_s28  ;;  %v3408_v7 = vmax.f32 %v3376_v1, 0.0  ;;  %v3383_v16 = vmul.f32 %v6958_v5, %v8301_v39  ;;  %v3413_v39 = vmax.f32 %v3381_v47, 0.0  ;;  %v8365_v1 = vld [vmem:[#allocation66_spill] sm:$0xff]  ;;  %v3426_v17 = vmul.f32 %v6958_v5, %v8366_v6  ;;  %v8368_v47 = vld [vmem:[#allocation69_spill] sm:$0xff] }
 0x3ea   : > { %v3405_v11 = vmax.f32 %v3373_v51, 0.0  ;;  %v3407_v34 = vmax.f32 %v3375_v22, 0.0  ;;  %v3329_v51 = vmax.f32 %v3297_v45, 0.0  ;;  %v3298_v22 = vmul.f32 %v6958_v5, %v8365_v1 }
 0x3eb   : > { %v3415_v15 = vmax.f32 %v3383_v16, 0.0  ;;  %v8367_v16 = vld [vmem:[#allocation55_spill] sm:$0xff]  ;;  %v3301_v13 = vmul.f32 %v6958_v5, %v8368_v47  ;;  %v3432_v45 = vmul.f32 %v6958_v5, %v8371_v43  ;;  %v3435_v6 = vmul.f32 %v6958_v5, %v6416_v25  ;;  %v8378_v25 = vld [vmem:[#allocation64_spill] sm:$0xff] }
 0x3ec   : > { %v3439_v47 = vmul.f32 %v6958_v5, %v6435_v18 }
 0x3f0   : > { %3603 = vrot.lane.b32.xlu2 %v3400_v27, %s4737_s28  ;;  %3601 = vrot.lane.b32.xlu1 %v3399_v20, %s4737_s28  ;;  %v3412_v27 = vmax.f32 %v3380_v52, 0.0  ;;  %v3385_v20 = vmul.f32 %v6958_v5, %v8306_v59  ;;  %v3387_v59 = vmul.f32 %v6958_v5, %v8316_v8  ;;  %v8363_v8 = vld [vmem:[#allocation50_spill] sm:$0xff]  ;;  %v3455_v52 = vmax.f32 %v3423_v3, 0.0 }
 0x3f1   : > { %3599 = vrot.lane.b32.xlu0 %v3398_v28, %s4737_s28  ;;  %v8359_v28 = vld [vmem:[#allocation49_spill] sm:$0xff]  ;;  %v3422_v32 = vmul.f32 %v6958_v5, %v8363_v8  ;;  %v3293_v3 = vmul.f32 %v6958_v5, %v8373_v9 }
 0x3f2   : > { %v3421_v41 = vmul.f32 %v6958_v5, %v8359_v28  ;;  %v8374_v8 = vld [vmem:[#allocation65_spill] sm:$0xff] }
 0x3f4   : > { %v3453_v14 = vmax.f32 %v3421_v41, 0.0 }
 0x3f8   : > { %3609 = vrot.lane.b32.xlu2 %v3403_v30, %s4737_s28  ;;  %3607 = vrot.lane.b32.xlu1 %v3402_v0, %s4737_s28  ;;  %v3417_v30 = vmax.f32 %v3385_v20, 0.0  ;;  %v3420_v0 = vmax.f32 %v3388_v63, 0.0  ;;  %v3333_v20 = vmax.f32 %v3301_v13, 0.0 }
 0x3f9   : > { %3605 = vrot.lane.b32.xlu0 %v3401_v38, %s4737_s28  ;;  %v3419_v38 = vmax.f32 %v3387_v59, 0.0  ;;  %v3461_v59 = vmax.f32 %v3429_v61, 0.0 }
 0x400   : > { %3615 = vrot.lane.b32.xlu2 %v3406_v29, %s4737_s28  ;;  %3613 = vrot.lane.b32.xlu1 %v3405_v11, %s4737_s28  ;;  %v3456_v29 = vmax.f32 %v3424_v55, 0.0 }
 0x401   : > { %3611 = vrot.lane.b32.xlu0 %v3404_v24, %s4737_s28  ;;  %v8364_v24 = vld [vmem:[#allocation57_spill] sm:$0xff] }
 0x408   : > { %3621 = vrot.lane.b32.xlu2 %v3409_v40, %s4737_s28  ;;  %3619 = vrot.lane.b32.xlu1 %v3408_v7, %s4737_s28  ;;  %v3427_v40 = vmul.f32 %v6958_v5, %v8364_v24  ;;  %v3454_v7 = vmax.f32 %v3422_v32, 0.0  ;;  %v3295_v32 = vmul.f32 %v6958_v5, %v8374_v8  ;;  %v8383_v8 = vld [vmem:[#allocation76_spill] sm:$0xff] }
 0x409   : > { %3617 = vrot.lane.b32.xlu0 %v3407_v34, %s4737_s28 }
 0x40a   : > { %v3459_v34 = vmax.f32 %v3427_v40, 0.0  ;;  %v3464_v40 = vmax.f32 %v3432_v45, 0.0 }
 0x410   : > { %3627 = vrot.lane.b32.xlu2 %v3412_v27, %s4737_s28  ;;  %3625 = vrot.lane.b32.xlu1 %v3411_v62, %s4737_s28  ;;  %v3330_v27 = vmax.f32 %v3298_v22, 0.0  ;;  %v3425_v62 = vmul.f32 %v6958_v5, %v8367_v16 }
 0x411   : > { %3623 = vrot.lane.b32.xlu0 %v3410_v56, %s4737_s28 }
 0x418   : > { %3633 = vrot.lane.b32.xlu2 %v3415_v15, %s4737_s28  ;;  %3631 = vrot.lane.b32.xlu1 %v3414_v58, %s4737_s28  ;;  %v3430_v15 = vmul.f32 %v6958_v5, %v6389_v35  ;;  %v3458_v58 = vmax.f32 %v3426_v17, 0.0  ;;  %v8369_v35 = vld [vmem:[#allocation58_spill] sm:$0xff]  ;;  %v8376_v17 = vld [vmem:[#allocation84_spill] sm:$0xff] }
 0x419   : > { %3629 = vrot.lane.b32.xlu0 %v3413_v39, %s4737_s28  ;;  %v3457_v39 = vmax.f32 %v3425_v62, 0.0  ;;  %v3428_v28 = vmul.f32 %v6958_v5, %v8369_v35  ;;  %v3434_v16 = vmul.f32 %v6958_v5, %v8376_v17  ;;  %v3467_v35 = vmax.f32 %v3435_v6, 0.0 }
 0x41b   : > { %v3460_v49 = vmax.f32 %v3428_v28, 0.0  ;;  %v3466_v28 = vmax.f32 %v3434_v16, 0.0  ;;  %v3445_v16 = vmul.f32 %v6958_v5, %v8303_v46 }
 0x420   : > { %3639 = vrot.lane.b32.xlu2 %v3418_v37, %s4737_s28  ;;  %3637 = vrot.lane.b32.xlu1 %v3417_v30, %s4737_s28  ;;  %v3462_v37 = vmax.f32 %v3430_v15, 0.0  ;;  %v3433_v30 = vmul.f32 %v6958_v5, %v6406_v54  ;;  %v8372_v54 = vld [vmem:[#allocation80_spill] sm:$0xff] }
 0x421   : > { %3635 = vrot.lane.b32.xlu0 %v3416_v50, %s4737_s28 }
 0x422   : > { %v3465_v55 = vmax.f32 %v3433_v30, 0.0 }
 0x428   : > { %3709 = vrot.lane.b32.xlu2 %v3453_v14, %s4738_s29  ;;  %3643 = vrot.lane.b32.xlu1 %v3420_v0, %s4737_s28  ;;  %v8370_v14 = vld [vmem:[#allocation124_spill] sm:$0xff]  ;;  %v3431_v0 = vmul.f32 %v6958_v5, %v8372_v54 }
 0x429   : > { %3641 = vrot.lane.b32.xlu0 %v3419_v38, %s4737_s28  ;;  %v3304_v63 = vmul.f32 %v6958_v5, %v8370_v14 }
 0x42a   : > { %v3463_v1 = vmax.f32 %v3431_v0, 0.0  ;;  %v3442_v0 = vmul.f32 %v6958_v5, %v6454_v36 }
 0x42b   : > { %v3336_v44 = vmax.f32 %v3304_v63, 0.0 }
 0x430   : > { %3715 = vrot.lane.b32.xlu2 %v3456_v29, %s4738_s29  ;;  %3713 = vrot.lane.b32.xlu1 %v3455_v52, %s4738_s29  ;;  %v3436_v29 = vmul.f32 %v6958_v5, %v6420_v23  ;;  %v3325_v23 = vmax.f32 %v3293_v3, 0.0  ;;  %v3327_v52 = vmax.f32 %v3295_v32, 0.0  ;;  %v3313_v32 = vmul.f32 %v6958_v5, %v8383_v8 }
 0x431   : > { %3711 = vrot.lane.b32.xlu0 %v3454_v7, %s4738_s29 }
 0x432   : > { %v3590_v26 = vpop.permute.xlu2 %3589  ;;  %v3468_v22 = vmax.f32 %v3436_v29, 0.0  ;;  %v8381_v29 = vld [vmem:[#allocation119_spill] sm:$0xff] }
 0x433   : > { %v7069_v11 = vsel %vm2465_vm5, %v3329_v51, %v3590_v26  ;;  %v8375_v26 = vld [vmem:[#allocation125_spill] sm:$0xff]  ;;  %v3299_v9 = vmul.f32 %v6958_v5, %v8381_v29 }
 0x434   : > { %v3307_v24 = vmul.f32 %v6958_v5, %v8375_v26 }
 0x435   : > { %v3331_v36 = vmax.f32 %v3299_v9, 0.0 }
 0x436   : > { %v3339_v7 = vmax.f32 %v3307_v24, 0.0 }
 0x438   : > { %3721 = vrot.lane.b32.xlu2 %v3459_v34, %s4738_s29  ;;  %3719 = vrot.lane.b32.xlu1 %v3458_v58, %s4738_s29  ;;  %v8377_v58 = vld [vmem:[#allocation63_spill] sm:$0xff] }
 0x439   : > { %3717 = vrot.lane.b32.xlu0 %v3457_v39, %s4738_s29  ;;  %v3294_v39 = vmul.f32 %v6958_v5, %v8377_v58 }
 0x43a   : > { %v3592_v56 = vpop.permute.xlu2 %3591 }
 0x43b   : > { %v7085_v10 = vsel %vm2465_vm5, %v3330_v27, %v3592_v56  ;;  %v3326_v18 = vmax.f32 %v3294_v39, 0.0 }
 0x440   : > { %3727 = vrot.lane.b32.xlu2 %v3462_v37, %s4738_s29  ;;  %3725 = vrot.lane.b32.xlu1 %v3461_v59, %s4738_s29  ;;  %v3296_v37 = vmul.f32 %v6958_v5, %v8378_v25 }
 0x441   : > { %3723 = vrot.lane.b32.xlu0 %v3460_v49, %s4738_s29  ;;  %v3438_v49 = vmul.f32 %v6958_v5, %v6431_v33  ;;  %v8382_v33 = vld [vmem:[#allocation121_spill] sm:$0xff] }
 0x442   : > { %v3598_v41 = vpop.permute.xlu2 %3597  ;;  %v3328_v30 = vmax.f32 %v3296_v37, 0.0  ;;  %v3300_v3 = vmul.f32 %v6958_v5, %v8382_v33 }
 0x443   : > { %v7099_v50 = vsel %vm2465_vm5, %v3333_v20, %v3598_v41  ;;  %v8379_v20 = vld [vmem:[#allocation77_spill] sm:$0xff]  ;;  %v3471_v41 = vmax.f32 %v3439_v47, 0.0  ;;  %v3470_v26 = vmax.f32 %v3438_v49, 0.0  ;;  %v8384_v47 = vld [vmem:[#allocation120_spill] sm:$0xff] }
 0x444   : > { %v3310_v61 = vmul.f32 %v6958_v5, %v8379_v20  ;;  %v3302_v58 = vmul.f32 %v6958_v5, %v8384_v47 }
 0x446   : > { %v3342_v14 = vmax.f32 %v3310_v61, 0.0  ;;  %v3477_v61 = vmax.f32 %v3445_v16, 0.0  ;;  %v3334_v46 = vmax.f32 %v3302_v58, 0.0 }
 0x448   : > { %3733 = vrot.lane.b32.xlu2 %v3465_v55, %s4738_s29  ;;  %3731 = vrot.lane.b32.xlu1 %v3464_v40, %s4738_s29  ;;  %v8380_v55 = vld [vmem:[#allocation86_spill] sm:$0xff]  ;;  %v3474_v40 = vmax.f32 %v3442_v0, 0.0 }
 0x449   : > { %3729 = vrot.lane.b32.xlu0 %v3463_v1, %s4738_s29  ;;  %v3332_v1 = vmax.f32 %v3300_v3, 0.0 }
 0x44a   : > { %v3604_v38 = vpop.permute.xlu2 %3603  ;;  %v3586_v34 = vpop.permute.xlu1 %3585 }
 0x44b   : > { %v7113_v51 = vsel %vm2465_vm5, %v3336_v44, %v3604_v38  ;;  %v3582_v27 = vpop.permute.xlu0 %3581  ;;  %v7129_v62 = vsel %vm2465_vm5, %v3327_v52, %v3586_v34  ;;  %v3437_v44 = vmul.f32 %v6958_v5, %v8380_v55  ;;  %v3440_v34 = vmul.f32 %v6958_v5, %v8299_v60  ;;  %v8386_v60 = vld [vmem:[#allocation78_spill] sm:$0xff] }
 0x44c   : > { %v7132_v56 = vsel %vm2465_vm5, %v3325_v23, %v3582_v27  ;;  %v3316_v25 = vmul.f32 %v6958_v5, %v8386_v60  ;;  %v3448_v55 = vmul.f32 %v6958_v5, %v8308_v19 }
 0x44d   : > { %v3469_v24 = vmax.f32 %v3437_v44, 0.0  ;;  %v3472_v20 = vmax.f32 %v3440_v34, 0.0 }
 0x44e   : > { %v3480_v8 = vmax.f32 %v3448_v55, 0.0  ;;  %v8394_v55 = vld [vmem:[#allocation72_spill] sm:$0xff] }
 0x450   : > { %3739 = vrot.lane.b32.xlu2 %v3468_v22, %s4738_s29  ;;  %3737 = vrot.lane.b32.xlu1 %v3467_v35, %s4738_s29  ;;  %v3345_v22 = vmax.f32 %v3313_v32, 0.0 }
 0x451   : > { %3735 = vrot.lane.b32.xlu0 %v3466_v28, %s4738_s29  ;;  %v3348_v28 = vmax.f32 %v3316_v25, 0.0 }
 0x452   : > { %v3610_v15 = vpop.permute.xlu2 %3609  ;;  %v3588_v63 = vpop.permute.xlu1 %3587 }
 0x453   : > { %v7137_v13 = vsel %vm2465_vm5, %v3339_v7, %v3610_v15  ;;  %v3584_v59 = vpop.permute.xlu0 %3583  ;;  %v7153_v43 = vsel %vm2465_vm5, %v3328_v30, %v3588_v63  ;;  %v3441_v7 = vmul.f32 %v6958_v5, %v6447_v57  ;;  %v8385_v57 = vld [vmem:[#allocation122_spill] sm:$0xff]  ;;  %v3444_v30 = vmul.f32 %v6958_v5, %v6465_v12  ;;  %v8388_v12 = vld [vmem:[#allocation68_spill] sm:$0xff] }
 0x454   : > { %v7156_v45 = vsel %vm2465_vm5, %v3326_v18, %v3584_v59  ;;  %v3303_v39 = vmul.f32 %v6958_v5, %v8385_v57  ;;  %v3306_v29 = vmul.f32 %v6958_v5, %v8388_v12 }
 0x455   : > { %v3473_v37 = vmax.f32 %v3441_v7, 0.0  ;;  %v3476_v33 = vmax.f32 %v3444_v30, 0.0  ;;  %v3451_v7 = vmul.f32 %v6958_v5, %v8327_v53  ;;  %v8393_v30 = vld [vmem:[#allocation102_spill] sm:$0xff] }
 0x456   : > { %v3335_v35 = vmax.f32 %v3303_v39, 0.0  ;;  %v3338_v32 = vmax.f32 %v3306_v29, 0.0 }
 0x457   : > { %v3483_v60 = vmax.f32 %v3451_v7, 0.0  ;;  %v8398_v7 = vld [vmem:[#allocation79_spill] sm:$0xff] }
 0x458   : > { %3745 = vrot.lane.b32.xlu2 %v3471_v41, %s4738_s29  ;;  %3743 = vrot.lane.b32.xlu1 %v3470_v26, %s4738_s29 }
 0x459   : > { %3741 = vrot.lane.b32.xlu0 %v3469_v24, %s4738_s29 }
 0x45a   : > { %v3616_v54 = vpop.permute.xlu2 %3615  ;;  %v3596_v23 = vpop.permute.xlu1 %3595 }
 0x45b   : > { %v7161_v38 = vsel %vm2465_vm5, %v3342_v14, %v3616_v54  ;;  %v3594_v52 = vpop.permute.xlu0 %3593  ;;  %v7177_v27 = vsel %vm2465_vm5, %v3332_v1, %v3596_v23  ;;  %v3443_v14 = vmul.f32 %v6958_v5, %v6461_v31  ;;  %v8387_v54 = vld [vmem:[#allocation73_spill] sm:$0xff]  ;;  %v3446_v1 = vmul.f32 %v6958_v5, %v8304_v21 }
 0x45c   : > { %v7180_v6 = vsel %vm2465_vm5, %v3331_v36, %v3594_v52  ;;  %v3305_v0 = vmul.f32 %v6958_v5, %v8387_v54  ;;  %v8389_v31 = vld [vmem:[#allocation9_spill] sm:$0xff]  ;;  %v3447_v36 = vmul.f32 %v6958_v5, %v8307_v2  ;;  %v8391_v2 = vld [vmem:[#allocation70_spill] sm:$0xff]  ;;  %v3311_v54 = vmul.f32 %v6958_v5, %v8394_v55 }
 0x45d   : > { %v3319_v9 = vmul.f32 %v6958_v5, %v8389_v31  ;;  %v3475_v3 = vmax.f32 %v3443_v14, 0.0  ;;  %v3309_v47 = vmul.f32 %v6958_v5, %v8391_v2  ;;  %v8392_v21 = vld [vmem:[#allocation21_spill] sm:$0xff]  ;;  %v3478_v39 = vmax.f32 %v3446_v1, 0.0 }
 0x45e   : > { %v3337_v19 = vmax.f32 %v3305_v0, 0.0  ;;  %v3322_v58 = vmul.f32 %v6958_v5, %v8392_v21  ;;  %v3479_v57 = vmax.f32 %v3447_v36, 0.0  ;;  %v3486_v14 = vmul.f32 %v6958_v5, %v8393_v30  ;;  %v8397_v36 = vld [vmem:[#allocation108_spill] sm:$0xff] }
 0x45f   : > { %v3351_v26 = vmax.f32 %v3319_v9, 0.0  ;;  %v3341_v25 = vmax.f32 %v3309_v47, 0.0  ;;  %v3343_v31 = vmax.f32 %v3311_v54, 0.0  ;;  %v3489_v1 = vmul.f32 %v6958_v5, %v8397_v36  ;;  %v8404_v54 = vld [vmem:[#allocation5_spill] sm:$0xff] }
 0x460   : > { %3751 = vrot.lane.b32.xlu2 %v3474_v40, %s4738_s29  ;;  %3749 = vrot.lane.b32.xlu1 %v3473_v37, %s4738_s29  ;;  %v3354_v37 = vmax.f32 %v3322_v58, 0.0  ;;  %v3518_v29 = vmax.f32 %v3486_v14, 0.0  ;;  %v8403_v14 = vld [vmem:[#allocation36_spill] sm:$0xff] }
 0x461   : > { %3747 = vrot.lane.b32.xlu0 %v3472_v20, %s4738_s29  ;;  %v3521_v21 = vmax.f32 %v3489_v1, 0.0  ;;  %v3317_v55 = vmul.f32 %v6958_v5, %v8403_v14  ;;  %v8407_v1 = vld [vmem:[#allocation85_spill] sm:$0xff] }
 0x462   : > { %v3622_v17 = vpop.permute.xlu2 %3621  ;;  %v3602_v41 = vpop.permute.xlu1 %3601 }
 0x463   : > { %v7185_v15 = vsel %vm2465_vm5, %v3345_v22, %v3622_v17  ;;  %v3600_v18 = vpop.permute.xlu0 %3599  ;;  %v7201_v63 = vsel %vm2465_vm5, %v3335_v35, %v3602_v41  ;;  %v8390_v17 = vld [vmem:[#allocation75_spill] sm:$0xff]  ;;  %v3449_v35 = vmul.f32 %v6958_v5, %v8313_v4 }
 0x464   : > { %v7204_v59 = vsel %vm2465_vm5, %v3334_v46, %v3600_v18  ;;  %v3308_v16 = vmul.f32 %v6958_v5, %v8390_v17  ;;  %v3450_v46 = vmul.f32 %v6958_v5, %v8320_v42  ;;  %v8395_v42 = vld [vmem:[#allocation74_spill] sm:$0xff]  ;;  %v3314_v17 = vmul.f32 %v6958_v5, %v8398_v7 }
 0x465   : > { %v3312_v0 = vmul.f32 %v6958_v5, %v8395_v42  ;;  %v3481_v12 = vmax.f32 %v3449_v35, 0.0  ;;  %v8402_v35 = vld [vmem:[#allocation114_spill] sm:$0xff]  ;;  %v3318_v42 = vmul.f32 %v6958_v5, %v8404_v54  ;;  %v3495_v7 = vmul.f32 %v6958_v5, %v8407_v1  ;;  %v8416_v1 = vld [vmem:[#allocation87_spill] sm:$0xff] }
 0x466   : > { %v3340_v53 = vmax.f32 %v3308_v16, 0.0  ;;  %v3482_v4 = vmax.f32 %v3450_v46, 0.0  ;;  %v8399_v16 = vld [vmem:[#allocation32_spill] sm:$0xff]  ;;  %v3346_v58 = vmax.f32 %v3314_v17, 0.0 }
 0x467   : > { %v3344_v9 = vmax.f32 %v3312_v0, 0.0 }
 0x468   : > { %3757 = vrot.lane.b32.xlu2 %v3477_v61, %s4738_s29  ;;  %3755 = vrot.lane.b32.xlu1 %v3476_v33, %s4738_s29 }
 0x469   : > { %3753 = vrot.lane.b32.xlu0 %v3475_v3, %s4738_s29 }
 0x46a   : > { %v3628_v49 = vpop.permute.xlu2 %3627  ;;  %v3608_v24 = vpop.permute.xlu1 %3607 }
 0x46b   : > { %v7209_v44 = vsel %vm2465_vm5, %v3348_v28, %v3628_v49  ;;  %v3606_v40 = vpop.permute.xlu0 %3605  ;;  %v7225_v22 = vsel %vm2465_vm5, %v3338_v32, %v3608_v24  ;;  %v3452_v32 = vmul.f32 %v6958_v5, %v8332_v48  ;;  %v3315_v48 = vmul.f32 %v6958_v5, %v8399_v16  ;;  %v8408_v16 = vld [vmem:[#allocation13_spill] sm:$0xff] }
 0x46c   : > { %v7228_v23 = vsel %vm2465_vm5, %v3337_v19, %v3606_v40 }
 0x46d   : > { %v3484_v47 = vmax.f32 %v3452_v32, 0.0 }
 0x470   : > { %3763 = vrot.lane.b32.xlu2 %v3480_v8, %s4738_s29  ;;  %3761 = vrot.lane.b32.xlu1 %v3479_v57, %s4738_s29  ;;  %v8396_v8 = vld [vmem:[#allocation100_spill] sm:$0xff]  ;;  %v3347_v57 = vmax.f32 %v3315_v48, 0.0  ;;  %v3320_v48 = vmul.f32 %v6958_v5, %v8408_v16 }
 0x471   : > { %3759 = vrot.lane.b32.xlu0 %v3478_v39, %s4738_s29  ;;  %v3485_v19 = vmul.f32 %v6958_v5, %v8396_v8  ;;  %v8406_v8 = vld [vmem:[#allocation110_spill] sm:$0xff] }
 0x472   : > { %v3634_v52 = vpop.permute.xlu2 %3633  ;;  %v3614_v20 = vpop.permute.xlu1 %3613 }
 0x473   : > { %v7233_v34 = vsel %vm2465_vm5, %v3351_v26, %v3634_v52  ;;  %v3612_v61 = vpop.permute.xlu0 %3611  ;;  %v7249_v28 = vsel %vm2465_vm5, %v3341_v25, %v3614_v20  ;;  %v3517_v2 = vmax.f32 %v3485_v19, 0.0  ;;  %v8401_v25 = vld [vmem:[#allocation104_spill] sm:$0xff]  ;;  %v3490_v19 = vmul.f32 %v6958_v5, %v8406_v8 }
 0x474   : > { %v7252_v41 = vsel %vm2465_vm5, %v3340_v53, %v3612_v61 }
 0x478   : > { %3769 = vrot.lane.b32.xlu2 %v3483_v60, %s4738_s29  ;;  %3767 = vrot.lane.b32.xlu1 %v3482_v4, %s4738_s29  ;;  %v8400_v60 = vld [vmem:[#allocation106_spill] sm:$0xff] }
 0x479   : > { %3765 = vrot.lane.b32.xlu0 %v3481_v12, %s4738_s29  ;;  %v3488_v53 = vmul.f32 %v6958_v5, %v8400_v60 }
 0x47a   : > { %v3640_v18 = vpop.permute.xlu2 %3639  ;;  %v3620_v33 = vpop.permute.xlu1 %3619 }
 0x47b   : > { %v7257_v49 = vsel %vm2465_vm5, %v3354_v37, %v3640_v18  ;;  %v3618_v3 = vpop.permute.xlu0 %3617  ;;  %v7271_v26 = vsel %vm2465_vm5, %v3344_v9, %v3620_v33  ;;  %v3487_v37 = vmul.f32 %v6958_v5, %v8401_v25  ;;  %v3492_v18 = vmul.f32 %v6958_v5, %v8402_v35  ;;  %v8405_v33 = vld [vmem:[#allocation112_spill] sm:$0xff] }
 0x47c   : > { %v7274_v24 = vsel %vm2465_vm5, %v3343_v31, %v3618_v3  ;;  %v3520_v0 = vmax.f32 %v3488_v53, 0.0  ;;  %v3350_v31 = vmax.f32 %v3318_v42, 0.0  ;;  %v3491_v3 = vmul.f32 %v6958_v5, %v8405_v33  ;;  %v8410_v53 = vld [vmem:[#allocation83_spill] sm:$0xff] }
 0x47d   : > { %v3519_v4 = vmax.f32 %v3487_v37, 0.0  ;;  %v3524_v12 = vmax.f32 %v3492_v18, 0.0  ;;  %v3494_v25 = vmul.f32 %v6958_v5, %v8410_v53  ;;  %v8411_v37 = vld [vmem:[#allocation81_spill] sm:$0xff]  ;;  %v8418_v53 = vld [vmem:[#allocation95_spill] sm:$0xff] }
 0x480   : > { %3839 = vrot.lane.b32.xlu2 %v3518_v29, %s4739_s30  ;;  %3837 = vrot.lane.b32.xlu1 %v3517_v2, %s4739_s30  ;;  %v3349_v29 = vmax.f32 %v3317_v55, 0.0  ;;  %v8409_v2 = vld [vmem:[#allocation17_spill] sm:$0xff]  ;;  %v8412_v55 = vld [vmem:[#allocation91_spill] sm:$0xff] }
 0x481   : > { %3771 = vrot.lane.b32.xlu0 %v3484_v47, %s4738_s29  ;;  %v3321_v47 = vmul.f32 %v6958_v5, %v8409_v2  ;;  %v3498_v54 = vmul.f32 %v6958_v5, %v8412_v55  ;;  %v8420_v55 = vld [vmem:[#allocation103_spill] sm:$0xff] }
 0x482   : > { %v3710_v40 = vpop.permute.xlu2 %3709  ;;  %v3626_v39 = vpop.permute.xlu1 %3625 }
 0x483   : > { %v7280_v52 = vsel %vm3965_vm9, %v7132_v56, %v3710_v40  ;;  %v3624_v56 = vpop.permute.xlu0 %3623  ;;  %v7294_v20 = vsel %vm2465_vm5, %v3347_v57, %v3626_v39  ;;  %v3527_v57 = vmax.f32 %v3495_v7, 0.0  ;;  %v3352_v39 = vmax.f32 %v3320_v48, 0.0 }
 0x484   : > { %v7297_v61 = vsel %vm2465_vm5, %v3346_v58, %v3624_v56  ;;  %v3522_v58 = vmax.f32 %v3490_v19, 0.0  ;;  %v3353_v56 = vmax.f32 %v3321_v47, 0.0  ;;  %v8415_v19 = vld [vmem:[#allocation89_spill] sm:$0xff]  ;;  %v3496_v7 = vmul.f32 %v6958_v5, %v8416_v1 }
 0x485   : > { %v8417_v47 = vld [vmem:[#allocation97_spill] sm:$0xff] }
 0x488   : > { %3845 = vrot.lane.b32.xlu2 %v3521_v21, %s4739_s30  ;;  %3843 = vrot.lane.b32.xlu1 %v3520_v0, %s4739_s30  ;;  %v3523_v21 = vmax.f32 %v3491_v3, 0.0  ;;  %v8413_v0 = vld [vmem:[#allocation25_spill] sm:$0xff] }
 0x489   : > { %3841 = vrot.lane.b32.xlu0 %v3519_v4, %s4739_s30  ;;  %v3323_v4 = vmul.f32 %v6958_v5, %v8413_v0 }
 0x48a   : > { %v3716_v46 = vpop.permute.xlu2 %3715  ;;  %v3632_v9 = vpop.permute.xlu1 %3631 }
 0x48b   : > { %v7303_v30 = vsel %vm3965_vm9, %v7153_v43, %v3716_v46  ;;  %v3630_v43 = vpop.permute.xlu0 %3629  ;;  %v7317_v32 = vsel %vm2465_vm5, %v3350_v31, %v3632_v9  ;;  %v3493_v46 = vmul.f32 %v6958_v5, %v8411_v37  ;;  %v3526_v31 = vmax.f32 %v3494_v25, 0.0  ;;  %v8419_v37 = vld [vmem:[#allocation93_spill] sm:$0xff] }
 0x48c   : > { %v7320_v40 = vsel %vm2465_vm5, %v3349_v29, %v3630_v43  ;;  %v3530_v43 = vmax.f32 %v3498_v54, 0.0  ;;  %v3355_v33 = vmax.f32 %v3323_v4, 0.0  ;;  %v3500_v25 = vmul.f32 %v6958_v5, %v8418_v53  ;;  %v8426_v53 = vld [vmem:[#allocation115_spill] sm:$0xff] }
 0x48d   : > { %v3525_v9 = vmax.f32 %v3493_v46, 0.0  ;;  %v3499_v46 = vmul.f32 %v6958_v5, %v8419_v37  ;;  %v3504_v54 = vmul.f32 %v6958_v5, %v8420_v55 }
 0x48e   : > { %v3532_v4 = vmax.f32 %v3500_v25, 0.0  ;;  %v3510_v25 = vmul.f32 %v6958_v5, %v8426_v53 }
 0x490   : > { %3851 = vrot.lane.b32.xlu2 %v3524_v12, %s4739_s30  ;;  %3849 = vrot.lane.b32.xlu1 %v3523_v21, %s4739_s30  ;;  %v8414_v12 = vld [vmem:[#allocation29_spill] sm:$0xff]  ;;  %v3501_v21 = vmul.f32 %v6958_v5, %v8417_v47  ;;  %v3542_v55 = vmax.f32 %v3510_v25, 0.0 }
 0x491   : > { %3847 = vrot.lane.b32.xlu0 %v3522_v58, %s4739_s30  ;;  %v3324_v29 = vmul.f32 %v6958_v5, %v8414_v12  ;;  %v3531_v12 = vmax.f32 %v3499_v46, 0.0 }
 0x492   : > { %v3722_v36 = vpop.permute.xlu2 %3721  ;;  %v3638_v60 = vpop.permute.xlu1 %3637 }
 0x493   : > { %v7326_v17 = vsel %vm3965_vm9, %v7180_v6, %v3722_v36  ;;  %v3636_v6 = vpop.permute.xlu0 %3635  ;;  %v7340_v35 = vsel %vm2465_vm5, %v3353_v56, %v3638_v60  ;;  %v3356_v3 = vmax.f32 %v3324_v29, 0.0  ;;  %v3497_v36 = vmul.f32 %v6958_v5, %v8415_v19 }
 0x494   : > { %v7343_v18 = vsel %vm2465_vm5, %v3352_v39, %v3636_v6  ;;  %v3528_v39 = vmax.f32 %v3496_v7, 0.0  ;;  %v3533_v56 = vmax.f32 %v3501_v21, 0.0  ;;  %v3536_v29 = vmax.f32 %v3504_v54, 0.0  ;;  %v8424_v21 = vld [vmem:[#allocation107_spill] sm:$0xff] }
 0x498   : > { %3857 = vrot.lane.b32.xlu2 %v3527_v57, %s4739_s30  ;;  %3855 = vrot.lane.b32.xlu1 %v3526_v31, %s4739_s30  ;;  %v3529_v57 = vmax.f32 %v3497_v36, 0.0 }
 0x499   : > { %3853 = vrot.lane.b32.xlu0 %v3525_v9, %s4739_s30  ;;  %v8421_v9 = vld [vmem:[#allocation101_spill] sm:$0xff] }
 0x49a   : > { %v3728_v14 = vpop.permute.xlu2 %3727  ;;  %v3644_v8 = vpop.permute.xlu1 %3643 }
 0x49b   : > { %v7349_v42 = vsel %vm3965_vm9, %v7204_v59, %v3728_v14  ;;  %v3642_v59 = vpop.permute.xlu0 %3641  ;;  %v7363_v16 = vsel %vm2465_vm5, %v3356_v3, %v3644_v8 }
 0x49c   : > { %v7366_v48 = vsel %vm2465_vm5, %v3355_v33, %v3642_v59  ;;  %v8422_v33 = vld [vmem:[#allocation99_spill] sm:$0xff]  ;;  %v8423_v59 = vld [vmem:[#allocation109_spill] sm:$0xff] }
 0x49d   : > { %v3502_v3 = vmul.f32 %v6958_v5, %v8422_v33  ;;  %v3507_v19 = vmul.f32 %v6958_v5, %v8423_v59 }
 0x49f   : > { %v3534_v7 = vmax.f32 %v3502_v3, 0.0 }
 0x4a0   : > { %3863 = vrot.lane.b32.xlu2 %v3530_v43, %s4739_s30  ;;  %3861 = vrot.lane.b32.xlu1 %v3529_v57, %s4739_s30  ;;  %v3503_v43 = vmul.f32 %v6958_v5, %v8421_v9  ;;  %v3506_v57 = vmul.f32 %v6958_v5, %v8424_v21 }
 0x4a1   : > { %3859 = vrot.lane.b32.xlu0 %v3528_v39, %s4739_s30  ;;  %v8425_v39 = vld [vmem:[#allocation105_spill] sm:$0xff] }
 0x4a2   : > { %v3734_v2 = vpop.permute.xlu2 %3733  ;;  %v3714_v60 = vpop.permute.xlu1 %3713  ;;  %v3535_v1 = vmax.f32 %v3503_v43, 0.0  ;;  %v3538_v46 = vmax.f32 %v3506_v57, 0.0  ;;  %v8429_v43 = vld [vmem:[#allocation118_spill] sm:$0xff] }
 0x4a3   : > { %v7372_v58 = vsel %vm3965_vm9, %v7228_v23, %v3734_v2  ;;  %v7377_v6 = vpop.permute.xlu0 %3711  ;;  %v7385_v23 = vsel %vm3965_vm9, %v7129_v62, %v3714_v60  ;;  %v3539_v2 = vmax.f32 %v3507_v19, 0.0  ;;  %v3513_v33 = vmul.f32 %v6958_v5, %v8429_v43 }
 0x4a5   : > { %v3545_v19 = vmax.f32 %v3513_v33, 0.0 }
 0x4a8   : > { %3869 = vrot.lane.b32.xlu2 %v3533_v56, %s4739_s30  ;;  %3867 = vrot.lane.b32.xlu1 %v3532_v4, %s4739_s30  ;;  %v3505_v56 = vmul.f32 %v6958_v5, %v8425_v39  ;;  %v8427_v4 = vld [vmem:[#allocation113_spill] sm:$0xff]  ;;  %v8432_v39 = vld [vmem:[#allocation123_spill] sm:$0xff] }
 0x4a9   : > { %3865 = vrot.lane.b32.xlu0 %v3531_v12, %s4739_s30  ;;  %v3509_v12 = vmul.f32 %v6958_v5, %v8427_v4  ;;  %v8434_v4 = vld [vmem:[#allocation37_spill] sm:$0xff] }
 0x4aa   : > { %v3740_v14 = vpop.permute.xlu2 %3739  ;;  %v3720_v31 = vpop.permute.xlu1 %3719 }
 0x4ab   : > { %v7391_v0 = vsel %vm3965_vm9, %v7252_v41, %v3740_v14  ;;  %v7396_v62 = vpop.permute.xlu0 %3717  ;;  %v7404_v41 = vsel %vm3965_vm9, %v7085_v10, %v3720_v31  ;;  %v3537_v14 = vmax.f32 %v3505_v56, 0.0  ;;  %v3516_v56 = vmul.f32 %v6958_v5, %v8432_v39 }
 0x4b0   : > { %3875 = vrot.lane.b32.xlu2 %v3536_v29, %s4739_s30  ;;  %3873 = vrot.lane.b32.xlu1 %v3535_v1, %s4739_s30  ;;  %v8428_v29 = vld [vmem:[#allocation111_spill] sm:$0xff] }
 0x4b1   : > { %3871 = vrot.lane.b32.xlu0 %v3534_v7, %s4739_s30  ;;  %v3508_v31 = vmul.f32 %v6958_v5, %v8428_v29  ;;  %v8430_v7 = vld [vmem:[#allocation117_spill] sm:$0xff] }
 0x4b2   : > { %v3746_v8 = vpop.permute.xlu2 %3745  ;;  %v3726_v47 = vpop.permute.xlu1 %3725 }
 0x4b3   : > { %v7410_v36 = vsel %vm3965_vm9, %v7274_v24, %v3746_v8  ;;  %v7415_v10 = vpop.permute.xlu0 %3723  ;;  %v7423_v24 = vsel %vm3965_vm9, %v7099_v50, %v3726_v47  ;;  %v3541_v8 = vmax.f32 %v3509_v12, 0.0  ;;  %v3540_v59 = vmax.f32 %v3508_v31, 0.0  ;;  %v8431_v47 = vld [vmem:[#allocation116_spill] sm:$0xff] }
 0x4b4   : > { %v3511_v21 = vmul.f32 %v6958_v5, %v8431_v47  ;;  %v3514_v12 = vmul.f32 %v6958_v5, %v8434_v4 }
 0x4b6   : > { %v3543_v25 = vmax.f32 %v3511_v21, 0.0  ;;  %v3546_v43 = vmax.f32 %v3514_v12, 0.0  ;;  %v3973_v21 = vsel %vm3965_vm9, %v7177_v27, %v7415_v10 }
 0x4b8   : > { %3881 = vrot.lane.b32.xlu2 %v3539_v2, %s4739_s30  ;;  %3879 = vrot.lane.b32.xlu1 %v3538_v46, %s4739_s30  ;;  %v3512_v2 = vmul.f32 %v6958_v5, %v8430_v7  ;;  %v3548_v46 = vmax.f32 %v3516_v56, 0.0  ;;  %v3970_v7 = vsel %vm3965_vm9, %v7069_v11, %v7396_v62 }
 0x4b9   : > { %3877 = vrot.lane.b32.xlu0 %v3537_v14, %s4739_s30 }
 0x4ba   : > { %v3752_v60 = vpop.permute.xlu2 %3751  ;;  %v3732_v54 = vpop.permute.xlu1 %3731  ;;  %v3544_v53 = vmax.f32 %v3512_v2, 0.0 }
 0x4bb   : > { %v7429_v37 = vsel %vm3965_vm9, %v7297_v61, %v3752_v60  ;;  %v7434_v50 = vpop.permute.xlu0 %3729  ;;  %v7442_v61 = vsel %vm3965_vm9, %v7113_v51, %v3732_v54 }
 0x4bc   : > { %v3976_v56 = vsel %vm3965_vm9, %v7201_v63, %v7434_v50 }
 0x4c0   : > { %3887 = vrot.lane.b32.xlu2 %v3542_v55, %s4739_s30  ;;  %3885 = vrot.lane.b32.xlu1 %v3541_v8, %s4739_s30  ;;  %v8433_v55 = vld [vmem:[#allocation71_spill] sm:$0xff] }
 0x4c1   : > { %3883 = vrot.lane.b32.xlu0 %v3540_v59, %s4739_s30  ;;  %v3515_v54 = vmul.f32 %v6958_v5, %v8433_v55 }
 0x4c2   : > { %v3758_v9 = vpop.permute.xlu2 %3757  ;;  %v3738_v1 = vpop.permute.xlu1 %3737 }
 0x4c3   : > { %v7448_v3 = vsel %vm3965_vm9, %v7320_v40, %v3758_v9  ;;  %v3736_v51 = vpop.permute.xlu0 %3735  ;;  %v7459_v40 = vsel %vm3965_vm9, %v7137_v13, %v3738_v1  ;;  %v3547_v9 = vmax.f32 %v3515_v54, 0.0 }
 0x4c8   : > { %3893 = vrot.lane.b32.xlu2 %v3545_v19, %s4739_s30  ;;  %3891 = vrot.lane.b32.xlu1 %v3544_v53, %s4739_s30 }
 0x4c9   : > { %3889 = vrot.lane.b32.xlu0 %v3543_v25, %s4739_s30 }
 0x4ca   : > { %v3764_v57 = vpop.permute.xlu2 %3763  ;;  %v3744_v13 = vpop.permute.xlu1 %3743 }
 0x4cb   : > { %v7465_v60 = vsel %vm3965_vm9, %v7343_v18, %v3764_v57  ;;  %v3742_v14 = vpop.permute.xlu0 %3741  ;;  %v7476_v18 = vsel %vm3965_vm9, %v7161_v38, %v3744_v13  ;;  %v3967_v38 = vsel %vm3965_vm9, %v7156_v45, %v7377_v6 }
 0x4cc   : > { %v3982_v54 = vsel %vm3965_vm9, %v7249_v28, %v3742_v14 }
 0x4d0   : > { %3899 = vrot.lane.b32.xlu2 %v3548_v46, %s4739_s30  ;;  %3897 = vrot.lane.b32.xlu1 %v3547_v9, %s4739_s30  ;;  %v3979_v46 = vsel %vm3965_vm9, %v7225_v22, %v3736_v51 }
 0x4d1   : > { %3895 = vrot.lane.b32.xlu0 %v3546_v43, %s4739_s30 }
 0x4d2   : > { %v3770_v29 = vpop.permute.xlu2 %3769  ;;  %v3750_v5 = vpop.permute.xlu1 %3749 }
 0x4d3   : > { %v7480_v31 = vsel %vm3965_vm9, %v7366_v48, %v3770_v29  ;;  %v3748_v33 = vpop.permute.xlu0 %3747  ;;  %v7492_v48 = vsel %vm3965_vm9, %v7185_v15, %v3750_v5 }
 0x4d4   : > { %v3985_v28 = vsel %vm3965_vm9, %v7271_v26, %v3748_v33 }
 0x4da   : > { %v3840_v8 = vpop.permute.xlu2 %3839  ;;  %v3756_v19 = vpop.permute.xlu1 %3755 }
 0x4db   : > { %v4000_v59 = vsel %vm3998_vm10, %v3967_v38, %v3840_v8  ;;  %v3754_v1 = vpop.permute.xlu0 %3753  ;;  %v7503_v45 = vsel %vm3965_vm9, %v7209_v44, %v3756_v19 }
 0x4dc   : > { %4032 = vst [vmem:[%s7495_s5 + $0x8] sm:$0xff] %v4000_v59  ;;  %v3988_v26 = vsel %vm3965_vm9, %v7294_v20, %v3754_v1 }
 0x4e2   : > { %v3846_v15 = vpop.permute.xlu2 %3845  ;;  %v3762_v2 = vpop.permute.xlu1 %3761 }
 0x4e3   : > { %v4003_v6 = vsel %vm3998_vm10, %v3970_v7, %v3846_v15  ;;  %v3760_v47 = vpop.permute.xlu0 %3759  ;;  %v7512_v57 = vsel %vm3965_vm9, %v7233_v34, %v3762_v2 }
 0x4e4   : > { %4035 = vst [vmem:[%s7495_s5 + $0x20] sm:$0xff] %v4003_v6  ;;  %v3991_v20 = vsel %vm3965_vm9, %v7317_v32, %v3760_v47 }
 0x4ea   : > { %v3852_v11 = vpop.permute.xlu2 %3851  ;;  %v3768_v62 = vpop.permute.xlu1 %3767 }
 0x4eb   : > { %v4006_v44 = vsel %vm3998_vm10, %v3973_v21, %v3852_v11  ;;  %v3766_v39 = vpop.permute.xlu0 %3765  ;;  %v7521_v53 = vsel %vm3965_vm9, %v7257_v49, %v3768_v62 }
 0x4ec   : > { %4038 = vst [vmem:[%s7495_s5 + $0x38] sm:$0xff] %v4006_v44  ;;  %v3994_v32 = vsel %vm3965_vm9, %v7340_v35, %v3766_v39 }
 0x4f2   : > { %v3858_v27 = vpop.permute.xlu2 %3857  ;;  %v3838_v10 = vpop.permute.xlu1 %3837 }
 0x4f3   : > { %v4009_v34 = vsel %vm3998_vm10, %v3976_v56, %v3858_v27  ;;  %v3772_v25 = vpop.permute.xlu0 %3771  ;;  %v3999_v13 = vsel %vm3998_vm10, %v7280_v52, %v3838_v10 }
 0x4f4   : > { %4041 = vst [vmem:[%s7495_s5 + $0x50] sm:$0xff] %v4009_v34  ;;  %v3997_v35 = vsel %vm3965_vm9, %v7363_v16, %v3772_v25 }
 0x4f5   : > { %4031 = vst [vmem:[%s7495_s5] sm:$0xff] %v3999_v13 }
 0x4fa   : > { %v3864_v63 = vpop.permute.xlu2 %3863  ;;  %v3844_v50 = vpop.permute.xlu1 %3843 }
 0x4fb   : > { %v4012_v49 = vsel %vm3998_vm10, %v3979_v46, %v3864_v63  ;;  %v3842_v55 = vpop.permute.xlu0 %3841  ;;  %v4002_v4 = vsel %vm3998_vm10, %v7303_v30, %v3844_v50 }
 0x4fc   : > { %4044 = vst [vmem:[%s7495_s5 + $0x68] sm:$0xff] %v4012_v49  ;;  %v4001_v22 = vsel %vm3998_vm10, %v7385_v23, %v3842_v55 }
 0x4fd   : > { %4034 = vst [vmem:[%s7495_s5 + $0x18] sm:$0xff] %v4002_v4 }
 0x4fe   : > { %4033 = vst [vmem:[%s7495_s5 + $0x10] sm:$0xff] %v4001_v22 }
 0x502   : > { %v3870_v52 = vpop.permute.xlu2 %3869  ;;  %v3850_v12 = vpop.permute.xlu1 %3849 }
 0x503   : > { %v4015_v51 = vsel %vm3998_vm10, %v3982_v54, %v3870_v52  ;;  %v3848_v29 = vpop.permute.xlu0 %3847  ;;  %v4005_v30 = vsel %vm3998_vm10, %v7326_v17, %v3850_v12 }
 0x504   : > { %4047 = vst [vmem:[%s7495_s5 + $0x80] sm:$0xff] %v4015_v51  ;;  %v4004_v23 = vsel %vm3998_vm10, %v7404_v41, %v3848_v29 }
 0x505   : > { %4037 = vst [vmem:[%s7495_s5 + $0x30] sm:$0xff] %v4005_v30 }
 0x506   : > { %4036 = vst [vmem:[%s7495_s5 + $0x28] sm:$0xff] %v4004_v23 }
 0x50a   : > { %v3876_v14 = vpop.permute.xlu2 %3875  ;;  %v3856_v43 = vpop.permute.xlu1 %3855 }
 0x50b   : > { %v4018_v9 = vsel %vm3998_vm10, %v3985_v28, %v3876_v14  ;;  %v3854_v5 = vpop.permute.xlu0 %3853  ;;  %v4008_v17 = vsel %vm3998_vm10, %v7349_v42, %v3856_v43 }
 0x50c   : > { %4050 = vst [vmem:[%s7495_s5 + $0x98] sm:$0xff] %v4018_v9  ;;  %v4007_v41 = vsel %vm3998_vm10, %v7423_v24, %v3854_v5 }
 0x50d   : > { %4040 = vst [vmem:[%s7495_s5 + $0x48] sm:$0xff] %v4008_v17 }
 0x50e   : > { %4039 = vst [vmem:[%s7495_s5 + $0x40] sm:$0xff] %v4007_v41 }
 0x512   : > { %v3882_v33 = vpop.permute.xlu2 %3881  ;;  %v3862_v8 = vpop.permute.xlu1 %3861 }
 0x513   : > { %v4021_v38 = vsel %vm3998_vm10, %v3988_v26, %v3882_v33  ;;  %v3860_v59 = vpop.permute.xlu0 %3859  ;;  %v4011_v42 = vsel %vm3998_vm10, %v7372_v58, %v3862_v8 }
 0x514   : > { %4053 = vst [vmem:[%s7495_s5 + $0xb0] sm:$0xff] %v4021_v38  ;;  %v4010_v24 = vsel %vm3998_vm10, %v7442_v61, %v3860_v59 }
 0x515   : > { %4043 = vst [vmem:[%s7495_s5 + $0x60] sm:$0xff] %v4011_v42 }
 0x516   : > { %4042 = vst [vmem:[%s7495_s5 + $0x58] sm:$0xff] %v4010_v24 }
 0x51a   : > { %v3888_v19 = vpop.permute.xlu2 %3887  ;;  %v3868_v7 = vpop.permute.xlu1 %3867 }
 0x51b   : > { %v4024_v1 = vsel %vm3998_vm10, %v3991_v20, %v3888_v19  ;;  %v3866_v15 = vpop.permute.xlu0 %3865  ;;  %v4014_v58 = vsel %vm3998_vm10, %v7391_v0, %v3868_v7 }
 0x51c   : > { %4056 = vst [vmem:[%s7495_s5 + $0xc8] sm:$0xff] %v4024_v1  ;;  %v4013_v61 = vsel %vm3998_vm10, %v7459_v40, %v3866_v15 }
 0x51d   : > { %4046 = vst [vmem:[%s7495_s5 + $0x78] sm:$0xff] %v4014_v58 }
 0x51e   : > { %4045 = vst [vmem:[%s7495_s5 + $0x70] sm:$0xff] %v4013_v61 }
 0x522   : > { %v3894_v6 = vpop.permute.xlu2 %3893  ;;  %v3874_v47 = vpop.permute.xlu1 %3873 }
 0x523   : > { %v4027_v2 = vsel %vm3998_vm10, %v3994_v32, %v3894_v6  ;;  %v3872_v21 = vpop.permute.xlu0 %3871  ;;  %v4017_v0 = vsel %vm3998_vm10, %v7410_v36, %v3874_v47 }
 0x524   : > { %4059 = vst [vmem:[%s7495_s5 + $0xe0] sm:$0xff] %v4027_v2  ;;  %v4016_v11 = vsel %vm3998_vm10, %v7476_v18, %v3872_v21 }
 0x525   : > { %4049 = vst [vmem:[%s7495_s5 + $0x90] sm:$0xff] %v4017_v0 }
 0x526   : > { %4048 = vst [vmem:[%s7495_s5 + $0x88] sm:$0xff] %v4016_v11 }
 0x52a   : > { %v3900_v40 = vpop.permute.xlu2 %3899  ;;  %v3880_v62 = vpop.permute.xlu1 %3879 }
 0x52b   : > { %v4030_v44 = vsel %vm3998_vm10, %v3997_v35, %v3900_v40  ;;  %v3878_v39 = vpop.permute.xlu0 %3877  ;;  %v4020_v16 = vsel %vm3998_vm10, %v7429_v37, %v3880_v62 }
 0x52c   : > { %4062 = vst [vmem:[%s7495_s5 + $0xf8] sm:$0xff] %v4030_v44  ;;  %v4019_v36 = vsel %vm3998_vm10, %v7492_v48, %v3878_v39 }
 0x52d   : > { %4052 = vst [vmem:[%s7495_s5 + $0xa8] sm:$0xff] %v4020_v16 }
 0x52e   : > { %4051 = vst [vmem:[%s7495_s5 + $0xa0] sm:$0xff] %v4019_v36 }
 0x532   : > { %v3886_v18 = vpop.permute.xlu1 %3885 }
 0x533   : > { %v3884_v56 = vpop.permute.xlu0 %3883  ;;  %v4023_v27 = vsel %vm3998_vm10, %v7448_v3, %v3886_v18 }
 0x534   : > { %v4022_v34 = vsel %vm3998_vm10, %v7503_v45, %v3884_v56  ;;  %4055 = vst [vmem:[%s7495_s5 + $0xc0] sm:$0xff] %v4023_v27 }
 0x535   : > { %4054 = vst [vmem:[%s7495_s5 + $0xb8] sm:$0xff] %v4022_v34 }
 0x53a   : > { %v3892_v37 = vpop.permute.xlu1 %3891 }
 0x53b   : > { %v3890_v10 = vpop.permute.xlu0 %3889  ;;  %v4026_v48 = vsel %vm3998_vm10, %v7465_v60, %v3892_v37 }
 0x53c   : > { %v4025_v25 = vsel %vm3998_vm10, %v7512_v57, %v3890_v10  ;;  %4058 = vst [vmem:[%s7495_s5 + $0xd8] sm:$0xff] %v4026_v48 }
 0x53d   : > { %4057 = vst [vmem:[%s7495_s5 + $0xd0] sm:$0xff] %v4025_v25 }
 0x542   : > { %v3898_v3 = vpop.permute.xlu1 %3897 }
 0x543   : > { %v3896_v45 = vpop.permute.xlu0 %3895  ;;  %v4029_v46 = vsel %vm3998_vm10, %v7480_v31, %v3898_v3 }
 0x544   : > { %v4028_v60 = vsel %vm3998_vm10, %v7521_v53, %v3896_v45  ;;  %4061 = vst [vmem:[%s7495_s5 + $0xf0] sm:$0xff] %v4029_v46 }
 0x545   : > { %4060 = vst [vmem:[%s7495_s5 + $0xe8] sm:$0xff] %v4028_v60 }
 0x546   : > { %4684 = shalt.err (!%p4681_p5)
}
 0x547   : > { %s4740_s29 = smov 128   ;;  %s4741_s30 = smov 8  }
 0x548   : > { %4577 = dma.vmem_to_hbm [thread:$0]  (%p4797_p4), %s4078_s16, 4096, %s4080_s12, %s4064_s18, %s4740_s29, %s4740_s29, %s4741_s30  }
 0x549 PF: > { %p4583_p6 = scmp.ge.s32.totalorder %s4735_s14, 2  ;;  %s4094_s3 = sand.u32 1, %s4715_s9  }
 0x54a   : > { %s4095_s4 = scalar_lea.sflag [#allocation3], %s4094_s3 }
 0x54b   : > { %p4580_p7 = pnand %p4583_p6, %p4804_p8 }
 0x54d   : > { %p4581_p9 = pneg %p4580_p7 }
 0x54f   : > { %4710 = dma.done.wait (%p4581_p9), %s4095_s4, 4096  }
 0x550   : > { %4712 = vsyncadd (%p4581_p9), %s4095_s4, 4294963200  ;;  %s15_s14 = sadd.s32 1, %s4735_s14   ;;  %s8435_s9 = smov %s4719_s10 }
 0x551   : > { %p12_p10 = scmp.ge.s32.totalorder %s15_s14, 4   ;;  %s8436_s10 = smov %s4723_s11 }
 0x552   : > { %s8437_s11 = smov %s4810_s22  ;;  %s8438_s12 = smov %s4731_s13 }
 0x553   : > { %s8439_s13 = smov %s8441_s17  ;;  %14 = sbr.rel (!%p12_p10) target bundleno = 4 (0x4), region = 75 }
 0x558   :  { %4101 = vsyncpa [#allocation3], 1 }
 0x559   :  { %4103 = vsyncpa [#allocation3 + $0x1], 1 }

</bundles_post_ra>
